<compile_context>
chip_gen: v7x
topology: tpu7x:2x2x1
jax: 0.10.0
libtpu: 0.0.40
codegen_flags: <defaults>
</compile_context>

<pallas_src>
import functools

import jax
import jax.numpy as jnp
from jax.experimental import pallas as pl
from jax.experimental.pallas import tpu as pltpu

# ---------------- config (small, consistent with the module) ----------------
IMAGE = 16
PATCH = 8
CHANNELS = 3
NUM_PATCHES = (IMAGE // PATCH) ** 2          # 4
PATCH_DIM = CHANNELS * PATCH * PATCH         # 192
DIM = 32
DEPTH = 2
HEADS = 4
DIM_HEAD = 8
MLP_DIM = 64
NUM_CLASSES = 10
NC_PAD = 128                                 # class dim padded to a full lane tile
SEQ = NUM_PATCHES + 1                        # 4 patch tokens + 1 distill-token slot
TEMPERATURE = 1.0
ALPHA = 0.5
LN_EPS = 1e-5
NEG_INF = -1e30


# ---------------- in-kernel helpers (pure jnp, traced into the kernels) ----------------

def _ln(x, g, b):
    mu = jnp.mean(x, axis=-1, keepdims=True)
    var = jnp.mean(jnp.square(x - mu), axis=-1, keepdims=True)
    return (x - mu) * jax.lax.rsqrt(var + LN_EPS) * g + b


def _gelu(y):
    # TODO(synk): PyTorch nn.GELU defaults to exact erf GELU; tanh approximation used here.
    c = 0.7978845608028654  # sqrt(2/pi)
    return 0.5 * y * (1.0 + jnp.tanh(c * (y + 0.044715 * y * y * y)))


# ---------------- kernel 1: fused dual (teacher / student) ViT forward ----------------

def _make_vit_kernel(treedef, batch, n_shared):
    R = batch * SEQ
    scale = DIM_HEAD ** -0.5
    n_par = treedef.num_leaves

    def kernel(*refs):
        patches_ref, pmask_ref, pool_ref, dist_ref = refs[:n_shared]
        param_refs = refs[n_shared:n_shared + n_par]
        logits_ref, dtl_ref = refs[n_shared + n_par:]
        p = jax.tree_util.tree_unflatten(treedef, list(param_refs))

        # ---- patch embedding over padded rows (the distill slot row is zero, masked below) ----
        t = patches_ref[...]                                                # (R, PATCH_DIM)
        t = _ln(t, p["patch_ln1_g"][...], p["patch_ln1_b"][...])
        t = jnp.dot(t, p["patch_w"][...],
                    preferred_element_type=jnp.float32) + p["patch_b"][...]
        t = _ln(t, p["patch_ln2_g"][...], p["patch_ln2_b"][...])
        # tok_inject holds pos-embedding for patch rows and the distill token for the
        # last row of each image; the dummy embedded distill row is masked away.
        x = t * pmask_ref[...] + p["tok_inject"][...]                       # (R, DIM)

        # Per-model additive attention bias:
        #  * blocks attention across different images (block-diagonal over the batch)
        #  * for the teacher it also blocks every key at the distill slot, making the
        #    dummy 5th token invisible -> teacher numerics == plain 4-token ViT.
        bias = p["attn_bias"][...]                                          # (R, R)

        for l in range(DEPTH):
            # --- pre-norm multi-head self-attention (qkv bias-free) ---
            h = _ln(x, p["ln1_g"][l], p["ln1_b"][l])
            attn = jnp.zeros((R, DIM), jnp.float32)
            for hh in range(HEADS):
                o = hh * DIM_HEAD
                q = jnp.dot(h, p["q_w"][l, hh], preferred_element_type=jnp.float32)   # (R, dh)
                k = jnp.dot(h, p["k_w"][l, hh], preferred_element_type=jnp.float32)
                v = jnp.dot(h, p["v_w"][l, hh], preferred_element_type=jnp.float32)
                s = jax.lax.dot_general(q, k, (((1,), (1,)), ((), ())),
                                        preferred_element_type=jnp.float32) * scale + bias
                s = s - jnp.max(s, axis=-1, keepdims=True)
                e = jnp.exp(s)
                a = e / jnp.sum(e, axis=-1, keepdims=True)
                oh = jnp.dot(a, v, preferred_element_type=jnp.float32)                # (R, dh)
                # out-projection folded per head: concat_h(oh) @ W == sum_h oh @ W[h-block]
                w_h = p["out_w"][l, o:o + DIM_HEAD, :]                                # (dh, DIM)
                attn = attn + jnp.dot(oh, w_h, preferred_element_type=jnp.float32)
            x = x + attn + p["out_b"][l]

            # --- pre-norm feed-forward ---
            h = _ln(x, p["ln2_g"][l], p["ln2_b"][l])
            h = jnp.dot(h, p["ff1_w"][l],
                        preferred_element_type=jnp.float32) + p["ff1_b"][l]
            h = _gelu(h)
            h = jnp.dot(h, p["ff2_w"][l],
                        preferred_element_type=jnp.float32) + p["ff2_b"][l]
            x = x + h

        x = _ln(x, p["final_ln_g"][...], p["final_ln_b"][...])              # (R, DIM)
        # mean-pool over patch tokens / pick the distill token, both as tiny matmuls
        pooled = jnp.dot(pool_ref[...], x, preferred_element_type=jnp.float32)       # (B, DIM)
        dtl_ref[...] = jnp.dot(dist_ref[...], x, preferred_element_type=jnp.float32)  # (B, DIM)
        logits_ref[...] = (jnp.dot(pooled, p["head_w"][...],
                                   preferred_element_type=jnp.float32) + p["head_b"][...])

    return kernel


def _shared_spec(shape):
    ndim = len(shape)

    def imap(m):
        return (0,) * ndim

    return pl.BlockSpec(shape, imap)


def _stacked_spec(shape):
    rest = tuple(shape[1:])
    ndim = len(rest)

    def imap(m):
        return (m,) + (0,) * ndim

    return pl.BlockSpec((None,) + rest, imap)


def fused_dual_vit(patches2d, patch_mask, pool_mat, dist_mat, stacked_params, batch):
    leaves, treedef = jax.tree_util.tree_flatten(stacked_params)
    shared = [patches2d, patch_mask, pool_mat, dist_mat]
    in_specs = ([_shared_spec(a.shape) for a in shared]
                + [_stacked_spec(a.shape) for a in leaves])
    out_shape = (jax.ShapeDtypeStruct((2, batch, NC_PAD), jnp.float32),
                 jax.ShapeDtypeStruct((2, batch, DIM), jnp.float32))
    out_specs = (pl.BlockSpec((None, batch, NC_PAD), lambda m: (m, 0, 0)),
                 pl.BlockSpec((None, batch, DIM), lambda m: (m, 0, 0)))
    kernel = _make_vit_kernel(treedef, batch, len(shared))
    return pl.pallas_call(
        kernel,
        grid=(2,),                      # m=0 teacher, m=1 student
        in_specs=in_specs,
        out_specs=out_specs,
        out_shape=out_shape,
        compiler_params=pltpu.CompilerParams(dimension_semantics=("parallel",)),
    )(*shared, *leaves)


# ---------------- kernel 2: distill_mlp + cross-entropy + KL distillation loss ----------------

def _loss_kernel(logits_ref, dtl_ref, w_ref, b_ref, onehot_ref, cmask_ref, o_ref,
                 *, T, alpha, batch):
    valid = cmask_ref[...] > 0.5                          # (1, NC_PAD): real classes only
    teacher = logits_ref[0]                               # (B, NC_PAD)
    student = logits_ref[1]
    dtok = dtl_ref[1]                                     # (B, DIM)  (student distill tokens)
    distill = (jnp.dot(dtok, w_ref[...], preferred_element_type=jnp.float32) + b_ref[...])

    # cross_entropy(student_logits, labels), mean over batch
    stu = jnp.where(valid, student, NEG_INF)
    m = jnp.max(stu, axis=-1, keepdims=True)
    lse = jnp.log(jnp.sum(jnp.exp(stu - m), axis=-1, keepdims=True)) + m
    logp = stu - lse
    ce_rows = jnp.sum(jnp.where(valid, onehot_ref[...] * logp, 0.0), axis=-1, keepdims=True)
    ce = jnp.sum(ce_rows, axis=0, keepdims=True) * (-1.0 / batch)          # (1, 1)

    # KL( softmax(teacher/T) || softmax(distill/T) ), reduction='batchmean', * T^2
    t = jnp.where(valid, teacher * (1.0 / T), NEG_INF)
    tm = jnp.max(t, axis=-1, keepdims=True)
    te = jnp.exp(t - tm)
    ts = jnp.sum(te, axis=-1, keepdims=True)
    q = te / ts
    logq = (t - tm) - jnp.log(ts)
    d = jnp.where(valid, distill * (1.0 / T), NEG_INF)
    dm = jnp.max(d, axis=-1, keepdims=True)
    dlse = jnp.log(jnp.sum(jnp.exp(d - dm), axis=-1, keepdims=True)) + dm
    logpd = d - dlse
    kl_rows = jnp.sum(jnp.where(valid, q * (logq - logpd), 0.0), axis=-1, keepdims=True)
    kl = jnp.sum(kl_rows, axis=0, keepdims=True) * (T * T / batch)         # (1, 1)

    loss = ce * (1.0 - alpha) + kl * alpha
    o_ref[...] = loss * jnp.ones((1, NC_PAD), jnp.float32)                  # lane-dense store


def _vmem():
    return pl.BlockSpec(memory_space=pltpu.MemorySpace.VMEM)


def fused_distill_loss(logits_all, dtl_all, dmlp_w, dmlp_b, onehot, cmask, T, alpha, batch):
    out = pl.pallas_call(
        functools.partial(_loss_kernel, T=float(T), alpha=float(alpha), batch=float(batch)),
        out_shape=jax.ShapeDtypeStruct((1, NC_PAD), jnp.float32),
        in_specs=[_vmem()] * 6,
        out_specs=_vmem(),
    )(logits_all, dtl_all, dmlp_w, dmlp_b, onehot, cmask)
    return out[0, 0]


# ---------------- parameter init (deterministic, synthetic) ----------------

def init_vit(key):
    f32 = jnp.float32
    ks = jax.random.split(key, 9)

    def nrm(k, shape):
        return 0.02 * jax.random.normal(k, shape, f32)

    head_w = jnp.zeros((DIM, NC_PAD), f32).at[:, :NUM_CLASSES].set(
        nrm(ks[8], (DIM, NUM_CLASSES)))
    return dict(
        patch_ln1_g=jnp.ones((1, PATCH_DIM), f32), patch_ln1_b=jnp.zeros((1, PATCH_DIM), f32),
        patch_w=nrm(ks[0], (PATCH_DIM, DIM)), patch_b=jnp.zeros((1, DIM), f32),
        patch_ln2_g=jnp.ones((1, DIM), f32), patch_ln2_b=jnp.zeros((1, DIM), f32),
        pos=nrm(ks[1], (NUM_PATCHES, DIM)),
        ln1_g=jnp.ones((DEPTH, 1, DIM), f32), ln1_b=jnp.zeros((DEPTH, 1, DIM), f32),
        q_w=nrm(ks[2], (DEPTH, HEADS, DIM, DIM_HEAD)),
        k_w=nrm(ks[3], (DEPTH, HEADS, DIM, DIM_HEAD)),
        v_w=nrm(ks[4], (DEPTH, HEADS, DIM, DIM_HEAD)),
        out_w=nrm(ks[5], (DEPTH, HEADS * DIM_HEAD, DIM)), out_b=jnp.zeros((DEPTH, 1, DIM), f32),
        ln2_g=jnp.ones((DEPTH, 1, DIM), f32), ln2_b=jnp.zeros((DEPTH, 1, DIM), f32),
        ff1_w=nrm(ks[6], (DEPTH, DIM, MLP_DIM)), ff1_b=jnp.zeros((DEPTH, 1, MLP_DIM), f32),
        ff2_w=nrm(ks[7], (DEPTH, MLP_DIM, DIM)), ff2_b=jnp.zeros((DEPTH, 1, DIM), f32),
        final_ln_g=jnp.ones((1, DIM), f32), final_ln_b=jnp.zeros((1, DIM), f32),
        head_w=head_w, head_b=jnp.zeros((1, NC_PAD), f32),
    )


# ---------------- model forward (glue in JAX, all compute in the two Pallas kernels) ----------------

def patchify(img):
    # 'b c (h p1) (w p2) -> b (h w) (p1 p2 c)'
    B, C, H, W = img.shape
    h, w = H // PATCH, W // PATCH
    x = img.reshape(B, C, h, PATCH, w, PATCH)
    x = x.transpose(0, 2, 4, 3, 5, 1)          # b h w p1 p2 c
    return x.reshape(B, h * w, PATCH * PATCH * C)


def distill_wrapper_forward(teacher_params, student_params, distillation_token,
                            distill_mlp_params, img, labels,
                            temperature=None, alpha=None):
    alpha = ALPHA if alpha is None else alpha
    T = TEMPERATURE if temperature is None else temperature
    f32 = jnp.float32
    B = img.shape[0]
    R = B * SEQ

    # --- wrapper-side layout plumbing (no compute) ---
    patches = patchify(img)                                               # (B, N, PATCH_DIM)
    patches = jnp.concatenate(
        [patches, jnp.zeros((B, 1, PATCH_DIM), f32)], axis=1)             # distill-slot row = 0
    patches2d = patches.reshape(R, PATCH_DIM)

    pm = jnp.concatenate([jnp.ones((NUM_PATCHES, 1), f32),
                          jnp.zeros((1, 1), f32)], axis=0)                # (SEQ, 1)
    patch_mask = jnp.tile(pm, (B, 1))                                     # (R, 1)

    pool_row = jnp.concatenate([jnp.full((1, NUM_PATCHES), 1.0 / NUM_PATCHES, f32),
                                jnp.zeros((1, 1), f32)], axis=1)          # (1, SEQ)
    dist_row = jnp.concatenate([jnp.zeros((1, NUM_PATCHES), f32),
                                jnp.ones((1, 1), f32)], axis=1)           # (1, SEQ)
    eye_b = jnp.eye(B, dtype=f32)
    pool_mat = jnp.kron(eye_b, pool_row)                                  # (B, R)
    dist_mat = jnp.kron(eye_b, dist_row)                                  # (B, R)

    idx = jnp.arange(R)
    same_img = (idx[:, None] // SEQ) == (idx[None, :] // SEQ)
    base_bias = jnp.where(same_img, 0.0, NEG_INF).astype(f32)             # block-diag over batch
    distill_col = (idx % SEQ) == (SEQ - 1)
    teacher_bias = jnp.where(distill_col[None, :], NEG_INF, base_bias).astype(f32)
    student_bias = base_bias

    dt_row = distillation_token.reshape(1, DIM)

    def tok_inject(pos, last_row):
        return jnp.tile(jnp.concatenate([pos, last_row], axis=0), (B, 1))  # (R, DIM)

    teacher_full = dict(teacher_params,
                        attn_bias=teacher_bias,
                        tok_inject=tok_inject(teacher_params["pos"], jnp.zeros((1, DIM), f32)))
    student_full = dict(student_params,
                        attn_bias=student_bias,
                        tok_inject=tok_inject(student_params["pos"], dt_row))
    teacher_full.pop("pos")
    student_full.pop("pos")
    stacked = jax.tree_util.tree_map(lambda a, b: jnp.stack([a, b], axis=0),
                                     teacher_full, student_full)

    # TODO(synk): teacher is eval / no-grad in PyTorch; this script is forward-only so no
    # stop_gradient is required (pallas_call has no autodiff rule here anyway).
    logits_all, dtl_all = fused_dual_vit(patches2d, patch_mask, pool_mat, dist_mat, stacked, B)

    onehot = jax.nn.one_hot(labels, NUM_CLASSES, dtype=f32)
    onehot = jnp.pad(onehot, ((0, 0), (0, NC_PAD - NUM_CLASSES)))
    cmask = (jnp.arange(NC_PAD) < NUM_CLASSES).astype(f32).reshape(1, NC_PAD)

    loss = fused_distill_loss(logits_all, dtl_all,
                              distill_mlp_params["w"], distill_mlp_params["b"],
                              onehot, cmask, T, alpha, B)
    student_logits = logits_all[1, :, :NUM_CLASSES]
    return loss, student_logits


# ---------------- main ----------------

if __name__ == "__main__":
    key = jax.random.PRNGKey(0)
    k_img, k_teacher, k_student, k_tok, k_mlp = jax.random.split(key, 5)

    B = 2
    img = jax.random.normal(k_img, (B, CHANNELS, IMAGE, IMAGE), jnp.float32)
    labels = jnp.array([1, 7], dtype=jnp.int32)

    teacher_params = init_vit(k_teacher)
    student_params = init_vit(k_student)
    distillation_token = jax.random.normal(k_tok, (1, 1, DIM), jnp.float32)  # nn.Parameter(randn(1,1,dim))
    dmlp_w = jnp.zeros((DIM, NC_PAD), jnp.float32).at[:, :NUM_CLASSES].set(
        0.02 * jax.random.normal(k_mlp, (DIM, NUM_CLASSES), jnp.float32))
    distill_mlp_params = {"w": dmlp_w, "b": jnp.zeros((1, NC_PAD), jnp.float32)}

    fwd = jax.jit(distill_wrapper_forward)
    loss, student_logits = fwd(teacher_params, student_params, distillation_token,
                               distill_mlp_params, img, labels)

    jax.block_until_ready((loss, student_logits))
    assert student_logits.shape == (B, NUM_CLASSES)
    assert loss.shape == ()
    print("KERNEL_OK")
</pallas_src>

<mosaic_0001>
module attributes {stable_mosaic.version = 11 : i64} {
  func.func @_loss_kernel(%arg0: memref<2x2x128xf32, #tpu.memory_space<vmem>>, %arg1: memref<2x2x32xf32, #tpu.memory_space<vmem>>, %arg2: memref<32x128xf32, #tpu.memory_space<vmem>>, %arg3: memref<1x128xf32, #tpu.memory_space<vmem>>, %arg4: memref<2x128xf32, #tpu.memory_space<vmem>>, %arg5: memref<1x128xf32, #tpu.memory_space<vmem>>, %arg6: memref<1x128xf32, #tpu.memory_space<vmem>>) attributes {dimension_semantics = [], scalar_prefetch = 0 : i64, scratch_operands = 0 : i64, tpu.core_type = #tpu.core_type<tc>} {
    %c0 = arith.constant 0 : index
    %c0_0 = arith.constant 0 : index
    %0 = vector.load %arg5[%c0, %c0_0] : memref<1x128xf32, #tpu.memory_space<vmem>>, vector<1x128xf32>
    %cst = arith.constant 5.000000e-01 : f32
    %1 = vector.broadcast %cst : f32 to vector<1x128xf32>
    %2 = arith.cmpf ogt, %0, %1 : vector<1x128xf32>
    %c0_1 = arith.constant 0 : index
    %c0_2 = arith.constant 0 : index
    %c0_3 = arith.constant 0 : index
    %3 = vector.load %arg0[%c0_1, %c0_2, %c0_3] : memref<2x2x128xf32, #tpu.memory_space<vmem>>, vector<1x2x128xf32>
    %4 = vector.shape_cast %3 : vector<1x2x128xf32> to vector<2x128xf32>
    %c1 = arith.constant 1 : index
    %c0_4 = arith.constant 0 : index
    %c0_5 = arith.constant 0 : index
    %5 = vector.load %arg0[%c1, %c0_4, %c0_5] : memref<2x2x128xf32, #tpu.memory_space<vmem>>, vector<1x2x128xf32>
    %6 = vector.shape_cast %5 : vector<1x2x128xf32> to vector<2x128xf32>
    %c1_6 = arith.constant 1 : index
    %c0_7 = arith.constant 0 : index
    %c0_8 = arith.constant 0 : index
    %7 = vector.load %arg1[%c1_6, %c0_7, %c0_8] : memref<2x2x32xf32, #tpu.memory_space<vmem>>, vector<1x2x32xf32>
    %8 = vector.shape_cast %7 : vector<1x2x32xf32> to vector<2x32xf32>
    %c0_9 = arith.constant 0 : index
    %c0_10 = arith.constant 0 : index
    %9 = vector.load %arg2[%c0_9, %c0_10] : memref<32x128xf32, #tpu.memory_space<vmem>>, vector<32x128xf32>
    %cst_11 = arith.constant dense<0.000000e+00> : vector<2x128xf32>
    %10 = tpu.matmul %8, %9, %cst_11 {dimension_numbers = #tpu.dot_dimension_numbers<[1], [0], [0], [1], [0, 0, 1, 1], [], []>} : vector<2x32xf32>, vector<32x128xf32>, vector<2x128xf32> -> vector<2x128xf32>
    %c0_12 = arith.constant 0 : index
    %c0_13 = arith.constant 0 : index
    %11 = vector.load %arg3[%c0_12, %c0_13] : memref<1x128xf32, #tpu.memory_space<vmem>>, vector<1x128xf32>
    %12 = vector.broadcast %11 : vector<1x128xf32> to vector<2x128xf32>
    %13 = arith.addf %10, %12 : vector<2x128xf32>
    %cst_14 = arith.constant -1.000000e+30 : f32
    %14 = vector.shape_cast %2 : vector<1x128xi1> to vector<1x128xi1>
    %15 = vector.broadcast %14 : vector<1x128xi1> to vector<2x128xi1>
    %16 = vector.broadcast %cst_14 : f32 to vector<2x128xf32>
    %17 = arith.select %15, %6, %16 : vector<2x128xi1>, vector<2x128xf32>
    %cst_15 = arith.constant dense<0xFF800000> : vector<2xf32>
    %18 = vector.multi_reduction <maximumf>, %17, %cst_15 [1] : vector<2x128xf32> to vector<2xf32>
    %19 = vector.shape_cast %18 : vector<2xf32> to vector<2x1xf32>
    %20 = vector.broadcast %19 : vector<2x1xf32> to vector<2x128xf32>
    %21 = arith.subf %17, %20 : vector<2x128xf32>
    %22 = math.exp %21 : vector<2x128xf32>
    %cst_16 = arith.constant dense<0.000000e+00> : vector<2xf32>
    %23 = vector.multi_reduction <add>, %22, %cst_16 [1] : vector<2x128xf32> to vector<2xf32>
    %24 = vector.shape_cast %23 : vector<2xf32> to vector<2x1xf32>
    %25 = math.log %24 : vector<2x1xf32>
    %26 = arith.addf %25, %19 : vector<2x1xf32>
    %27 = vector.broadcast %26 : vector<2x1xf32> to vector<2x128xf32>
    %28 = arith.subf %17, %27 : vector<2x128xf32>
    %c0_17 = arith.constant 0 : index
    %c0_18 = arith.constant 0 : index
    %29 = vector.load %arg4[%c0_17, %c0_18] : memref<2x128xf32, #tpu.memory_space<vmem>>, vector<2x128xf32>
    %30 = arith.mulf %29, %28 : vector<2x128xf32>
    %cst_19 = arith.constant 0.000000e+00 : f32
    %31 = vector.shape_cast %2 : vector<1x128xi1> to vector<1x128xi1>
    %32 = vector.broadcast %31 : vector<1x128xi1> to vector<2x128xi1>
    %33 = vector.broadcast %cst_19 : f32 to vector<2x128xf32>
    %34 = arith.select %32, %30, %33 : vector<2x128xi1>, vector<2x128xf32>
    %cst_20 = arith.constant dense<0.000000e+00> : vector<2xf32>
    %35 = vector.multi_reduction <add>, %34, %cst_20 [1] : vector<2x128xf32> to vector<2xf32>
    %36 = vector.shape_cast %35 : vector<2xf32> to vector<2x1xf32>
    %cst_21 = arith.constant dense<0.000000e+00> : vector<1xf32>
    %37 = vector.multi_reduction <add>, %36, %cst_21 [0] : vector<2x1xf32> to vector<1xf32>
    %38 = vector.shape_cast %37 : vector<1xf32> to vector<1x1xf32>
    %cst_22 = arith.constant -5.000000e-01 : f32
    %39 = vector.broadcast %cst_22 : f32 to vector<1x1xf32>
    %40 = arith.mulf %38, %39 : vector<1x1xf32>
    %cst_23 = arith.constant 1.000000e+00 : f32
    %41 = vector.broadcast %cst_23 : f32 to vector<2x128xf32>
    %42 = arith.mulf %4, %41 : vector<2x128xf32>
    %cst_24 = arith.constant -1.000000e+30 : f32
    %43 = vector.shape_cast %2 : vector<1x128xi1> to vector<1x128xi1>
    %44 = vector.broadcast %43 : vector<1x128xi1> to vector<2x128xi1>
    %45 = vector.broadcast %cst_24 : f32 to vector<2x128xf32>
    %46 = arith.select %44, %42, %45 : vector<2x128xi1>, vector<2x128xf32>
    %cst_25 = arith.constant dense<0xFF800000> : vector<2xf32>
    %47 = vector.multi_reduction <maximumf>, %46, %cst_25 [1] : vector<2x128xf32> to vector<2xf32>
    %48 = vector.shape_cast %47 : vector<2xf32> to vector<2x1xf32>
    %49 = vector.broadcast %48 : vector<2x1xf32> to vector<2x128xf32>
    %50 = arith.subf %46, %49 : vector<2x128xf32>
    %51 = math.exp %50 : vector<2x128xf32>
    %cst_26 = arith.constant dense<0.000000e+00> : vector<2xf32>
    %52 = vector.multi_reduction <add>, %51, %cst_26 [1] : vector<2x128xf32> to vector<2xf32>
    %53 = vector.shape_cast %52 : vector<2xf32> to vector<2x1xf32>
    %54 = vector.broadcast %53 : vector<2x1xf32> to vector<2x128xf32>
    %55 = arith.divf %51, %54 : vector<2x128xf32>
    %56 = vector.broadcast %48 : vector<2x1xf32> to vector<2x128xf32>
    %57 = arith.subf %46, %56 : vector<2x128xf32>
    %58 = math.log %53 : vector<2x1xf32>
    %59 = vector.broadcast %58 : vector<2x1xf32> to vector<2x128xf32>
    %60 = arith.subf %57, %59 : vector<2x128xf32>
    %cst_27 = arith.constant 1.000000e+00 : f32
    %61 = vector.broadcast %cst_27 : f32 to vector<2x128xf32>
    %62 = arith.mulf %13, %61 : vector<2x128xf32>
    %cst_28 = arith.constant -1.000000e+30 : f32
    %63 = vector.shape_cast %2 : vector<1x128xi1> to vector<1x128xi1>
    %64 = vector.broadcast %63 : vector<1x128xi1> to vector<2x128xi1>
    %65 = vector.broadcast %cst_28 : f32 to vector<2x128xf32>
    %66 = arith.select %64, %62, %65 : vector<2x128xi1>, vector<2x128xf32>
    %cst_29 = arith.constant dense<0xFF800000> : vector<2xf32>
    %67 = vector.multi_reduction <maximumf>, %66, %cst_29 [1] : vector<2x128xf32> to vector<2xf32>
    %68 = vector.shape_cast %67 : vector<2xf32> to vector<2x1xf32>
    %69 = vector.broadcast %68 : vector<2x1xf32> to vector<2x128xf32>
    %70 = arith.subf %66, %69 : vector<2x128xf32>
    %71 = math.exp %70 : vector<2x128xf32>
    %cst_30 = arith.constant dense<0.000000e+00> : vector<2xf32>
    %72 = vector.multi_reduction <add>, %71, %cst_30 [1] : vector<2x128xf32> to vector<2xf32>
    %73 = vector.shape_cast %72 : vector<2xf32> to vector<2x1xf32>
    %74 = math.log %73 : vector<2x1xf32>
    %75 = arith.addf %74, %68 : vector<2x1xf32>
    %76 = vector.broadcast %75 : vector<2x1xf32> to vector<2x128xf32>
    %77 = arith.subf %66, %76 : vector<2x128xf32>
    %78 = arith.subf %60, %77 : vector<2x128xf32>
    %79 = arith.mulf %55, %78 : vector<2x128xf32>
    %cst_31 = arith.constant 0.000000e+00 : f32
    %80 = vector.shape_cast %2 : vector<1x128xi1> to vector<1x128xi1>
    %81 = vector.broadcast %80 : vector<1x128xi1> to vector<2x128xi1>
    %82 = vector.broadcast %cst_31 : f32 to vector<2x128xf32>
    %83 = arith.select %81, %79, %82 : vector<2x128xi1>, vector<2x128xf32>
    %cst_32 = arith.constant dense<0.000000e+00> : vector<2xf32>
    %84 = vector.multi_reduction <add>, %83, %cst_32 [1] : vector<2x128xf32> to vector<2xf32>
    %85 = vector.shape_cast %84 : vector<2xf32> to vector<2x1xf32>
    %cst_33 = arith.constant dense<0.000000e+00> : vector<1xf32>
    %86 = vector.multi_reduction <add>, %85, %cst_33 [0] : vector<2x1xf32> to vector<1xf32>
    %87 = vector.shape_cast %86 : vector<1xf32> to vector<1x1xf32>
    %cst_34 = arith.constant 5.000000e-01 : f32
    %88 = vector.broadcast %cst_34 : f32 to vector<1x1xf32>
    %89 = arith.mulf %87, %88 : vector<1x1xf32>
    %cst_35 = arith.constant 5.000000e-01 : f32
    %90 = vector.broadcast %cst_35 : f32 to vector<1x1xf32>
    %91 = arith.mulf %40, %90 : vector<1x1xf32>
    %cst_36 = arith.constant 5.000000e-01 : f32
    %92 = vector.broadcast %cst_36 : f32 to vector<1x1xf32>
    %93 = arith.mulf %89, %92 : vector<1x1xf32>
    %94 = arith.addf %91, %93 : vector<1x1xf32>
    %cst_37 = arith.constant 1.000000e+00 : f32
    %95 = vector.broadcast %cst_37 : f32 to vector<1x128xf32>
    %96 = vector.broadcast %94 : vector<1x1xf32> to vector<1x128xf32>
    %97 = arith.mulf %96, %95 : vector<1x128xf32>
    %c0_38 = arith.constant 0 : index
    %c0_39 = arith.constant 0 : index
    %98 = vector.load %arg6[%c0_38, %c0_39] : memref<1x128xf32, #tpu.memory_space<vmem>>, vector<1x128xf32>
    tpu.vector_store %arg6[%c0_38, %c0_39], %97 {strides = array<i32>} : memref<1x128xf32, #tpu.memory_space<vmem>>, vector<1x128xf32>,
    return
  }
}

module attributes {stable_mosaic.version = 11 : i64} {
  func.func @kernel(%arg0: i32, %arg1: memref<10x192xf32, #tpu.memory_space<vmem>>, %arg2: memref<10x1xf32, #tpu.memory_space<vmem>>, %arg3: memref<2x10xf32, #tpu.memory_space<vmem>>, %arg4: memref<2x10xf32, #tpu.memory_space<vmem>>, %arg5: memref<1x10x10xf32, #tpu.memory_space<vmem>>, %arg6: memref<1x2x1x64xf32, #tpu.memory_space<vmem>>, %arg7: memref<1x2x32x64xf32, #tpu.memory_space<vmem>>, %arg8: memref<1x2x1x32xf32, #tpu.memory_space<vmem>>, %arg9: memref<1x2x64x32xf32, #tpu.memory_space<vmem>>, %arg10: memref<1x1x32xf32, #tpu.memory_space<vmem>>, %arg11: memref<1x1x32xf32, #tpu.memory_space<vmem>>, %arg12: memref<1x1x128xf32, #tpu.memory_space<vmem>>, %arg13: memref<1x32x128xf32, #tpu.memory_space<vmem>>, %arg14: memref<1x2x4x32x8xf32, #tpu.memory_space<vmem>>, %arg15: memref<1x2x1x32xf32, #tpu.memory_space<vmem>>, %arg16: memref<1x2x1x32xf32, #tpu.memory_space<vmem>>, %arg17: memref<1x2x1x32xf32, #tpu.memory_space<vmem>>, %arg18: memref<1x2x1x32xf32, #tpu.memory_space<vmem>>, %arg19: memref<1x2x1x32xf32, #tpu.memory_space<vmem>>, %arg20: memref<1x2x32x32xf32, #tpu.memory_space<vmem>>, %arg21: memref<1x1x32xf32, #tpu.memory_space<vmem>>, %arg22: memref<1x1x192xf32, #tpu.memory_space<vmem>>, %arg23: memref<1x1x192xf32, #tpu.memory_space<vmem>>, %arg24: memref<1x1x32xf32, #tpu.memory_space<vmem>>, %arg25: memref<1x1x32xf32, #tpu.memory_space<vmem>>, %arg26: memref<1x192x32xf32, #tpu.memory_space<vmem>>, %arg27: memref<1x2x4x32x8xf32, #tpu.memory_space<vmem>>, %arg28: memref<1x10x32xf32, #tpu.memory_space<vmem>>, %arg29: memref<1x2x4x32x8xf32, #tpu.memory_space<vmem>>, %arg30: memref<1x2x128xf32, #tpu.memory_space<vmem>>, %arg31: memref<1x2x32xf32, #tpu.memory_space<vmem>>) attributes {dimension_semantics = [#tpu.dimension_semantics<parallel>], iteration_bounds = array<i64: 2>, scalar_prefetch = 0 : i64, scratch_operands = 0 : i64, tpu.core_type = #tpu.core_type<tc>, window_params = [{pipeline_mode = #tpu.pipeline_mode<synchronous>, transform_indices = @transform_0, window_bounds = array<i64: 10, 192>}, {pipeline_mode = #tpu.pipeline_mode<synchronous>, transform_indices = @transform_1, window_bounds = array<i64: 10, 1>}, {pipeline_mode = #tpu.pipeline_mode<synchronous>, transform_indices = @transform_2, window_bounds = array<i64: 2, 10>}, {pipeline_mode = #tpu.pipeline_mode<synchronous>, transform_indices = @transform_3, window_bounds = array<i64: 2, 10>}, {transform_indices = @transform_4, window_bounds = array<i64: 1, 10, 10>}, {transform_indices = @transform_5, window_bounds = array<i64: 1, 2, 1, 64>}, {transform_indices = @transform_6, window_bounds = array<i64: 1, 2, 32, 64>}, {transform_indices = @transform_7, window_bounds = array<i64: 1, 2, 1, 32>}, {transform_indices = @transform_8, window_bounds = array<i64: 1, 2, 64, 32>}, {transform_indices = @transform_9, window_bounds = array<i64: 1, 1, 32>}, {transform_indices = @transform_10, window_bounds = array<i64: 1, 1, 32>}, {transform_indices = @transform_11, window_bounds = array<i64: 1, 1, 128>}, {transform_indices = @transform_12, window_bounds = array<i64: 1, 32, 128>}, {transform_indices = @transform_13, window_bounds = array<i64: 1, 2, 4, 32, 8>}, {transform_indices = @transform_14, window_bounds = array<i64: 1, 2, 1, 32>}, {transform_indices = @transform_15, window_bounds = array<i64: 1, 2, 1, 32>}, {transform_indices = @transform_16, window_bounds = array<i64: 1, 2, 1, 32>}, {transform_indices = @transform_17, window_bounds = array<i64: 1, 2, 1, 32>}, {transform_indices = @transform_18, window_bounds = array<i64: 1, 2, 1, 32>}, {transform_indices = @transform_19, window_bounds = array<i64: 1, 2, 32, 32>}, {transform_indices = @transform_20, window_bounds = array<i64: 1, 1, 32>}, {transform_indices = @transform_21, window_bounds = array<i64: 1, 1, 192>}, {transform_indices = @transform_22, window_bounds = array<i64: 1, 1, 192>}, {transform_indices = @transform_23, window_bounds = array<i64: 1, 1, 32>}, {transform_indices = @transform_24, window_bounds = array<i64: 1, 1, 32>}, {transform_indices = @transform_25, window_bounds = array<i64: 1, 192, 32>}, {transform_indices = @transform_26, window_bounds = array<i64: 1, 2, 4, 32, 8>}, {transform_indices = @transform_27, window_bounds = array<i64: 1, 10, 32>}, {transform_indices = @transform_28, window_bounds = array<i64: 1, 2, 4, 32, 8>}, {transform_indices = @transform_29, window_bounds = array<i64: 1, 2, 128>}, {transform_indices = @transform_30, window_bounds = array<i64: 1, 2, 32>}]} {
    %c0 = arith.constant 0 : index
    %c0_0 = arith.constant 0 : index
    %0 = vector.load %arg1[%c0, %c0_0] : memref<10x192xf32, #tpu.memory_space<vmem>>, vector<10x192xf32>
    %c0_1 = arith.constant 0 : index
    %c0_2 = arith.constant 0 : index
    %c0_3 = arith.constant 0 : index
    %1 = vector.load %arg23[%c0_1, %c0_2, %c0_3] : memref<1x1x192xf32, #tpu.memory_space<vmem>>, vector<1x1x192xf32>
    %2 = vector.shape_cast %1 : vector<1x1x192xf32> to vector<1x192xf32>
    %c0_4 = arith.constant 0 : index
    %c0_5 = arith.constant 0 : index
    %c0_6 = arith.constant 0 : index
    %3 = vector.load %arg22[%c0_4, %c0_5, %c0_6] : memref<1x1x192xf32, #tpu.memory_space<vmem>>, vector<1x1x192xf32>
    %4 = vector.shape_cast %3 : vector<1x1x192xf32> to vector<1x192xf32>
    %cst = arith.constant dense<0.000000e+00> : vector<10xf32>
    %5 = vector.multi_reduction <add>, %0, %cst [1] : vector<10x192xf32> to vector<10xf32>
    %6 = vector.shape_cast %5 : vector<10xf32> to vector<10x1xf32>
    %cst_7 = arith.constant 1.920000e+02 : f32
    %7 = vector.broadcast %cst_7 : f32 to vector<10x1xf32>
    %8 = arith.divf %6, %7 : vector<10x1xf32>
    %9 = vector.broadcast %8 : vector<10x1xf32> to vector<10x192xf32>
    %10 = arith.subf %0, %9 : vector<10x192xf32>
    %11 = arith.mulf %10, %10 : vector<10x192xf32>
    %cst_8 = arith.constant dense<0.000000e+00> : vector<10xf32>
    %12 = vector.multi_reduction <add>, %11, %cst_8 [1] : vector<10x192xf32> to vector<10xf32>
    %13 = vector.shape_cast %12 : vector<10xf32> to vector<10x1xf32>
    %cst_9 = arith.constant 1.920000e+02 : f32
    %14 = vector.broadcast %cst_9 : f32 to vector<10x1xf32>
    %15 = arith.divf %13, %14 : vector<10x1xf32>
    %16 = vector.broadcast %8 : vector<10x1xf32> to vector<10x192xf32>
    %17 = arith.subf %0, %16 : vector<10x192xf32>
    %cst_10 = arith.constant 9.99999974E-6 : f32
    %18 = vector.broadcast %cst_10 : f32 to vector<10x1xf32>
    %19 = arith.addf %15, %18 : vector<10x1xf32>
    %20 = math.rsqrt %19 : vector<10x1xf32>
    %21 = vector.broadcast %20 : vector<10x1xf32> to vector<10x192xf32>
    %22 = arith.mulf %17, %21 : vector<10x192xf32>
    %23 = vector.broadcast %2 : vector<1x192xf32> to vector<10x192xf32>
    %24 = arith.mulf %22, %23 : vector<10x192xf32>
    %25 = vector.broadcast %4 : vector<1x192xf32> to vector<10x192xf32>
    %26 = arith.addf %24, %25 : vector<10x192xf32>
    %c0_11 = arith.constant 0 : index
    %c0_12 = arith.constant 0 : index
    %c0_13 = arith.constant 0 : index
    %27 = vector.load %arg26[%c0_11, %c0_12, %c0_13] : memref<1x192x32xf32, #tpu.memory_space<vmem>>, vector<1x192x32xf32>
    %28 = vector.shape_cast %27 : vector<1x192x32xf32> to vector<192x32xf32>
    %cst_14 = arith.constant dense<0.000000e+00> : vector<10x32xf32>
    %29 = tpu.matmul %26, %28, %cst_14 {dimension_numbers = #tpu.dot_dimension_numbers<[1], [0], [0], [1], [0, 0, 1, 1], [], []>} : vector<10x192xf32>, vector<192x32xf32>, vector<10x32xf32> -> vector<10x32xf32>
    %c0_15 = arith.constant 0 : index
    %c0_16 = arith.constant 0 : index
    %c0_17 = arith.constant 0 : index
    %30 = vector.load %arg21[%c0_15, %c0_16, %c0_17] : memref<1x1x32xf32, #tpu.memory_space<vmem>>, vector<1x1x32xf32>
    %31 = vector.shape_cast %30 : vector<1x1x32xf32> to vector<1x32xf32>
    %32 = vector.broadcast %31 : vector<1x32xf32> to vector<10x32xf32>
    %33 = arith.addf %29, %32 : vector<10x32xf32>
    %c0_18 = arith.constant 0 : index
    %c0_19 = arith.constant 0 : index
    %c0_20 = arith.constant 0 : index
    %34 = vector.load %arg25[%c0_18, %c0_19, %c0_20] : memref<1x1x32xf32, #tpu.memory_space<vmem>>, vector<1x1x32xf32>
    %35 = vector.shape_cast %34 : vector<1x1x32xf32> to vector<1x32xf32>
    %c0_21 = arith.constant 0 : index
    %c0_22 = arith.constant 0 : index
    %c0_23 = arith.constant 0 : index
    %36 = vector.load %arg24[%c0_21, %c0_22, %c0_23] : memref<1x1x32xf32, #tpu.memory_space<vmem>>, vector<1x1x32xf32>
    %37 = vector.shape_cast %36 : vector<1x1x32xf32> to vector<1x32xf32>
    %cst_24 = arith.constant dense<0.000000e+00> : vector<10xf32>
    %38 = vector.multi_reduction <add>, %33, %cst_24 [1] : vector<10x32xf32> to vector<10xf32>
    %39 = vector.shape_cast %38 : vector<10xf32> to vector<10x1xf32>
    %cst_25 = arith.constant 3.200000e+01 : f32
    %40 = vector.broadcast %cst_25 : f32 to vector<10x1xf32>
    %41 = arith.divf %39, %40 : vector<10x1xf32>
    %42 = vector.broadcast %41 : vector<10x1xf32> to vector<10x32xf32>
    %43 = arith.subf %33, %42 : vector<10x32xf32>
    %44 = arith.mulf %43, %43 : vector<10x32xf32>
    %cst_26 = arith.constant dense<0.000000e+00> : vector<10xf32>
    %45 = vector.multi_reduction <add>, %44, %cst_26 [1] : vector<10x32xf32> to vector<10xf32>
    %46 = vector.shape_cast %45 : vector<10xf32> to vector<10x1xf32>
    %cst_27 = arith.constant 3.200000e+01 : f32
    %47 = vector.broadcast %cst_27 : f32 to vector<10x1xf32>
    %48 = arith.divf %46, %47 : vector<10x1xf32>
    %49 = vector.broadcast %41 : vector<10x1xf32> to vector<10x32xf32>
    %50 = arith.subf %33, %49 : vector<10x32xf32>
    %cst_28 = arith.constant 9.99999974E-6 : f32
    %51 = vector.broadcast %cst_28 : f32 to vector<10x1xf32>
    %52 = arith.addf %48, %51 : vector<10x1xf32>
    %53 = math.rsqrt %52 : vector<10x1xf32>
    %54 = vector.broadcast %53 : vector<10x1xf32> to vector<10x32xf32>
    %55 = arith.mulf %50, %54 : vector<10x32xf32>
    %56 = vector.broadcast %35 : vector<1x32xf32> to vector<10x32xf32>
    %57 = arith.mulf %55, %56 : vector<10x32xf32>
    %58 = vector.broadcast %37 : vector<1x32xf32> to vector<10x32xf32>
    %59 = arith.addf %57, %58 : vector<10x32xf32>
    %c0_29 = arith.constant 0 : index
    %c0_30 = arith.constant 0 : index
    %60 = vector.load %arg2[%c0_29, %c0_30] : memref<10x1xf32, #tpu.memory_space<vmem>>, vector<10x1xf32>
    %61 = vector.broadcast %60 : vector<10x1xf32> to vector<10x32xf32>
    %62 = arith.mulf %59, %61 : vector<10x32xf32>
    %c0_31 = arith.constant 0 : index
    %c0_32 = arith.constant 0 : index
    %c0_33 = arith.constant 0 : index
    %63 = vector.load %arg28[%c0_31, %c0_32, %c0_33] : memref<1x10x32xf32, #tpu.memory_space<vmem>>, vector<1x10x32xf32>
    %64 = vector.shape_cast %63 : vector<1x10x32xf32> to vector<10x32xf32>
    %65 = arith.addf %62, %64 : vector<10x32xf32>
    %c0_34 = arith.constant 0 : index
    %c0_35 = arith.constant 0 : index
    %c0_36 = arith.constant 0 : index
    %66 = vector.load %arg5[%c0_34, %c0_35, %c0_36] : memref<1x10x10xf32, #tpu.memory_space<vmem>>, vector<1x10x10xf32>
    %67 = vector.shape_cast %66 : vector<1x10x10xf32> to vector<10x10xf32>
    %c0_37 = arith.constant 0 : index
    %c0_38 = arith.constant 0 : index
    %c0_39 = arith.constant 0 : index
    %c0_40 = arith.constant 0 : index
    %68 = vector.load %arg16[%c0_37, %c0_38, %c0_39, %c0_40] : memref<1x2x1x32xf32, #tpu.memory_space<vmem>>, vector<1x1x1x32xf32>
    %69 = vector.shape_cast %68 : vector<1x1x1x32xf32> to vector<1x32xf32>
    %c0_41 = arith.constant 0 : index
    %c0_42 = arith.constant 0 : index
    %c0_43 = arith.constant 0 : index
    %c0_44 = arith.constant 0 : index
    %70 = vector.load %arg15[%c0_41, %c0_42, %c0_43, %c0_44] : memref<1x2x1x32xf32, #tpu.memory_space<vmem>>, vector<1x1x1x32xf32>
    %71 = vector.shape_cast %70 : vector<1x1x1x32xf32> to vector<1x32xf32>
    %cst_45 = arith.constant dense<0.000000e+00> : vector<10xf32>
    %72 = vector.multi_reduction <add>, %65, %cst_45 [1] : vector<10x32xf32> to vector<10xf32>
    %73 = vector.shape_cast %72 : vector<10xf32> to vector<10x1xf32>
    %cst_46 = arith.constant 3.200000e+01 : f32
    %74 = vector.broadcast %cst_46 : f32 to vector<10x1xf32>
    %75 = arith.divf %73, %74 : vector<10x1xf32>
    %76 = vector.broadcast %75 : vector<10x1xf32> to vector<10x32xf32>
    %77 = arith.subf %65, %76 : vector<10x32xf32>
    %78 = arith.mulf %77, %77 : vector<10x32xf32>
    %cst_47 = arith.constant dense<0.000000e+00> : vector<10xf32>
    %79 = vector.multi_reduction <add>, %78, %cst_47 [1] : vector<10x32xf32> to vector<10xf32>
    %80 = vector.shape_cast %79 : vector<10xf32> to vector<10x1xf32>
    %cst_48 = arith.constant 3.200000e+01 : f32
    %81 = vector.broadcast %cst_48 : f32 to vector<10x1xf32>
    %82 = arith.divf %80, %81 : vector<10x1xf32>
    %83 = vector.broadcast %75 : vector<10x1xf32> to vector<10x32xf32>
    %84 = arith.subf %65, %83 : vector<10x32xf32>
    %cst_49 = arith.constant 9.99999974E-6 : f32
    %85 = vector.broadcast %cst_49 : f32 to vector<10x1xf32>
    %86 = arith.addf %82, %85 : vector<10x1xf32>
    %87 = math.rsqrt %86 : vector<10x1xf32>
    %88 = vector.broadcast %87 : vector<10x1xf32> to vector<10x32xf32>
    %89 = arith.mulf %84, %88 : vector<10x32xf32>
    %90 = vector.broadcast %69 : vector<1x32xf32> to vector<10x32xf32>
    %91 = arith.mulf %89, %90 : vector<10x32xf32>
    %92 = vector.broadcast %71 : vector<1x32xf32> to vector<10x32xf32>
    %93 = arith.addf %91, %92 : vector<10x32xf32>
    %cst_50 = arith.constant 0.000000e+00 : f32
    %94 = vector.broadcast %cst_50 : f32 to vector<10x32xf32>
    %c0_51 = arith.constant 0 : index
    %c0_52 = arith.constant 0 : index
    %c0_53 = arith.constant 0 : index
    %c0_54 = arith.constant 0 : index
    %c0_55 = arith.constant 0 : index
    %95 = vector.load %arg27[%c0_51, %c0_52, %c0_53, %c0_54, %c0_55] : memref<1x2x4x32x8xf32, #tpu.memory_space<vmem>>, vector<1x1x1x32x8xf32>
    %96 = vector.shape_cast %95 : vector<1x1x1x32x8xf32> to vector<32x8xf32>
    %cst_56 = arith.constant dense<0.000000e+00> : vector<10x8xf32>
    %97 = tpu.matmul %93, %96, %cst_56 {dimension_numbers = #tpu.dot_dimension_numbers<[1], [0], [0], [1], [0, 0, 1, 1], [], []>} : vector<10x32xf32>, vector<32x8xf32>, vector<10x8xf32> -> vector<10x8xf32>
    %c0_57 = arith.constant 0 : index
    %c0_58 = arith.constant 0 : index
    %c0_59 = arith.constant 0 : index
    %c0_60 = arith.constant 0 : index
    %c0_61 = arith.constant 0 : index
    %98 = vector.load %arg14[%c0_57, %c0_58, %c0_59, %c0_60, %c0_61] : memref<1x2x4x32x8xf32, #tpu.memory_space<vmem>>, vector<1x1x1x32x8xf32>
    %99 = vector.shape_cast %98 : vector<1x1x1x32x8xf32> to vector<32x8xf32>
    %cst_62 = arith.constant dense<0.000000e+00> : vector<10x8xf32>
    %100 = tpu.matmul %93, %99, %cst_62 {dimension_numbers = #tpu.dot_dimension_numbers<[1], [0], [0], [1], [0, 0, 1, 1], [], []>} : vector<10x32xf32>, vector<32x8xf32>, vector<10x8xf32> -> vector<10x8xf32>
    %c0_63 = arith.constant 0 : index
    %c0_64 = arith.constant 0 : index
    %c0_65 = arith.constant 0 : index
    %c0_66 = arith.constant 0 : index
    %c0_67 = arith.constant 0 : index
    %101 = vector.load %arg29[%c0_63, %c0_64, %c0_65, %c0_66, %c0_67] : memref<1x2x4x32x8xf32, #tpu.memory_space<vmem>>, vector<1x1x1x32x8xf32>
    %102 = vector.shape_cast %101 : vector<1x1x1x32x8xf32> to vector<32x8xf32>
    %cst_68 = arith.constant dense<0.000000e+00> : vector<10x8xf32>
    %103 = tpu.matmul %93, %102, %cst_68 {dimension_numbers = #tpu.dot_dimension_numbers<[1], [0], [0], [1], [0, 0, 1, 1], [], []>} : vector<10x32xf32>, vector<32x8xf32>, vector<10x8xf32> -> vector<10x8xf32>
    %cst_69 = arith.constant dense<0.000000e+00> : vector<10x10xf32>
    %104 = tpu.matmul %97, %100, %cst_69 {dimension_numbers = #tpu.dot_dimension_numbers<[1], [1], [0], [0], [0, 0, 1, 0], [], []>} : vector<10x8xf32>, vector<10x8xf32>, vector<10x10xf32> -> vector<10x10xf32>
    %cst_70 = arith.constant 0.353553385 : f32
    %105 = vector.broadcast %cst_70 : f32 to vector<10x10xf32>
    %106 = arith.mulf %104, %105 : vector<10x10xf32>
    %107 = arith.addf %106, %67 : vector<10x10xf32>
    %cst_71 = arith.constant dense<0xFF800000> : vector<10xf32>
    %108 = vector.multi_reduction <maximumf>, %107, %cst_71 [1] : vector<10x10xf32> to vector<10xf32>
    %109 = vector.shape_cast %108 : vector<10xf32> to vector<10x1xf32>
    %110 = vector.broadcast %109 : vector<10x1xf32> to vector<10x10xf32>
    %111 = arith.subf %107, %110 : vector<10x10xf32>
    %112 = math.exp %111 : vector<10x10xf32>
    %cst_72 = arith.constant dense<0.000000e+00> : vector<10xf32>
    %113 = vector.multi_reduction <add>, %112, %cst_72 [1] : vector<10x10xf32> to vector<10xf32>
    %114 = vector.shape_cast %113 : vector<10xf32> to vector<10x1xf32>
    %115 = vector.broadcast %114 : vector<10x1xf32> to vector<10x10xf32>
    %116 = arith.divf %112, %115 : vector<10x10xf32>
    %cst_73 = arith.constant dense<0.000000e+00> : vector<10x8xf32>
    %117 = tpu.matmul %116, %103, %cst_73 {dimension_numbers = #tpu.dot_dimension_numbers<[1], [0], [0], [1], [0, 0, 1, 1], [], []>} : vector<10x10xf32>, vector<10x8xf32>, vector<10x8xf32> -> vector<10x8xf32>
    %c0_74 = arith.constant 0 : index
    %c0_75 = arith.constant 0 : index
    %c0_76 = arith.constant 0 : index
    %c0_77 = arith.constant 0 : index
    %118 = vector.load %arg20[%c0_74, %c0_75, %c0_76, %c0_77] : memref<1x2x32x32xf32, #tpu.memory_space<vmem>>, vector<1x1x8x32xf32>
    %119 = vector.shape_cast %118 : vector<1x1x8x32xf32> to vector<8x32xf32>
    %cst_78 = arith.constant dense<0.000000e+00> : vector<10x32xf32>
    %120 = tpu.matmul %117, %119, %cst_78 {dimension_numbers = #tpu.dot_dimension_numbers<[1], [0], [0], [1], [0, 0, 1, 1], [], []>} : vector<10x8xf32>, vector<8x32xf32>, vector<10x32xf32> -> vector<10x32xf32>
    %121 = arith.addf %94, %120 : vector<10x32xf32>
    %c0_79 = arith.constant 0 : index
    %c0_80 = arith.constant 0 : index
    %c1 = arith.constant 1 : index
    %c0_81 = arith.constant 0 : index
    %c0_82 = arith.constant 0 : index
    %122 = vector.load %arg27[%c0_79, %c0_80, %c1, %c0_81, %c0_82] : memref<1x2x4x32x8xf32, #tpu.memory_space<vmem>>, vector<1x1x1x32x8xf32>
    %123 = vector.shape_cast %122 : vector<1x1x1x32x8xf32> to vector<32x8xf32>
    %cst_83 = arith.constant dense<0.000000e+00> : vector<10x8xf32>
    %124 = tpu.matmul %93, %123, %cst_83 {dimension_numbers = #tpu.dot_dimension_numbers<[1], [0], [0], [1], [0, 0, 1, 1], [], []>} : vector<10x32xf32>, vector<32x8xf32>, vector<10x8xf32> -> vector<10x8xf32>
    %c0_84 = arith.constant 0 : index
    %c0_85 = arith.constant 0 : index
    %c1_86 = arith.constant 1 : index
    %c0_87 = arith.constant 0 : index
    %c0_88 = arith.constant 0 : index
    %125 = vector.load %arg14[%c0_84, %c0_85, %c1_86, %c0_87, %c0_88] : memref<1x2x4x32x8xf32, #tpu.memory_space<vmem>>, vector<1x1x1x32x8xf32>
    %126 = vector.shape_cast %125 : vector<1x1x1x32x8xf32> to vector<32x8xf32>
    %cst_89 = arith.constant dense<0.000000e+00> : vector<10x8xf32>
    %127 = tpu.matmul %93, %126, %cst_89 {dimension_numbers = #tpu.dot_dimension_numbers<[1], [0], [0], [1], [0, 0, 1, 1], [], []>} : vector<10x32xf32>, vector<32x8xf32>, vector<10x8xf32> -> vector<10x8xf32>
    %c0_90 = arith.constant 0 : index
    %c0_91 = arith.constant 0 : index
    %c1_92 = arith.constant 1 : index
    %c0_93 = arith.constant 0 : index
    %c0_94 = arith.constant 0 : index
    %128 = vector.load %arg29[%c0_90, %c0_91, %c1_92, %c0_93, %c0_94] : memref<1x2x4x32x8xf32, #tpu.memory_space<vmem>>, vector<1x1x1x32x8xf32>
    %129 = vector.shape_cast %128 : vector<1x1x1x32x8xf32> to vector<32x8xf32>
    %cst_95 = arith.constant dense<0.000000e+00> : vector<10x8xf32>
    %130 = tpu.matmul %93, %129, %cst_95 {dimension_numbers = #tpu.dot_dimension_numbers<[1], [0], [0], [1], [0, 0, 1, 1], [], []>} : vector<10x32xf32>, vector<32x8xf32>, vector<10x8xf32> -> vector<10x8xf32>
    %cst_96 = arith.constant dense<0.000000e+00> : vector<10x10xf32>
    %131 = tpu.matmul %124, %127, %cst_96 {dimension_numbers = #tpu.dot_dimension_numbers<[1], [1], [0], [0], [0, 0, 1, 0], [], []>} : vector<10x8xf32>, vector<10x8xf32>, vector<10x10xf32> -> vector<10x10xf32>
    %cst_97 = arith.constant 0.353553385 : f32
    %132 = vector.broadcast %cst_97 : f32 to vector<10x10xf32>
    %133 = arith.mulf %131, %132 : vector<10x10xf32>
    %134 = arith.addf %133, %67 : vector<10x10xf32>
    %cst_98 = arith.constant dense<0xFF800000> : vector<10xf32>
    %135 = vector.multi_reduction <maximumf>, %134, %cst_98 [1] : vector<10x10xf32> to vector<10xf32>
    %136 = vector.shape_cast %135 : vector<10xf32> to vector<10x1xf32>
    %137 = vector.broadcast %136 : vector<10x1xf32> to vector<10x10xf32>
    %138 = arith.subf %134, %137 : vector<10x10xf32>
    %139 = math.exp %138 : vector<10x10xf32>
    %cst_99 = arith.constant dense<0.000000e+00> : vector<10xf32>
    %140 = vector.multi_reduction <add>, %139, %cst_99 [1] : vector<10x10xf32> to vector<10xf32>
    %141 = vector.shape_cast %140 : vector<10xf32> to vector<10x1xf32>
    %142 = vector.broadcast %141 : vector<10x1xf32> to vector<10x10xf32>
    %143 = arith.divf %139, %142 : vector<10x10xf32>
    %cst_100 = arith.constant dense<0.000000e+00> : vector<10x8xf32>
    %144 = tpu.matmul %143, %130, %cst_100 {dimension_numbers = #tpu.dot_dimension_numbers<[1], [0], [0], [1], [0, 0, 1, 1], [], []>} : vector<10x10xf32>, vector<10x8xf32>, vector<10x8xf32> -> vector<10x8xf32>
    %c0_101 = arith.constant 0 : index
    %c0_102 = arith.constant 0 : index
    %c8 = arith.constant 8 : index
    %c0_103 = arith.constant 0 : index
    %145 = vector.load %arg20[%c0_101, %c0_102, %c8, %c0_103] : memref<1x2x32x32xf32, #tpu.memory_space<vmem>>, vector<1x1x8x32xf32>
    %146 = vector.shape_cast %145 : vector<1x1x8x32xf32> to vector<8x32xf32>
    %cst_104 = arith.constant dense<0.000000e+00> : vector<10x32xf32>
    %147 = tpu.matmul %144, %146, %cst_104 {dimension_numbers = #tpu.dot_dimension_numbers<[1], [0], [0], [1], [0, 0, 1, 1], [], []>} : vector<10x8xf32>, vector<8x32xf32>, vector<10x32xf32> -> vector<10x32xf32>
    %148 = arith.addf %121, %147 : vector<10x32xf32>
    %c0_105 = arith.constant 0 : index
    %c0_106 = arith.constant 0 : index
    %c2 = arith.constant 2 : index
    %c0_107 = arith.constant 0 : index
    %c0_108 = arith.constant 0 : index
    %149 = vector.load %arg27[%c0_105, %c0_106, %c2, %c0_107, %c0_108] : memref<1x2x4x32x8xf32, #tpu.memory_space<vmem>>, vector<1x1x1x32x8xf32>
    %150 = vector.shape_cast %149 : vector<1x1x1x32x8xf32> to vector<32x8xf32>
    %cst_109 = arith.constant dense<0.000000e+00> : vector<10x8xf32>
    %151 = tpu.matmul %93, %150, %cst_109 {dimension_numbers = #tpu.dot_dimension_numbers<[1], [0], [0], [1], [0, 0, 1, 1], [], []>} : vector<10x32xf32>, vector<32x8xf32>, vector<10x8xf32> -> vector<10x8xf32>
    %c0_110 = arith.constant 0 : index
    %c0_111 = arith.constant 0 : index
    %c2_112 = arith.constant 2 : index
    %c0_113 = arith.constant 0 : index
    %c0_114 = arith.constant 0 : index
    %152 = vector.load %arg14[%c0_110, %c0_111, %c2_112, %c0_113, %c0_114] : memref<1x2x4x32x8xf32, #tpu.memory_space<vmem>>, vector<1x1x1x32x8xf32>
    %153 = vector.shape_cast %152 : vector<1x1x1x32x8xf32> to vector<32x8xf32>
    %cst_115 = arith.constant dense<0.000000e+00> : vector<10x8xf32>
    %154 = tpu.matmul %93, %153, %cst_115 {dimension_numbers = #tpu.dot_dimension_numbers<[1], [0], [0], [1], [0, 0, 1, 1], [], []>} : vector<10x32xf32>, vector<32x8xf32>, vector<10x8xf32> -> vector<10x8xf32>
    %c0_116 = arith.constant 0 : index
    %c0_117 = arith.constant 0 : index
    %c2_118 = arith.constant 2 : index
    %c0_119 = arith.constant 0 : index
    %c0_120 = arith.constant 0 : index
    %155 = vector.load %arg29[%c0_116, %c0_117, %c2_118, %c0_119, %c0_120] : memref<1x2x4x32x8xf32, #tpu.memory_space<vmem>>, vector<1x1x1x32x8xf32>
    %156 = vector.shape_cast %155 : vector<1x1x1x32x8xf32> to vector<32x8xf32>
    %cst_121 = arith.constant dense<0.000000e+00> : vector<10x8xf32>
    %157 = tpu.matmul %93, %156, %cst_121 {dimension_numbers = #tpu.dot_dimension_numbers<[1], [0], [0], [1], [0, 0, 1, 1], [], []>} : vector<10x32xf32>, vector<32x8xf32>, vector<10x8xf32> -> vector<10x8xf32>
    %cst_122 = arith.constant dense<0.000000e+00> : vector<10x10xf32>
    %158 = tpu.matmul %151, %154, %cst_122 {dimension_numbers = #tpu.dot_dimension_numbers<[1], [1], [0], [0], [0, 0, 1, 0], [], []>} : vector<10x8xf32>, vector<10x8xf32>, vector<10x10xf32> -> vector<10x10xf32>
    %cst_123 = arith.constant 0.353553385 : f32
    %159 = vector.broadcast %cst_123 : f32 to vector<10x10xf32>
    %160 = arith.mulf %158, %159 : vector<10x10xf32>
    %161 = arith.addf %160, %67 : vector<10x10xf32>
    %cst_124 = arith.constant dense<0xFF800000> : vector<10xf32>
    %162 = vector.multi_reduction <maximumf>, %161, %cst_124 [1] : vector<10x10xf32> to vector<10xf32>
    %163 = vector.shape_cast %162 : vector<10xf32> to vector<10x1xf32>
    %164 = vector.broadcast %163 : vector<10x1xf32> to vector<10x10xf32>
    %165 = arith.subf %161, %164 : vector<10x10xf32>
    %166 = math.exp %165 : vector<10x10xf32>
    %cst_125 = arith.constant dense<0.000000e+00> : vector<10xf32>
    %167 = vector.multi_reduction <add>, %166, %cst_125 [1] : vector<10x10xf32> to vector<10xf32>
    %168 = vector.shape_cast %167 : vector<10xf32> to vector<10x1xf32>
    %169 = vector.broadcast %168 : vector<10x1xf32> to vector<10x10xf32>
    %170 = arith.divf %166, %169 : vector<10x10xf32>
    %cst_126 = arith.constant dense<0.000000e+00> : vector<10x8xf32>
    %171 = tpu.matmul %170, %157, %cst_126 {dimension_numbers = #tpu.dot_dimension_numbers<[1], [0], [0], [1], [0, 0, 1, 1], [], []>} : vector<10x10xf32>, vector<10x8xf32>, vector<10x8xf32> -> vector<10x8xf32>
    %c0_127 = arith.constant 0 : index
    %c0_128 = arith.constant 0 : index
    %c16 = arith.constant 16 : index
    %c0_129 = arith.constant 0 : index
    %172 = vector.load %arg20[%c0_127, %c0_128, %c16, %c0_129] : memref<1x2x32x32xf32, #tpu.memory_space<vmem>>, vector<1x1x8x32xf32>
    %173 = vector.shape_cast %172 : vector<1x1x8x32xf32> to vector<8x32xf32>
    %cst_130 = arith.constant dense<0.000000e+00> : vector<10x32xf32>
    %174 = tpu.matmul %171, %173, %cst_130 {dimension_numbers = #tpu.dot_dimension_numbers<[1], [0], [0], [1], [0, 0, 1, 1], [], []>} : vector<10x8xf32>, vector<8x32xf32>, vector<10x32xf32> -> vector<10x32xf32>
    %175 = arith.addf %148, %174 : vector<10x32xf32>
    %c0_131 = arith.constant 0 : index
    %c0_132 = arith.constant 0 : index
    %c3 = arith.constant 3 : index
    %c0_133 = arith.constant 0 : index
    %c0_134 = arith.constant 0 : index
    %176 = vector.load %arg27[%c0_131, %c0_132, %c3, %c0_133, %c0_134] : memref<1x2x4x32x8xf32, #tpu.memory_space<vmem>>, vector<1x1x1x32x8xf32>
    %177 = vector.shape_cast %176 : vector<1x1x1x32x8xf32> to vector<32x8xf32>
    %cst_135 = arith.constant dense<0.000000e+00> : vector<10x8xf32>
    %178 = tpu.matmul %93, %177, %cst_135 {dimension_numbers = #tpu.dot_dimension_numbers<[1], [0], [0], [1], [0, 0, 1, 1], [], []>} : vector<10x32xf32>, vector<32x8xf32>, vector<10x8xf32> -> vector<10x8xf32>
    %c0_136 = arith.constant 0 : index
    %c0_137 = arith.constant 0 : index
    %c3_138 = arith.constant 3 : index
    %c0_139 = arith.constant 0 : index
    %c0_140 = arith.constant 0 : index
    %179 = vector.load %arg14[%c0_136, %c0_137, %c3_138, %c0_139, %c0_140] : memref<1x2x4x32x8xf32, #tpu.memory_space<vmem>>, vector<1x1x1x32x8xf32>
    %180 = vector.shape_cast %179 : vector<1x1x1x32x8xf32> to vector<32x8xf32>
    %cst_141 = arith.constant dense<0.000000e+00> : vector<10x8xf32>
    %181 = tpu.matmul %93, %180, %cst_141 {dimension_numbers = #tpu.dot_dimension_numbers<[1], [0], [0], [1], [0, 0, 1, 1], [], []>} : vector<10x32xf32>, vector<32x8xf32>, vector<10x8xf32> -> vector<10x8xf32>
    %c0_142 = arith.constant 0 : index
    %c0_143 = arith.constant 0 : index
    %c3_144 = arith.constant 3 : index
    %c0_145 = arith.constant 0 : index
    %c0_146 = arith.constant 0 : index
    %182 = vector.load %arg29[%c0_142, %c0_143, %c3_144, %c0_145, %c0_146] : memref<1x2x4x32x8xf32, #tpu.memory_space<vmem>>, vector<1x1x1x32x8xf32>
    %183 = vector.shape_cast %182 : vector<1x1x1x32x8xf32> to vector<32x8xf32>
    %cst_147 = arith.constant dense<0.000000e+00> : vector<10x8xf32>
    %184 = tpu.matmul %93, %183, %cst_147 {dimension_numbers = #tpu.dot_dimension_numbers<[1], [0], [0], [1], [0, 0, 1, 1], [], []>} : vector<10x32xf32>, vector<32x8xf32>, vector<10x8xf32> -> vector<10x8xf32>
    %cst_148 = arith.constant dense<0.000000e+00> : vector<10x10xf32>
    %185 = tpu.matmul %178, %181, %cst_148 {dimension_numbers = #tpu.dot_dimension_numbers<[1], [1], [0], [0], [0, 0, 1, 0], [], []>} : vector<10x8xf32>, vector<10x8xf32>, vector<10x10xf32> -> vector<10x10xf32>
    %cst_149 = arith.constant 0.353553385 : f32
    %186 = vector.broadcast %cst_149 : f32 to vector<10x10xf32>
    %187 = arith.mulf %185, %186 : vector<10x10xf32>
    %188 = arith.addf %187, %67 : vector<10x10xf32>
    %cst_150 = arith.constant dense<0xFF800000> : vector<10xf32>
    %189 = vector.multi_reduction <maximumf>, %188, %cst_150 [1] : vector<10x10xf32> to vector<10xf32>
    %190 = vector.shape_cast %189 : vector<10xf32> to vector<10x1xf32>
    %191 = vector.broadcast %190 : vector<10x1xf32> to vector<10x10xf32>
    %192 = arith.subf %188, %191 : vector<10x10xf32>
    %193 = math.exp %192 : vector<10x10xf32>
    %cst_151 = arith.constant dense<0.000000e+00> : vector<10xf32>
    %194 = vector.multi_reduction <add>, %193, %cst_151 [1] : vector<10x10xf32> to vector<10xf32>
    %195 = vector.shape_cast %194 : vector<10xf32> to vector<10x1xf32>
    %196 = vector.broadcast %195 : vector<10x1xf32> to vector<10x10xf32>
    %197 = arith.divf %193, %196 : vector<10x10xf32>
    %cst_152 = arith.constant dense<0.000000e+00> : vector<10x8xf32>
    %198 = tpu.matmul %197, %184, %cst_152 {dimension_numbers = #tpu.dot_dimension_numbers<[1], [0], [0], [1], [0, 0, 1, 1], [], []>} : vector<10x10xf32>, vector<10x8xf32>, vector<10x8xf32> -> vector<10x8xf32>
    %c0_153 = arith.constant 0 : index
    %c0_154 = arith.constant 0 : index
    %c24 = arith.constant 24 : index
    %c0_155 = arith.constant 0 : index
    %199 = vector.load %arg20[%c0_153, %c0_154, %c24, %c0_155] : memref<1x2x32x32xf32, #tpu.memory_space<vmem>>, vector<1x1x8x32xf32>
    %200 = vector.shape_cast %199 : vector<1x1x8x32xf32> to vector<8x32xf32>
    %cst_156 = arith.constant dense<0.000000e+00> : vector<10x32xf32>
    %201 = tpu.matmul %198, %200, %cst_156 {dimension_numbers = #tpu.dot_dimension_numbers<[1], [0], [0], [1], [0, 0, 1, 1], [], []>} : vector<10x8xf32>, vector<8x32xf32>, vector<10x32xf32> -> vector<10x32xf32>
    %202 = arith.addf %175, %201 : vector<10x32xf32>
    %203 = arith.addf %65, %202 : vector<10x32xf32>
    %c0_157 = arith.constant 0 : index
    %c0_158 = arith.constant 0 : index
    %c0_159 = arith.constant 0 : index
    %c0_160 = arith.constant 0 : index
    %204 = vector.load %arg19[%c0_157, %c0_158, %c0_159, %c0_160] : memref<1x2x1x32xf32, #tpu.memory_space<vmem>>, vector<1x1x1x32xf32>
    %205 = vector.shape_cast %204 : vector<1x1x1x32xf32> to vector<1x32xf32>
    %206 = vector.broadcast %205 : vector<1x32xf32> to vector<10x32xf32>
    %207 = arith.addf %203, %206 : vector<10x32xf32>
    %c0_161 = arith.constant 0 : index
    %c0_162 = arith.constant 0 : index
    %c0_163 = arith.constant 0 : index
    %c0_164 = arith.constant 0 : index
    %208 = vector.load %arg18[%c0_161, %c0_162, %c0_163, %c0_164] : memref<1x2x1x32xf32, #tpu.memory_space<vmem>>, vector<1x1x1x32xf32>
    %209 = vector.shape_cast %208 : vector<1x1x1x32xf32> to vector<1x32xf32>
    %c0_165 = arith.constant 0 : index
    %c0_166 = arith.constant 0 : index
    %c0_167 = arith.constant 0 : index
    %c0_168 = arith.constant 0 : index
    %210 = vector.load %arg17[%c0_165, %c0_166, %c0_167, %c0_168] : memref<1x2x1x32xf32, #tpu.memory_space<vmem>>, vector<1x1x1x32xf32>
    %211 = vector.shape_cast %210 : vector<1x1x1x32xf32> to vector<1x32xf32>
    %cst_169 = arith.constant dense<0.000000e+00> : vector<10xf32>
    %212 = vector.multi_reduction <add>, %207, %cst_169 [1] : vector<10x32xf32> to vector<10xf32>
    %213 = vector.shape_cast %212 : vector<10xf32> to vector<10x1xf32>
    %cst_170 = arith.constant 3.200000e+01 : f32
    %214 = vector.broadcast %cst_170 : f32 to vector<10x1xf32>
    %215 = arith.divf %213, %214 : vector<10x1xf32>
    %216 = vector.broadcast %215 : vector<10x1xf32> to vector<10x32xf32>
    %217 = arith.subf %207, %216 : vector<10x32xf32>
    %218 = arith.mulf %217, %217 : vector<10x32xf32>
    %cst_171 = arith.constant dense<0.000000e+00> : vector<10xf32>
    %219 = vector.multi_reduction <add>, %218, %cst_171 [1] : vector<10x32xf32> to vector<10xf32>
    %220 = vector.shape_cast %219 : vector<10xf32> to vector<10x1xf32>
    %cst_172 = arith.constant 3.200000e+01 : f32
    %221 = vector.broadcast %cst_172 : f32 to vector<10x1xf32>
    %222 = arith.divf %220, %221 : vector<10x1xf32>
    %223 = vector.broadcast %215 : vector<10x1xf32> to vector<10x32xf32>
    %224 = arith.subf %207, %223 : vector<10x32xf32>
    %cst_173 = arith.constant 9.99999974E-6 : f32
    %225 = vector.broadcast %cst_173 : f32 to vector<10x1xf32>
    %226 = arith.addf %222, %225 : vector<10x1xf32>
    %227 = math.rsqrt %226 : vector<10x1xf32>
    %228 = vector.broadcast %227 : vector<10x1xf32> to vector<10x32xf32>
    %229 = arith.mulf %224, %228 : vector<10x32xf32>
    %230 = vector.broadcast %209 : vector<1x32xf32> to vector<10x32xf32>
    %231 = arith.mulf %229, %230 : vector<10x32xf32>
    %232 = vector.broadcast %211 : vector<1x32xf32> to vector<10x32xf32>
    %233 = arith.addf %231, %232 : vector<10x32xf32>
    %c0_174 = arith.constant 0 : index
    %c0_175 = arith.constant 0 : index
    %c0_176 = arith.constant 0 : index
    %c0_177 = arith.constant 0 : index
    %234 = vector.load %arg7[%c0_174, %c0_175, %c0_176, %c0_177] : memref<1x2x32x64xf32, #tpu.memory_space<vmem>>, vector<1x1x32x64xf32>
    %235 = vector.shape_cast %234 : vector<1x1x32x64xf32> to vector<32x64xf32>
    %cst_178 = arith.constant dense<0.000000e+00> : vector<10x64xf32>
    %236 = tpu.matmul %233, %235, %cst_178 {dimension_numbers = #tpu.dot_dimension_numbers<[1], [0], [0], [1], [0, 0, 1, 1], [], []>} : vector<10x32xf32>, vector<32x64xf32>, vector<10x64xf32> -> vector<10x64xf32>
    %c0_179 = arith.constant 0 : index
    %c0_180 = arith.constant 0 : index
    %c0_181 = arith.constant 0 : index
    %c0_182 = arith.constant 0 : index
    %237 = vector.load %arg6[%c0_179, %c0_180, %c0_181, %c0_182] : memref<1x2x1x64xf32, #tpu.memory_space<vmem>>, vector<1x1x1x64xf32>
    %238 = vector.shape_cast %237 : vector<1x1x1x64xf32> to vector<1x64xf32>
    %239 = vector.broadcast %238 : vector<1x64xf32> to vector<10x64xf32>
    %240 = arith.addf %236, %239 : vector<10x64xf32>
    %cst_183 = arith.constant 5.000000e-01 : f32
    %241 = vector.broadcast %cst_183 : f32 to vector<10x64xf32>
    %242 = arith.mulf %241, %240 : vector<10x64xf32>
    %cst_184 = arith.constant 4.471500e-02 : f32
    %243 = vector.broadcast %cst_184 : f32 to vector<10x64xf32>
    %244 = arith.mulf %243, %240 : vector<10x64xf32>
    %245 = arith.mulf %244, %240 : vector<10x64xf32>
    %246 = arith.mulf %245, %240 : vector<10x64xf32>
    %247 = arith.addf %240, %246 : vector<10x64xf32>
    %cst_185 = arith.constant 0.797884583 : f32
    %248 = vector.broadcast %cst_185 : f32 to vector<10x64xf32>
    %249 = arith.mulf %248, %247 : vector<10x64xf32>
    %250 = math.tanh %249 : vector<10x64xf32>
    %cst_186 = arith.constant 1.000000e+00 : f32
    %251 = vector.broadcast %cst_186 : f32 to vector<10x64xf32>
    %252 = arith.addf %251, %250 : vector<10x64xf32>
    %253 = arith.mulf %242, %252 : vector<10x64xf32>
    %c0_187 = arith.constant 0 : index
    %c0_188 = arith.constant 0 : index
    %c0_189 = arith.constant 0 : index
    %c0_190 = arith.constant 0 : index
    %254 = vector.load %arg9[%c0_187, %c0_188, %c0_189, %c0_190] : memref<1x2x64x32xf32, #tpu.memory_space<vmem>>, vector<1x1x64x32xf32>
    %255 = vector.shape_cast %254 : vector<1x1x64x32xf32> to vector<64x32xf32>
    %cst_191 = arith.constant dense<0.000000e+00> : vector<10x32xf32>
    %256 = tpu.matmul %253, %255, %cst_191 {dimension_numbers = #tpu.dot_dimension_numbers<[1], [0], [0], [1], [0, 0, 1, 1], [], []>} : vector<10x64xf32>, vector<64x32xf32>, vector<10x32xf32> -> vector<10x32xf32>
    %c0_192 = arith.constant 0 : index
    %c0_193 = arith.constant 0 : index
    %c0_194 = arith.constant 0 : index
    %c0_195 = arith.constant 0 : index
    %257 = vector.load %arg8[%c0_192, %c0_193, %c0_194, %c0_195] : memref<1x2x1x32xf32, #tpu.memory_space<vmem>>, vector<1x1x1x32xf32>
    %258 = vector.shape_cast %257 : vector<1x1x1x32xf32> to vector<1x32xf32>
    %259 = vector.broadcast %258 : vector<1x32xf32> to vector<10x32xf32>
    %260 = arith.addf %256, %259 : vector<10x32xf32>
    %261 = arith.addf %207, %260 : vector<10x32xf32>
    %c0_196 = arith.constant 0 : index
    %c1_197 = arith.constant 1 : index
    %c0_198 = arith.constant 0 : index
    %c0_199 = arith.constant 0 : index
    %262 = vector.load %arg16[%c0_196, %c1_197, %c0_198, %c0_199] : memref<1x2x1x32xf32, #tpu.memory_space<vmem>>, vector<1x1x1x32xf32>
    %263 = vector.shape_cast %262 : vector<1x1x1x32xf32> to vector<1x32xf32>
    %c0_200 = arith.constant 0 : index
    %c1_201 = arith.constant 1 : index
    %c0_202 = arith.constant 0 : index
    %c0_203 = arith.constant 0 : index
    %264 = vector.load %arg15[%c0_200, %c1_201, %c0_202, %c0_203] : memref<1x2x1x32xf32, #tpu.memory_space<vmem>>, vector<1x1x1x32xf32>
    %265 = vector.shape_cast %264 : vector<1x1x1x32xf32> to vector<1x32xf32>
    %cst_204 = arith.constant dense<0.000000e+00> : vector<10xf32>
    %266 = vector.multi_reduction <add>, %261, %cst_204 [1] : vector<10x32xf32> to vector<10xf32>
    %267 = vector.shape_cast %266 : vector<10xf32> to vector<10x1xf32>
    %cst_205 = arith.constant 3.200000e+01 : f32
    %268 = vector.broadcast %cst_205 : f32 to vector<10x1xf32>
    %269 = arith.divf %267, %268 : vector<10x1xf32>
    %270 = vector.broadcast %269 : vector<10x1xf32> to vector<10x32xf32>
    %271 = arith.subf %261, %270 : vector<10x32xf32>
    %272 = arith.mulf %271, %271 : vector<10x32xf32>
    %cst_206 = arith.constant dense<0.000000e+00> : vector<10xf32>
    %273 = vector.multi_reduction <add>, %272, %cst_206 [1] : vector<10x32xf32> to vector<10xf32>
    %274 = vector.shape_cast %273 : vector<10xf32> to vector<10x1xf32>
    %cst_207 = arith.constant 3.200000e+01 : f32
    %275 = vector.broadcast %cst_207 : f32 to vector<10x1xf32>
    %276 = arith.divf %274, %275 : vector<10x1xf32>
    %277 = vector.broadcast %269 : vector<10x1xf32> to vector<10x32xf32>
    %278 = arith.subf %261, %277 : vector<10x32xf32>
    %cst_208 = arith.constant 9.99999974E-6 : f32
    %279 = vector.broadcast %cst_208 : f32 to vector<10x1xf32>
    %280 = arith.addf %276, %279 : vector<10x1xf32>
    %281 = math.rsqrt %280 : vector<10x1xf32>
    %282 = vector.broadcast %281 : vector<10x1xf32> to vector<10x32xf32>
    %283 = arith.mulf %278, %282 : vector<10x32xf32>
    %284 = vector.broadcast %263 : vector<1x32xf32> to vector<10x32xf32>
    %285 = arith.mulf %283, %284 : vector<10x32xf32>
    %286 = vector.broadcast %265 : vector<1x32xf32> to vector<10x32xf32>
    %287 = arith.addf %285, %286 : vector<10x32xf32>
    %cst_209 = arith.constant 0.000000e+00 : f32
    %288 = vector.broadcast %cst_209 : f32 to vector<10x32xf32>
    %c0_210 = arith.constant 0 : index
    %c1_211 = arith.constant 1 : index
    %c0_212 = arith.constant 0 : index
    %c0_213 = arith.constant 0 : index
    %c0_214 = arith.constant 0 : index
    %289 = vector.load %arg27[%c0_210, %c1_211, %c0_212, %c0_213, %c0_214] : memref<1x2x4x32x8xf32, #tpu.memory_space<vmem>>, vector<1x1x1x32x8xf32>
    %290 = vector.shape_cast %289 : vector<1x1x1x32x8xf32> to vector<32x8xf32>
    %cst_215 = arith.constant dense<0.000000e+00> : vector<10x8xf32>
    %291 = tpu.matmul %287, %290, %cst_215 {dimension_numbers = #tpu.dot_dimension_numbers<[1], [0], [0], [1], [0, 0, 1, 1], [], []>} : vector<10x32xf32>, vector<32x8xf32>, vector<10x8xf32> -> vector<10x8xf32>
    %c0_216 = arith.constant 0 : index
    %c1_217 = arith.constant 1 : index
    %c0_218 = arith.constant 0 : index
    %c0_219 = arith.constant 0 : index
    %c0_220 = arith.constant 0 : index
    %292 = vector.load %arg14[%c0_216, %c1_217, %c0_218, %c0_219, %c0_220] : memref<1x2x4x32x8xf32, #tpu.memory_space<vmem>>, vector<1x1x1x32x8xf32>
    %293 = vector.shape_cast %292 : vector<1x1x1x32x8xf32> to vector<32x8xf32>
    %cst_221 = arith.constant dense<0.000000e+00> : vector<10x8xf32>
    %294 = tpu.matmul %287, %293, %cst_221 {dimension_numbers = #tpu.dot_dimension_numbers<[1], [0], [0], [1], [0, 0, 1, 1], [], []>} : vector<10x32xf32>, vector<32x8xf32>, vector<10x8xf32> -> vector<10x8xf32>
    %c0_222 = arith.constant 0 : index
    %c1_223 = arith.constant 1 : index
    %c0_224 = arith.constant 0 : index
    %c0_225 = arith.constant 0 : index
    %c0_226 = arith.constant 0 : index
    %295 = vector.load %arg29[%c0_222, %c1_223, %c0_224, %c0_225, %c0_226] : memref<1x2x4x32x8xf32, #tpu.memory_space<vmem>>, vector<1x1x1x32x8xf32>
    %296 = vector.shape_cast %295 : vector<1x1x1x32x8xf32> to vector<32x8xf32>
    %cst_227 = arith.constant dense<0.000000e+00> : vector<10x8xf32>
    %297 = tpu.matmul %287, %296, %cst_227 {dimension_numbers = #tpu.dot_dimension_numbers<[1], [0], [0], [1], [0, 0, 1, 1], [], []>} : vector<10x32xf32>, vector<32x8xf32>, vector<10x8xf32> -> vector<10x8xf32>
    %cst_228 = arith.constant dense<0.000000e+00> : vector<10x10xf32>
    %298 = tpu.matmul %291, %294, %cst_228 {dimension_numbers = #tpu.dot_dimension_numbers<[1], [1], [0], [0], [0, 0, 1, 0], [], []>} : vector<10x8xf32>, vector<10x8xf32>, vector<10x10xf32> -> vector<10x10xf32>
    %cst_229 = arith.constant 0.353553385 : f32
    %299 = vector.broadcast %cst_229 : f32 to vector<10x10xf32>
    %300 = arith.mulf %298, %299 : vector<10x10xf32>
    %301 = arith.addf %300, %67 : vector<10x10xf32>
    %cst_230 = arith.constant dense<0xFF800000> : vector<10xf32>
    %302 = vector.multi_reduction <maximumf>, %301, %cst_230 [1] : vector<10x10xf32> to vector<10xf32>
    %303 = vector.shape_cast %302 : vector<10xf32> to vector<10x1xf32>
    %304 = vector.broadcast %303 : vector<10x1xf32> to vector<10x10xf32>
    %305 = arith.subf %301, %304 : vector<10x10xf32>
    %306 = math.exp %305 : vector<10x10xf32>
    %cst_231 = arith.constant dense<0.000000e+00> : vector<10xf32>
    %307 = vector.multi_reduction <add>, %306, %cst_231 [1] : vector<10x10xf32> to vector<10xf32>
    %308 = vector.shape_cast %307 : vector<10xf32> to vector<10x1xf32>
    %309 = vector.broadcast %308 : vector<10x1xf32> to vector<10x10xf32>
    %310 = arith.divf %306, %309 : vector<10x10xf32>
    %cst_232 = arith.constant dense<0.000000e+00> : vector<10x8xf32>
    %311 = tpu.matmul %310, %297, %cst_232 {dimension_numbers = #tpu.dot_dimension_numbers<[1], [0], [0], [1], [0, 0, 1, 1], [], []>} : vector<10x10xf32>, vector<10x8xf32>, vector<10x8xf32> -> vector<10x8xf32>
    %c0_233 = arith.constant 0 : index
    %c1_234 = arith.constant 1 : index
    %c0_235 = arith.constant 0 : index
    %c0_236 = arith.constant 0 : index
    %312 = vector.load %arg20[%c0_233, %c1_234, %c0_235, %c0_236] : memref<1x2x32x32xf32, #tpu.memory_space<vmem>>, vector<1x1x8x32xf32>
    %313 = vector.shape_cast %312 : vector<1x1x8x32xf32> to vector<8x32xf32>
    %cst_237 = arith.constant dense<0.000000e+00> : vector<10x32xf32>
    %314 = tpu.matmul %311, %313, %cst_237 {dimension_numbers = #tpu.dot_dimension_numbers<[1], [0], [0], [1], [0, 0, 1, 1], [], []>} : vector<10x8xf32>, vector<8x32xf32>, vector<10x32xf32> -> vector<10x32xf32>
    %315 = arith.addf %288, %314 : vector<10x32xf32>
    %c0_238 = arith.constant 0 : index
    %c1_239 = arith.constant 1 : index
    %c1_240 = arith.constant 1 : index
    %c0_241 = arith.constant 0 : index
    %c0_242 = arith.constant 0 : index
    %316 = vector.load %arg27[%c0_238, %c1_239, %c1_240, %c0_241, %c0_242] : memref<1x2x4x32x8xf32, #tpu.memory_space<vmem>>, vector<1x1x1x32x8xf32>
    %317 = vector.shape_cast %316 : vector<1x1x1x32x8xf32> to vector<32x8xf32>
    %cst_243 = arith.constant dense<0.000000e+00> : vector<10x8xf32>
    %318 = tpu.matmul %287, %317, %cst_243 {dimension_numbers = #tpu.dot_dimension_numbers<[1], [0], [0], [1], [0, 0, 1, 1], [], []>} : vector<10x32xf32>, vector<32x8xf32>, vector<10x8xf32> -> vector<10x8xf32>
    %c0_244 = arith.constant 0 : index
    %c1_245 = arith.constant 1 : index
    %c1_246 = arith.constant 1 : index
    %c0_247 = arith.constant 0 : index
    %c0_248 = arith.constant 0 : index
    %319 = vector.load %arg14[%c0_244, %c1_245, %c1_246, %c0_247, %c0_248] : memref<1x2x4x32x8xf32, #tpu.memory_space<vmem>>, vector<1x1x1x32x8xf32>
    %320 = vector.shape_cast %319 : vector<1x1x1x32x8xf32> to vector<32x8xf32>
    %cst_249 = arith.constant dense<0.000000e+00> : vector<10x8xf32>
    %321 = tpu.matmul %287, %320, %cst_249 {dimension_numbers = #tpu.dot_dimension_numbers<[1], [0], [0], [1], [0, 0, 1, 1], [], []>} : vector<10x32xf32>, vector<32x8xf32>, vector<10x8xf32> -> vector<10x8xf32>
    %c0_250 = arith.constant 0 : index
    %c1_251 = arith.constant 1 : index
    %c1_252 = arith.constant 1 : index
    %c0_253 = arith.constant 0 : index
    %c0_254 = arith.constant 0 : index
    %322 = vector.load %arg29[%c0_250, %c1_251, %c1_252, %c0_253, %c0_254] : memref<1x2x4x32x8xf32, #tpu.memory_space<vmem>>, vector<1x1x1x32x8xf32>
    %323 = vector.shape_cast %322 : vector<1x1x1x32x8xf32> to vector<32x8xf32>
    %cst_255 = arith.constant dense<0.000000e+00> : vector<10x8xf32>
    %324 = tpu.matmul %287, %323, %cst_255 {dimension_numbers = #tpu.dot_dimension_numbers<[1], [0], [0], [1], [0, 0, 1, 1], [], []>} : vector<10x32xf32>, vector<32x8xf32>, vector<10x8xf32> -> vector<10x8xf32>
    %cst_256 = arith.constant dense<0.000000e+00> : vector<10x10xf32>
    %325 = tpu.matmul %318, %321, %cst_256 {dimension_numbers = #tpu.dot_dimension_numbers<[1], [1], [0], [0], [0, 0, 1, 0], [], []>} : vector<10x8xf32>, vector<10x8xf32>, vector<10x10xf32> -> vector<10x10xf32>
    %cst_257 = arith.constant 0.353553385 : f32
    %326 = vector.broadcast %cst_257 : f32 to vector<10x10xf32>
    %327 = arith.mulf %325, %326 : vector<10x10xf32>
    %328 = arith.addf %327, %67 : vector<10x10xf32>
    %cst_258 = arith.constant dense<0xFF800000> : vector<10xf32>
    %329 = vector.multi_reduction <maximumf>, %328, %cst_258 [1] : vector<10x10xf32> to vector<10xf32>
    %330 = vector.shape_cast %329 : vector<10xf32> to vector<10x1xf32>
    %331 = vector.broadcast %330 : vector<10x1xf32> to vector<10x10xf32>
    %332 = arith.subf %328, %331 : vector<10x10xf32>
    %333 = math.exp %332 : vector<10x10xf32>
    %cst_259 = arith.constant dense<0.000000e+00> : vector<10xf32>
    %334 = vector.multi_reduction <add>, %333, %cst_259 [1] : vector<10x10xf32> to vector<10xf32>
    %335 = vector.shape_cast %334 : vector<10xf32> to vector<10x1xf32>
    %336 = vector.broadcast %335 : vector<10x1xf32> to vector<10x10xf32>
    %337 = arith.divf %333, %336 : vector<10x10xf32>
    %cst_260 = arith.constant dense<0.000000e+00> : vector<10x8xf32>
    %338 = tpu.matmul %337, %324, %cst_260 {dimension_numbers = #tpu.dot_dimension_numbers<[1], [0], [0], [1], [0, 0, 1, 1], [], []>} : vector<10x10xf32>, vector<10x8xf32>, vector<10x8xf32> -> vector<10x8xf32>
    %c0_261 = arith.constant 0 : index
    %c1_262 = arith.constant 1 : index
    %c8_263 = arith.constant 8 : index
    %c0_264 = arith.constant 0 : index
    %339 = vector.load %arg20[%c0_261, %c1_262, %c8_263, %c0_264] : memref<1x2x32x32xf32, #tpu.memory_space<vmem>>, vector<1x1x8x32xf32>
    %340 = vector.shape_cast %339 : vector<1x1x8x32xf32> to vector<8x32xf32>
    %cst_265 = arith.constant dense<0.000000e+00> : vector<10x32xf32>
    %341 = tpu.matmul %338, %340, %cst_265 {dimension_numbers = #tpu.dot_dimension_numbers<[1], [0], [0], [1], [0, 0, 1, 1], [], []>} : vector<10x8xf32>, vector<8x32xf32>, vector<10x32xf32> -> vector<10x32xf32>
    %342 = arith.addf %315, %341 : vector<10x32xf32>
    %c0_266 = arith.constant 0 : index
    %c1_267 = arith.constant 1 : index
    %c2_268 = arith.constant 2 : index
    %c0_269 = arith.constant 0 : index
    %c0_270 = arith.constant 0 : index
    %343 = vector.load %arg27[%c0_266, %c1_267, %c2_268, %c0_269, %c0_270] : memref<1x2x4x32x8xf32, #tpu.memory_space<vmem>>, vector<1x1x1x32x8xf32>
    %344 = vector.shape_cast %343 : vector<1x1x1x32x8xf32> to vector<32x8xf32>
    %cst_271 = arith.constant dense<0.000000e+00> : vector<10x8xf32>
    %345 = tpu.matmul %287, %344, %cst_271 {dimension_numbers = #tpu.dot_dimension_numbers<[1], [0], [0], [1], [0, 0, 1, 1], [], []>} : vector<10x32xf32>, vector<32x8xf32>, vector<10x8xf32> -> vector<10x8xf32>
    %c0_272 = arith.constant 0 : index
    %c1_273 = arith.constant 1 : index
    %c2_274 = arith.constant 2 : index
    %c0_275 = arith.constant 0 : index
    %c0_276 = arith.constant 0 : index
    %346 = vector.load %arg14[%c0_272, %c1_273, %c2_274, %c0_275, %c0_276] : memref<1x2x4x32x8xf32, #tpu.memory_space<vmem>>, vector<1x1x1x32x8xf32>
    %347 = vector.shape_cast %346 : vector<1x1x1x32x8xf32> to vector<32x8xf32>
    %cst_277 = arith.constant dense<0.000000e+00> : vector<10x8xf32>
    %348 = tpu.matmul %287, %347, %cst_277 {dimension_numbers = #tpu.dot_dimension_numbers<[1], [0], [0], [1], [0, 0, 1, 1], [], []>} : vector<10x32xf32>, vector<32x8xf32>, vector<10x8xf32> -> vector<10x8xf32>
    %c0_278 = arith.constant 0 : index
    %c1_279 = arith.constant 1 : index
    %c2_280 = arith.constant 2 : index
    %c0_281 = arith.constant 0 : index
    %c0_282 = arith.constant 0 : index
    %349 = vector.load %arg29[%c0_278, %c1_279, %c2_280, %c0_281, %c0_282] : memref<1x2x4x32x8xf32, #tpu.memory_space<vmem>>, vector<1x1x1x32x8xf32>
    %350 = vector.shape_cast %349 : vector<1x1x1x32x8xf32> to vector<32x8xf32>
    %cst_283 = arith.constant dense<0.000000e+00> : vector<10x8xf32>
    %351 = tpu.matmul %287, %350, %cst_283 {dimension_numbers = #tpu.dot_dimension_numbers<[1], [0], [0], [1], [0, 0, 1, 1], [], []>} : vector<10x32xf32>, vector<32x8xf32>, vector<10x8xf32> -> vector<10x8xf32>
    %cst_284 = arith.constant dense<0.000000e+00> : vector<10x10xf32>
    %352 = tpu.matmul %345, %348, %cst_284 {dimension_numbers = #tpu.dot_dimension_numbers<[1], [1], [0], [0], [0, 0, 1, 0], [], []>} : vector<10x8xf32>, vector<10x8xf32>, vector<10x10xf32> -> vector<10x10xf32>
    %cst_285 = arith.constant 0.353553385 : f32
    %353 = vector.broadcast %cst_285 : f32 to vector<10x10xf32>
    %354 = arith.mulf %352, %353 : vector<10x10xf32>
    %355 = arith.addf %354, %67 : vector<10x10xf32>
    %cst_286 = arith.constant dense<0xFF800000> : vector<10xf32>
    %356 = vector.multi_reduction <maximumf>, %355, %cst_286 [1] : vector<10x10xf32> to vector<10xf32>
    %357 = vector.shape_cast %356 : vector<10xf32> to vector<10x1xf32>
    %358 = vector.broadcast %357 : vector<10x1xf32> to vector<10x10xf32>
    %359 = arith.subf %355, %358 : vector<10x10xf32>
    %360 = math.exp %359 : vector<10x10xf32>
    %cst_287 = arith.constant dense<0.000000e+00> : vector<10xf32>
    %361 = vector.multi_reduction <add>, %360, %cst_287 [1] : vector<10x10xf32> to vector<10xf32>
    %362 = vector.shape_cast %361 : vector<10xf32> to vector<10x1xf32>
    %363 = vector.broadcast %362 : vector<10x1xf32> to vector<10x10xf32>
    %364 = arith.divf %360, %363 : vector<10x10xf32>
    %cst_288 = arith.constant dense<0.000000e+00> : vector<10x8xf32>
    %365 = tpu.matmul %364, %351, %cst_288 {dimension_numbers = #tpu.dot_dimension_numbers<[1], [0], [0], [1], [0, 0, 1, 1], [], []>} : vector<10x10xf32>, vector<10x8xf32>, vector<10x8xf32> -> vector<10x8xf32>
    %c0_289 = arith.constant 0 : index
    %c1_290 = arith.constant 1 : index
    %c16_291 = arith.constant 16 : index
    %c0_292 = arith.constant 0 : index
    %366 = vector.load %arg20[%c0_289, %c1_290, %c16_291, %c0_292] : memref<1x2x32x32xf32, #tpu.memory_space<vmem>>, vector<1x1x8x32xf32>
    %367 = vector.shape_cast %366 : vector<1x1x8x32xf32> to vector<8x32xf32>
    %cst_293 = arith.constant dense<0.000000e+00> : vector<10x32xf32>
    %368 = tpu.matmul %365, %367, %cst_293 {dimension_numbers = #tpu.dot_dimension_numbers<[1], [0], [0], [1], [0, 0, 1, 1], [], []>} : vector<10x8xf32>, vector<8x32xf32>, vector<10x32xf32> -> vector<10x32xf32>
    %369 = arith.addf %342, %368 : vector<10x32xf32>
    %c0_294 = arith.constant 0 : index
    %c1_295 = arith.constant 1 : index
    %c3_296 = arith.constant 3 : index
    %c0_297 = arith.constant 0 : index
    %c0_298 = arith.constant 0 : index
    %370 = vector.load %arg27[%c0_294, %c1_295, %c3_296, %c0_297, %c0_298] : memref<1x2x4x32x8xf32, #tpu.memory_space<vmem>>, vector<1x1x1x32x8xf32>
    %371 = vector.shape_cast %370 : vector<1x1x1x32x8xf32> to vector<32x8xf32>
    %cst_299 = arith.constant dense<0.000000e+00> : vector<10x8xf32>
    %372 = tpu.matmul %287, %371, %cst_299 {dimension_numbers = #tpu.dot_dimension_numbers<[1], [0], [0], [1], [0, 0, 1, 1], [], []>} : vector<10x32xf32>, vector<32x8xf32>, vector<10x8xf32> -> vector<10x8xf32>
    %c0_300 = arith.constant 0 : index
    %c1_301 = arith.constant 1 : index
    %c3_302 = arith.constant 3 : index
    %c0_303 = arith.constant 0 : index
    %c0_304 = arith.constant 0 : index
    %373 = vector.load %arg14[%c0_300, %c1_301, %c3_302, %c0_303, %c0_304] : memref<1x2x4x32x8xf32, #tpu.memory_space<vmem>>, vector<1x1x1x32x8xf32>
    %374 = vector.shape_cast %373 : vector<1x1x1x32x8xf32> to vector<32x8xf32>
    %cst_305 = arith.constant dense<0.000000e+00> : vector<10x8xf32>
    %375 = tpu.matmul %287, %374, %cst_305 {dimension_numbers = #tpu.dot_dimension_numbers<[1], [0], [0], [1], [0, 0, 1, 1], [], []>} : vector<10x32xf32>, vector<32x8xf32>, vector<10x8xf32> -> vector<10x8xf32>
    %c0_306 = arith.constant 0 : index
    %c1_307 = arith.constant 1 : index
    %c3_308 = arith.constant 3 : index
    %c0_309 = arith.constant 0 : index
    %c0_310 = arith.constant 0 : index
    %376 = vector.load %arg29[%c0_306, %c1_307, %c3_308, %c0_309, %c0_310] : memref<1x2x4x32x8xf32, #tpu.memory_space<vmem>>, vector<1x1x1x32x8xf32>
    %377 = vector.shape_cast %376 : vector<1x1x1x32x8xf32> to vector<32x8xf32>
    %cst_311 = arith.constant dense<0.000000e+00> : vector<10x8xf32>
    %378 = tpu.matmul %287, %377, %cst_311 {dimension_numbers = #tpu.dot_dimension_numbers<[1], [0], [0], [1], [0, 0, 1, 1], [], []>} : vector<10x32xf32>, vector<32x8xf32>, vector<10x8xf32> -> vector<10x8xf32>
    %cst_312 = arith.constant dense<0.000000e+00> : vector<10x10xf32>
    %379 = tpu.matmul %372, %375, %cst_312 {dimension_numbers = #tpu.dot_dimension_numbers<[1], [1], [0], [0], [0, 0, 1, 0], [], []>} : vector<10x8xf32>, vector<10x8xf32>, vector<10x10xf32> -> vector<10x10xf32>
    %cst_313 = arith.constant 0.353553385 : f32
    %380 = vector.broadcast %cst_313 : f32 to vector<10x10xf32>
    %381 = arith.mulf %379, %380 : vector<10x10xf32>
    %382 = arith.addf %381, %67 : vector<10x10xf32>
    %cst_314 = arith.constant dense<0xFF800000> : vector<10xf32>
    %383 = vector.multi_reduction <maximumf>, %382, %cst_314 [1] : vector<10x10xf32> to vector<10xf32>
    %384 = vector.shape_cast %383 : vector<10xf32> to vector<10x1xf32>
    %385 = vector.broadcast %384 : vector<10x1xf32> to vector<10x10xf32>
    %386 = arith.subf %382, %385 : vector<10x10xf32>
    %387 = math.exp %386 : vector<10x10xf32>
    %cst_315 = arith.constant dense<0.000000e+00> : vector<10xf32>
    %388 = vector.multi_reduction <add>, %387, %cst_315 [1] : vector<10x10xf32> to vector<10xf32>
    %389 = vector.shape_cast %388 : vector<10xf32> to vector<10x1xf32>
    %390 = vector.broadcast %389 : vector<10x1xf32> to vector<10x10xf32>
    %391 = arith.divf %387, %390 : vector<10x10xf32>
    %cst_316 = arith.constant dense<0.000000e+00> : vector<10x8xf32>
    %392 = tpu.matmul %391, %378, %cst_316 {dimension_numbers = #tpu.dot_dimension_numbers<[1], [0], [0], [1], [0, 0, 1, 1], [], []>} : vector<10x10xf32>, vector<10x8xf32>, vector<10x8xf32> -> vector<10x8xf32>
    %c0_317 = arith.constant 0 : index
    %c1_318 = arith.constant 1 : index
    %c24_319 = arith.constant 24 : index
    %c0_320 = arith.constant 0 : index
    %393 = vector.load %arg20[%c0_317, %c1_318, %c24_319, %c0_320] : memref<1x2x32x32xf32, #tpu.memory_space<vmem>>, vector<1x1x8x32xf32>
    %394 = vector.shape_cast %393 : vector<1x1x8x32xf32> to vector<8x32xf32>
    %cst_321 = arith.constant dense<0.000000e+00> : vector<10x32xf32>
    %395 = tpu.matmul %392, %394, %cst_321 {dimension_numbers = #tpu.dot_dimension_numbers<[1], [0], [0], [1], [0, 0, 1, 1], [], []>} : vector<10x8xf32>, vector<8x32xf32>, vector<10x32xf32> -> vector<10x32xf32>
    %396 = arith.addf %369, %395 : vector<10x32xf32>
    %397 = arith.addf %261, %396 : vector<10x32xf32>
    %c0_322 = arith.constant 0 : index
    %c1_323 = arith.constant 1 : index
    %c0_324 = arith.constant 0 : index
    %c0_325 = arith.constant 0 : index
    %398 = vector.load %arg19[%c0_322, %c1_323, %c0_324, %c0_325] : memref<1x2x1x32xf32, #tpu.memory_space<vmem>>, vector<1x1x1x32xf32>
    %399 = vector.shape_cast %398 : vector<1x1x1x32xf32> to vector<1x32xf32>
    %400 = vector.broadcast %399 : vector<1x32xf32> to vector<10x32xf32>
    %401 = arith.addf %397, %400 : vector<10x32xf32>
    %c0_326 = arith.constant 0 : index
    %c1_327 = arith.constant 1 : index
    %c0_328 = arith.constant 0 : index
    %c0_329 = arith.constant 0 : index
    %402 = vector.load %arg18[%c0_326, %c1_327, %c0_328, %c0_329] : memref<1x2x1x32xf32, #tpu.memory_space<vmem>>, vector<1x1x1x32xf32>
    %403 = vector.shape_cast %402 : vector<1x1x1x32xf32> to vector<1x32xf32>
    %c0_330 = arith.constant 0 : index
    %c1_331 = arith.constant 1 : index
    %c0_332 = arith.constant 0 : index
    %c0_333 = arith.constant 0 : index
    %404 = vector.load %arg17[%c0_330, %c1_331, %c0_332, %c0_333] : memref<1x2x1x32xf32, #tpu.memory_space<vmem>>, vector<1x1x1x32xf32>
    %405 = vector.shape_cast %404 : vector<1x1x1x32xf32> to vector<1x32xf32>
    %cst_334 = arith.constant dense<0.000000e+00> : vector<10xf32>
    %406 = vector.multi_reduction <add>, %401, %cst_334 [1] : vector<10x32xf32> to vector<10xf32>
    %407 = vector.shape_cast %406 : vector<10xf32> to vector<10x1xf32>
    %cst_335 = arith.constant 3.200000e+01 : f32
    %408 = vector.broadcast %cst_335 : f32 to vector<10x1xf32>
    %409 = arith.divf %407, %408 : vector<10x1xf32>
    %410 = vector.broadcast %409 : vector<10x1xf32> to vector<10x32xf32>
    %411 = arith.subf %401, %410 : vector<10x32xf32>
    %412 = arith.mulf %411, %411 : vector<10x32xf32>
    %cst_336 = arith.constant dense<0.000000e+00> : vector<10xf32>
    %413 = vector.multi_reduction <add>, %412, %cst_336 [1] : vector<10x32xf32> to vector<10xf32>
    %414 = vector.shape_cast %413 : vector<10xf32> to vector<10x1xf32>
    %cst_337 = arith.constant 3.200000e+01 : f32
    %415 = vector.broadcast %cst_337 : f32 to vector<10x1xf32>
    %416 = arith.divf %414, %415 : vector<10x1xf32>
    %417 = vector.broadcast %409 : vector<10x1xf32> to vector<10x32xf32>
    %418 = arith.subf %401, %417 : vector<10x32xf32>
    %cst_338 = arith.constant 9.99999974E-6 : f32
    %419 = vector.broadcast %cst_338 : f32 to vector<10x1xf32>
    %420 = arith.addf %416, %419 : vector<10x1xf32>
    %421 = math.rsqrt %420 : vector<10x1xf32>
    %422 = vector.broadcast %421 : vector<10x1xf32> to vector<10x32xf32>
    %423 = arith.mulf %418, %422 : vector<10x32xf32>
    %424 = vector.broadcast %403 : vector<1x32xf32> to vector<10x32xf32>
    %425 = arith.mulf %423, %424 : vector<10x32xf32>
    %426 = vector.broadcast %405 : vector<1x32xf32> to vector<10x32xf32>
    %427 = arith.addf %425, %426 : vector<10x32xf32>
    %c0_339 = arith.constant 0 : index
    %c1_340 = arith.constant 1 : index
    %c0_341 = arith.constant 0 : index
    %c0_342 = arith.constant 0 : index
    %428 = vector.load %arg7[%c0_339, %c1_340, %c0_341, %c0_342] : memref<1x2x32x64xf32, #tpu.memory_space<vmem>>, vector<1x1x32x64xf32>
    %429 = vector.shape_cast %428 : vector<1x1x32x64xf32> to vector<32x64xf32>
    %cst_343 = arith.constant dense<0.000000e+00> : vector<10x64xf32>
    %430 = tpu.matmul %427, %429, %cst_343 {dimension_numbers = #tpu.dot_dimension_numbers<[1], [0], [0], [1], [0, 0, 1, 1], [], []>} : vector<10x32xf32>, vector<32x64xf32>, vector<10x64xf32> -> vector<10x64xf32>
    %c0_344 = arith.constant 0 : index
    %c1_345 = arith.constant 1 : index
    %c0_346 = arith.constant 0 : index
    %c0_347 = arith.constant 0 : index
    %431 = vector.load %arg6[%c0_344, %c1_345, %c0_346, %c0_347] : memref<1x2x1x64xf32, #tpu.memory_space<vmem>>, vector<1x1x1x64xf32>
    %432 = vector.shape_cast %431 : vector<1x1x1x64xf32> to vector<1x64xf32>
    %433 = vector.broadcast %432 : vector<1x64xf32> to vector<10x64xf32>
    %434 = arith.addf %430, %433 : vector<10x64xf32>
    %cst_348 = arith.constant 5.000000e-01 : f32
    %435 = vector.broadcast %cst_348 : f32 to vector<10x64xf32>
    %436 = arith.mulf %435, %434 : vector<10x64xf32>
    %cst_349 = arith.constant 4.471500e-02 : f32
    %437 = vector.broadcast %cst_349 : f32 to vector<10x64xf32>
    %438 = arith.mulf %437, %434 : vector<10x64xf32>
    %439 = arith.mulf %438, %434 : vector<10x64xf32>
    %440 = arith.mulf %439, %434 : vector<10x64xf32>
    %441 = arith.addf %434, %440 : vector<10x64xf32>
    %cst_350 = arith.constant 0.797884583 : f32
    %442 = vector.broadcast %cst_350 : f32 to vector<10x64xf32>
    %443 = arith.mulf %442, %441 : vector<10x64xf32>
    %444 = math.tanh %443 : vector<10x64xf32>
    %cst_351 = arith.constant 1.000000e+00 : f32
    %445 = vector.broadcast %cst_351 : f32 to vector<10x64xf32>
    %446 = arith.addf %445, %444 : vector<10x64xf32>
    %447 = arith.mulf %436, %446 : vector<10x64xf32>
    %c0_352 = arith.constant 0 : index
    %c1_353 = arith.constant 1 : index
    %c0_354 = arith.constant 0 : index
    %c0_355 = arith.constant 0 : index
    %448 = vector.load %arg9[%c0_352, %c1_353, %c0_354, %c0_355] : memref<1x2x64x32xf32, #tpu.memory_space<vmem>>, vector<1x1x64x32xf32>
    %449 = vector.shape_cast %448 : vector<1x1x64x32xf32> to vector<64x32xf32>
    %cst_356 = arith.constant dense<0.000000e+00> : vector<10x32xf32>
    %450 = tpu.matmul %447, %449, %cst_356 {dimension_numbers = #tpu.dot_dimension_numbers<[1], [0], [0], [1], [0, 0, 1, 1], [], []>} : vector<10x64xf32>, vector<64x32xf32>, vector<10x32xf32> -> vector<10x32xf32>
    %c0_357 = arith.constant 0 : index
    %c1_358 = arith.constant 1 : index
    %c0_359 = arith.constant 0 : index
    %c0_360 = arith.constant 0 : index
    %451 = vector.load %arg8[%c0_357, %c1_358, %c0_359, %c0_360] : memref<1x2x1x32xf32, #tpu.memory_space<vmem>>, vector<1x1x1x32xf32>
    %452 = vector.shape_cast %451 : vector<1x1x1x32xf32> to vector<1x32xf32>
    %453 = vector.broadcast %452 : vector<1x32xf32> to vector<10x32xf32>
    %454 = arith.addf %450, %453 : vector<10x32xf32>
    %455 = arith.addf %401, %454 : vector<10x32xf32>
    %c0_361 = arith.constant 0 : index
    %c0_362 = arith.constant 0 : index
    %c0_363 = arith.constant 0 : index
    %456 = vector.load %arg11[%c0_361, %c0_362, %c0_363] : memref<1x1x32xf32, #tpu.memory_space<vmem>>, vector<1x1x32xf32>
    %457 = vector.shape_cast %456 : vector<1x1x32xf32> to vector<1x32xf32>
    %c0_364 = arith.constant 0 : index
    %c0_365 = arith.constant 0 : index
    %c0_366 = arith.constant 0 : index
    %458 = vector.load %arg10[%c0_364, %c0_365, %c0_366] : memref<1x1x32xf32, #tpu.memory_space<vmem>>, vector<1x1x32xf32>
    %459 = vector.shape_cast %458 : vector<1x1x32xf32> to vector<1x32xf32>
    %cst_367 = arith.constant dense<0.000000e+00> : vector<10xf32>
    %460 = vector.multi_reduction <add>, %455, %cst_367 [1] : vector<10x32xf32> to vector<10xf32>
    %461 = vector.shape_cast %460 : vector<10xf32> to vector<10x1xf32>
    %cst_368 = arith.constant 3.200000e+01 : f32
    %462 = vector.broadcast %cst_368 : f32 to vector<10x1xf32>
    %463 = arith.divf %461, %462 : vector<10x1xf32>
    %464 = vector.broadcast %463 : vector<10x1xf32> to vector<10x32xf32>
    %465 = arith.subf %455, %464 : vector<10x32xf32>
    %466 = arith.mulf %465, %465 : vector<10x32xf32>
    %cst_369 = arith.constant dense<0.000000e+00> : vector<10xf32>
    %467 = vector.multi_reduction <add>, %466, %cst_369 [1] : vector<10x32xf32> to vector<10xf32>
    %468 = vector.shape_cast %467 : vector<10xf32> to vector<10x1xf32>
    %cst_370 = arith.constant 3.200000e+01 : f32
    %469 = vector.broadcast %cst_370 : f32 to vector<10x1xf32>
    %470 = arith.divf %468, %469 : vector<10x1xf32>
    %471 = vector.broadcast %463 : vector<10x1xf32> to vector<10x32xf32>
    %472 = arith.subf %455, %471 : vector<10x32xf32>
    %cst_371 = arith.constant 9.99999974E-6 : f32
    %473 = vector.broadcast %cst_371 : f32 to vector<10x1xf32>
    %474 = arith.addf %470, %473 : vector<10x1xf32>
    %475 = math.rsqrt %474 : vector<10x1xf32>
    %476 = vector.broadcast %475 : vector<10x1xf32> to vector<10x32xf32>
    %477 = arith.mulf %472, %476 : vector<10x32xf32>
    %478 = vector.broadcast %457 : vector<1x32xf32> to vector<10x32xf32>
    %479 = arith.mulf %477, %478 : vector<10x32xf32>
    %480 = vector.broadcast %459 : vector<1x32xf32> to vector<10x32xf32>
    %481 = arith.addf %479, %480 : vector<10x32xf32>
    %c0_372 = arith.constant 0 : index
    %c0_373 = arith.constant 0 : index
    %482 = vector.load %arg3[%c0_372, %c0_373] : memref<2x10xf32, #tpu.memory_space<vmem>>, vector<2x10xf32>
    %cst_374 = arith.constant dense<0.000000e+00> : vector<2x32xf32>
    %483 = tpu.matmul %482, %481, %cst_374 {dimension_numbers = #tpu.dot_dimension_numbers<[1], [0], [0], [1], [0, 0, 1, 1], [], []>} : vector<2x10xf32>, vector<10x32xf32>, vector<2x32xf32> -> vector<2x32xf32>
    %c0_375 = arith.constant 0 : index
    %c0_376 = arith.constant 0 : index
    %484 = vector.load %arg4[%c0_375, %c0_376] : memref<2x10xf32, #tpu.memory_space<vmem>>, vector<2x10xf32>
    %cst_377 = arith.constant dense<0.000000e+00> : vector<2x32xf32>
    %485 = tpu.matmul %484, %481, %cst_377 {dimension_numbers = #tpu.dot_dimension_numbers<[1], [0], [0], [1], [0, 0, 1, 1], [], []>} : vector<2x10xf32>, vector<10x32xf32>, vector<2x32xf32> -> vector<2x32xf32>
    %c0_378 = arith.constant 0 : index
    %c0_379 = arith.constant 0 : index
    %c0_380 = arith.constant 0 : index
    %486 = vector.load %arg31[%c0_378, %c0_379, %c0_380] : memref<1x2x32xf32, #tpu.memory_space<vmem>>, vector<1x2x32xf32>
    %487 = vector.shape_cast %486 : vector<1x2x32xf32> to vector<2x32xf32>
    %488 = vector.shape_cast %485 : vector<2x32xf32> to vector<1x2x32xf32>
    tpu.vector_store %arg31[%c0_378, %c0_379, %c0_380], %488 {strides = array<i32>} : memref<1x2x32xf32, #tpu.memory_space<vmem>>, vector<1x2x32xf32>,
    %c0_381 = arith.constant 0 : index
    %c0_382 = arith.constant 0 : index
    %c0_383 = arith.constant 0 : index
    %489 = vector.load %arg13[%c0_381, %c0_382, %c0_383] : memref<1x32x128xf32, #tpu.memory_space<vmem>>, vector<1x32x128xf32>
    %490 = vector.shape_cast %489 : vector<1x32x128xf32> to vector<32x128xf32>
    %cst_384 = arith.constant dense<0.000000e+00> : vector<2x128xf32>
    %491 = tpu.matmul %483, %490, %cst_384 {dimension_numbers = #tpu.dot_dimension_numbers<[1], [0], [0], [1], [0, 0, 1, 1], [], []>} : vector<2x32xf32>, vector<32x128xf32>, vector<2x128xf32> -> vector<2x128xf32>
    %c0_385 = arith.constant 0 : index
    %c0_386 = arith.constant 0 : index
    %c0_387 = arith.constant 0 : index
    %492 = vector.load %arg12[%c0_385, %c0_386, %c0_387] : memref<1x1x128xf32, #tpu.memory_space<vmem>>, vector<1x1x128xf32>
    %493 = vector.shape_cast %492 : vector<1x1x128xf32> to vector<1x128xf32>
    %494 = vector.broadcast %493 : vector<1x128xf32> to vector<2x128xf32>
    %495 = arith.addf %491, %494 : vector<2x128xf32>
    %c0_388 = arith.constant 0 : index
    %c0_389 = arith.constant 0 : index
    %c0_390 = arith.constant 0 : index
    %496 = vector.load %arg30[%c0_388, %c0_389, %c0_390] : memref<1x2x128xf32, #tpu.memory_space<vmem>>, vector<1x2x128xf32>
    %497 = vector.shape_cast %496 : vector<1x2x128xf32> to vector<2x128xf32>
    %498 = vector.shape_cast %495 : vector<2x128xf32> to vector<1x2x128xf32>
    tpu.vector_store %arg30[%c0_388, %c0_389, %c0_390], %498 {strides = array<i32>} : memref<1x2x128xf32, #tpu.memory_space<vmem>>, vector<1x2x128xf32>,
    return
  }
  func.func @transform_0(%arg0: i32) -> (i32, i32) {
    %c0_i32 = arith.constant 0 : i32
    %c0_i32_0 = arith.constant 0 : i32
    %c0_i32_1 = arith.constant 0 : i32
    return %c0_i32, %c0_i32_0 : i32, i32
  }
  func.func @transform_1(%arg0: i32) -> (i32, i32) {
    %c0_i32 = arith.constant 0 : i32
    %c0_i32_0 = arith.constant 0 : i32
    %c0_i32_1 = arith.constant 0 : i32
    return %c0_i32, %c0_i32_0 : i32, i32
  }
  func.func @transform_2(%arg0: i32) -> (i32, i32) {
    %c0_i32 = arith.constant 0 : i32
    %c0_i32_0 = arith.constant 0 : i32
    %c0_i32_1 = arith.constant 0 : i32
    return %c0_i32, %c0_i32_0 : i32, i32
  }
  func.func @transform_3(%arg0: i32) -> (i32, i32) {
    %c0_i32 = arith.constant 0 : i32
    %c0_i32_0 = arith.constant 0 : i32
    %c0_i32_1 = arith.constant 0 : i32
    return %c0_i32, %c0_i32_0 : i32, i32
  }
  func.func @transform_4(%arg0: i32) -> (i32, i32, i32) {
    %c0_i32 = arith.constant 0 : i32
    %c0_i32_0 = arith.constant 0 : i32
    %c0_i32_1 = arith.constant 0 : i32
    return %arg0, %c0_i32, %c0_i32_0 : i32, i32, i32
  }
  func.func @transform_5(%arg0: i32) -> (i32, i32, i32, i32) {
    %c0_i32 = arith.constant 0 : i32
    %c0_i32_0 = arith.constant 0 : i32
    %c0_i32_1 = arith.constant 0 : i32
    %c0_i32_2 = arith.constant 0 : i32
    return %arg0, %c0_i32, %c0_i32_0, %c0_i32_1 : i32, i32, i32, i32
  }
  func.func @transform_6(%arg0: i32) -> (i32, i32, i32, i32) {
    %c0_i32 = arith.constant 0 : i32
    %c0_i32_0 = arith.constant 0 : i32
    %c0_i32_1 = arith.constant 0 : i32
    %c0_i32_2 = arith.constant 0 : i32
    return %arg0, %c0_i32, %c0_i32_0, %c0_i32_1 : i32, i32, i32, i32
  }
  func.func @transform_7(%arg0: i32) -> (i32, i32, i32, i32) {
    %c0_i32 = arith.constant 0 : i32
    %c0_i32_0 = arith.constant 0 : i32
    %c0_i32_1 = arith.constant 0 : i32
    %c0_i32_2 = arith.constant 0 : i32
    return %arg0, %c0_i32, %c0_i32_0, %c0_i32_1 : i32, i32, i32, i32
  }
  func.func @transform_8(%arg0: i32) -> (i32, i32, i32, i32) {
    %c0_i32 = arith.constant 0 : i32
    %c0_i32_0 = arith.constant 0 : i32
    %c0_i32_1 = arith.constant 0 : i32
    %c0_i32_2 = arith.constant 0 : i32
    return %arg0, %c0_i32, %c0_i32_0, %c0_i32_1 : i32, i32, i32, i32
  }
  func.func @transform_9(%arg0: i32) -> (i32, i32, i32) {
    %c0_i32 = arith.constant 0 : i32
    %c0_i32_0 = arith.constant 0 : i32
    %c0_i32_1 = arith.constant 0 : i32
    return %arg0, %c0_i32, %c0_i32_0 : i32, i32, i32
  }
  func.func @transform_10(%arg0: i32) -> (i32, i32, i32) {
    %c0_i32 = arith.constant 0 : i32
    %c0_i32_0 = arith.constant 0 : i32
    %c0_i32_1 = arith.constant 0 : i32
    return %arg0, %c0_i32, %c0_i32_0 : i32, i32, i32
  }
  func.func @transform_11(%arg0: i32) -> (i32, i32, i32) {
    %c0_i32 = arith.constant 0 : i32
    %c0_i32_0 = arith.constant 0 : i32
    %c0_i32_1 = arith.constant 0 : i32
    return %arg0, %c0_i32, %c0_i32_0 : i32, i32, i32
  }
  func.func @transform_12(%arg0: i32) -> (i32, i32, i32) {
    %c0_i32 = arith.constant 0 : i32
    %c0_i32_0 = arith.constant 0 : i32
    %c0_i32_1 = arith.constant 0 : i32
    return %arg0, %c0_i32, %c0_i32_0 : i32, i32, i32
  }
  func.func @transform_13(%arg0: i32) -> (i32, i32, i32, i32, i32) {
    %c0_i32 = arith.constant 0 : i32
    %c0_i32_0 = arith.constant 0 : i32
    %c0_i32_1 = arith.constant 0 : i32
    %c0_i32_2 = arith.constant 0 : i32
    %c0_i32_3 = arith.constant 0 : i32
    return %arg0, %c0_i32, %c0_i32_0, %c0_i32_1, %c0_i32_2 : i32, i32, i32, i32, i32
  }
  func.func @transform_14(%arg0: i32) -> (i32, i32, i32, i32) {
    %c0_i32 = arith.constant 0 : i32
    %c0_i32_0 = arith.constant 0 : i32
    %c0_i32_1 = arith.constant 0 : i32
    %c0_i32_2 = arith.constant 0 : i32
    return %arg0, %c0_i32, %c0_i32_0, %c0_i32_1 : i32, i32, i32, i32
  }
  func.func @transform_15(%arg0: i32) -> (i32, i32, i32, i32) {
    %c0_i32 = arith.constant 0 : i32
    %c0_i32_0 = arith.constant 0 : i32
    %c0_i32_1 = arith.constant 0 : i32
    %c0_i32_2 = arith.constant 0 : i32
    return %arg0, %c0_i32, %c0_i32_0, %c0_i32_1 : i32, i32, i32, i32
  }
  func.func @transform_16(%arg0: i32) -> (i32, i32, i32, i32) {
    %c0_i32 = arith.constant 0 : i32
    %c0_i32_0 = arith.constant 0 : i32
    %c0_i32_1 = arith.constant 0 : i32
    %c0_i32_2 = arith.constant 0 : i32
    return %arg0, %c0_i32, %c0_i32_0, %c0_i32_1 : i32, i32, i32, i32
  }
  func.func @transform_17(%arg0: i32) -> (i32, i32, i32, i32) {
    %c0_i32 = arith.constant 0 : i32
    %c0_i32_0 = arith.constant 0 : i32
    %c0_i32_1 = arith.constant 0 : i32
    %c0_i32_2 = arith.constant 0 : i32
    return %arg0, %c0_i32, %c0_i32_0, %c0_i32_1 : i32, i32, i32, i32
  }
  func.func @transform_18(%arg0: i32) -> (i32, i32, i32, i32) {
    %c0_i32 = arith.constant 0 : i32
    %c0_i32_0 = arith.constant 0 : i32
    %c0_i32_1 = arith.constant 0 : i32
    %c0_i32_2 = arith.constant 0 : i32
    return %arg0, %c0_i32, %c0_i32_0, %c0_i32_1 : i32, i32, i32, i32
  }
  func.func @transform_19(%arg0: i32) -> (i32, i32, i32, i32) {
    %c0_i32 = arith.constant 0 : i32
    %c0_i32_0 = arith.constant 0 : i32
    %c0_i32_1 = arith.constant 0 : i32
    %c0_i32_2 = arith.constant 0 : i32
    return %arg0, %c0_i32, %c0_i32_0, %c0_i32_1 : i32, i32, i32, i32
  }
  func.func @transform_20(%arg0: i32) -> (i32, i32, i32) {
    %c0_i32 = arith.constant 0 : i32
    %c0_i32_0 = arith.constant 0 : i32
    %c0_i32_1 = arith.constant 0 : i32
    return %arg0, %c0_i32, %c0_i32_0 : i32, i32, i32
  }
  func.func @transform_21(%arg0: i32) -> (i32, i32, i32) {
    %c0_i32 = arith.constant 0 : i32
    %c0_i32_0 = arith.constant 0 : i32
    %c0_i32_1 = arith.constant 0 : i32
    return %arg0, %c0_i32, %c0_i32_0 : i32, i32, i32
  }
  func.func @transform_22(%arg0: i32) -> (i32, i32, i32) {
    %c0_i32 = arith.constant 0 : i32
    %c0_i32_0 = arith.constant 0 : i32
    %c0_i32_1 = arith.constant 0 : i32
    return %arg0, %c0_i32, %c0_i32_0 : i32, i32, i32
  }
  func.func @transform_23(%arg0: i32) -> (i32, i32, i32) {
    %c0_i32 = arith.constant 0 : i32
    %c0_i32_0 = arith.constant 0 : i32
    %c0_i32_1 = arith.constant 0 : i32
    return %arg0, %c0_i32, %c0_i32_0 : i32, i32, i32
  }
  func.func @transform_24(%arg0: i32) -> (i32, i32, i32) {
    %c0_i32 = arith.constant 0 : i32
    %c0_i32_0 = arith.constant 0 : i32
    %c0_i32_1 = arith.constant 0 : i32
    return %arg0, %c0_i32, %c0_i32_0 : i32, i32, i32
  }
  func.func @transform_25(%arg0: i32) -> (i32, i32, i32) {
    %c0_i32 = arith.constant 0 : i32
    %c0_i32_0 = arith.constant 0 : i32
    %c0_i32_1 = arith.constant 0 : i32
    return %arg0, %c0_i32, %c0_i32_0 : i32, i32, i32
  }
  func.func @transform_26(%arg0: i32) -> (i32, i32, i32, i32, i32) {
    %c0_i32 = arith.constant 0 : i32
    %c0_i32_0 = arith.constant 0 : i32
    %c0_i32_1 = arith.constant 0 : i32
    %c0_i32_2 = arith.constant 0 : i32
    %c0_i32_3 = arith.constant 0 : i32
    return %arg0, %c0_i32, %c0_i32_0, %c0_i32_1, %c0_i32_2 : i32, i32, i32, i32, i32
  }
  func.func @transform_27(%arg0: i32) -> (i32, i32, i32) {
    %c0_i32 = arith.constant 0 : i32
    %c0_i32_0 = arith.constant 0 : i32
    %c0_i32_1 = arith.constant 0 : i32
    return %arg0, %c0_i32, %c0_i32_0 : i32, i32, i32
  }
  func.func @transform_28(%arg0: i32) -> (i32, i32, i32, i32, i32) {
    %c0_i32 = arith.constant 0 : i32
    %c0_i32_0 = arith.constant 0 : i32
    %c0_i32_1 = arith.constant 0 : i32
    %c0_i32_2 = arith.constant 0 : i32
    %c0_i32_3 = arith.constant 0 : i32
    return %arg0, %c0_i32, %c0_i32_0, %c0_i32_1, %c0_i32_2 : i32, i32, i32, i32, i32
  }
  func.func @transform_29(%arg0: i32) -> (i32, i32, i32) {
    %c0_i32 = arith.constant 0 : i32
    %c0_i32_0 = arith.constant 0 : i32
    %c0_i32_1 = arith.constant 0 : i32
    return %arg0, %c0_i32, %c0_i32_0 : i32, i32, i32
  }
  func.func @transform_30(%arg0: i32) -> (i32, i32, i32) {
    %c0_i32 = arith.constant 0 : i32
    %c0_i32_0 = arith.constant 0 : i32
    %c0_i32_1 = arith.constant 0 : i32
    return %arg0, %c0_i32, %c0_i32_0 : i32, i32, i32
  }
}

</mosaic_0001>

<bundles_post_ra>
// kernel: distill_wrapper_forward.3
= control target key start
LH: loop header
LB: loop body
LE: loop exit
PB: predicated region body
PF: predicated region fallthrough
CT: control target
= control target key end

     0   :  { %v281_v3 = vmov 0.0|0.0   ;;  %vm282_vm0 = vmmov 0   ;;  %v283_v6 = vmov 0.0   ;;  %s386_s0 = inlined_call_operand.vmem [shape: f32[2,2,128], index: 0, kind: input, shape index: {}]   ;;  %s387_s1 = inlined_call_operand.vmem [shape: f32[2,2,32], index: 1, kind: input, shape index: {}]   ;;  %s388_s2 = inlined_call_operand.vmem [shape: f32[32,128], index: 2, kind: input, shape index: {}]   ;;  %s389_s3 = inlined_call_operand.vmem [shape: f32[1,128], index: 3, kind: input, shape index: {}]   ;;  %s390_s4 = inlined_call_operand.vmem [shape: f32[2,128], index: 4, kind: input, shape index: {}]   ;;  %s391_s5 = inlined_call_operand.vmem [shape: f32[1,128], index: 5, kind: input, shape index: {}]   ;;  %s392_s6 = inlined_call_operand.hbm [shape: f32[1,128], index: 6, kind: output, shape index: {}]  }
   0x1   :  { %v31_v0 = vld [vmem:[%s388_s2] sm:$0xff]  ;;  %v32_v1 = vld [vmem:[%s388_s2 + $0x8] sm:$0xff]  ;;  %v33_v2 = vld [vmem:[%s388_s2 + $0x10] sm:$0xff]  ;;  %232 = vmatprep.subr.bf16.mxu0 %v281_v3  ;;  %229 = vmatprep.mubr.msk.f32.mxu0 %vm282_vm0, %v283_v6 }
   0x2   :  { %v233_v4 = vpack.c.bf16 %v32_v1, %v31_v0  ;;  %v34_v5 = vld [vmem:[%s388_s2 + $0x18] sm:$0xff] }
   0x3   :  { %11 = vsyncpa [#allocation3], 0  ;;  %v236_v7 = vpack.c.bf16 %v34_v5, %v33_v2  ;;  %v213_v8 = vld [vmem:[%s387_s1 + $0x2] sm:$0x3]  ;;  %vm42_vm1 = vcmask 261120   ;;  %v117_v9 = vlaneseq  ;;  %v284_v13 = vmov 0  }
   0x4   :  { %234 = vmatpush3.bf16.msra.mxu0 %v233_v4  ;;  %v24_v11 = vld [vmem:[%s391_s5] sm:$0x1]  ;;  %vm123_vm4 = vcmask 1041408   ;;  %v212_v21 = vld [vmem:[%s386_s0 + $0x2] sm:$0x3] }
   0x5   :  { %235 = vmatprep.subr.bf16.mxu0 %v281_v3  ;;  %v118_v10 = vshrl.u32 %v117_v9, 7  ;;  %vm25_vm2 = vcmp.gt.f32.partialorder %v24_v11, 0.5  ;;  %v26_v16 = vld [vmem:[%s386_s0] sm:$0x3] }
   0x6   :  { %v116_v14 = vsel %vm25_vm2, 1, %v284_v13  ;;  %v214_v19 = vld [vmem:[%s389_s3] ss:$0 sm:$0xff] }
   0x7   :  { %v119_v12 = vsub.s32 0, %v118_v10  ;;  %v137_v59 = vld [vmem:[%s390_s4] sm:$0x3]  ;;  %s285_s4 = smov [#allocation2]  }
   0x8   :  { %237 = vmatpush3.bf16.msra.mxu0 %v236_v7  ;;  %s204_s12 = sshll.u32 %s285_s4, 4  ;;  %s205_s12 = int_to_ptr.vmem [resolvable:$true] %s204_s12 }
   0x9   :  { %v339_v15 = vrot.slane %v116_v14, %v119_v12  ;;  %s257_s13 = scalar_lea.vmem %s205_s12, 16  ;;  %s261_s14 = scalar_lea.vmem %s205_s12, 32 }
   0xa   :  { %p258_p0 = scmp.ne.s32.totalorder %s205_s12, %s257_s13  ;;  %p262_p1 = scmp.lt.s32.totalorder %s205_s12, %s205_s12 }
   0xb   :  { %230 = vmatmul.mubr.msk.f32.vlgmr.msra.gmra.mrb[0].mxu0 %vm42_vm1, %v213_v8  ;;  %vm121_vm3 = vcmp.eq.s32.totalorder %v339_v15, 1  ;;  %p263_p2 = scmp.lt.s32.totalorder %s261_s14, %s257_s13 }
   0xc   :  { %v151_v17 = vsel %vm121_vm3, %v26_v16, -1e+30  ;;  %v122_v25 = vsel %vm121_vm3, %v212_v21, -1e+30 }
   0xd   :  { %v152_v18 = vsel %vm123_vm4, %v151_v17, -inf  ;;  %v124_v27 = vsel %vm123_vm4, %v122_v25, -inf  ;;  %p264_p3 = por %p263_p2, %p262_p1 }
   0xe   :  { %153 = vmax.xlane.f32.xlu1 %v152_v18 }
   0xf   :  { %p265_p4 = pnand %p264_p3, %p258_p0 }
  0x9b   :  { %v154_v28 = vpop.xlane.xlu1 %153 }
  0x9c   :  { %v155_v29 = vsub.f32 %v151_v17, %v154_v28 }
  0x9e   :  { %v156_v31 = vmul.f32 1.442695, %v155_v29 }
  0xa0   :  { %243 = vpow2.f32 %v156_v31 }
  0xaa   :  { %v244_v37 = vpop.eup %243 }
  0xab   :  { %v158_v40 = vsel %vm123_vm4, %v244_v37, 0.0 }
  0xde   :  { %v112_v20 = vpop.f32.mrb[0].mxu0 }
  0xdf   :  { %v113_v22 = vadd.f32 %v214_v19, %v112_v20  ;;  %v231_v23 = vpop.f32.mrb[1].mxu0 }
  0xe1   :  { %v166_v24 = vsel %vm121_vm3, %v113_v22, -1e+30 }
  0xe2   :  { %v167_v26 = vsel %vm123_vm4, %v166_v24, -inf }
  0xe3   :  { %168 = vmax.xlane.f32.xlu0 %v167_v26 }
  0xe7   :  { %125 = vmax.xlane.f32.xlu0 %v124_v27 }
 0x170   :  { %v169_v30 = vpop.xlane.xlu0 %168 }
 0x171   :  { %v170_v32 = vsub.f32 %v166_v24, %v169_v30 }
 0x173   :  { %v171_v33 = vmul.f32 1.442695, %v170_v32 }
 0x174   :  { %v126_v34 = vpop.xlane.xlu0 %125 }
 0x175   :  { %245 = vpow2.f32 %v171_v33  ;;  %v127_v35 = vsub.f32 %v122_v25, %v126_v34 }
 0x177   :  { %v128_v36 = vmul.f32 1.442695, %v127_v35 }
 0x179   :  { %247 = vpow2.f32 %v128_v36 }
 0x17f   :  { %v246_v38 = vpop.eup %245 }
 0x180   :  { %v173_v39 = vsel %vm123_vm4, %v246_v38, 0.0 }
 0x181   :  { %174 = vadd.xlane.f32.xlu1 %v173_v39 }
 0x183   :  { %v248_v41 = vpop.eup %247 }
 0x184   :  { %v130_v42 = vsel %vm123_vm4, %v248_v41, 0.0 }
 0x185   :  { %159 = vadd.xlane.f32.xlu1 %v158_v40  ;;  %131 = vadd.xlane.f32.xlu0 %v130_v42 }
 0x20e   :  { %v175_v43 = vpop.xlane.xlu1 %174 }
 0x20f   :  { %249 = vlog2.f32 %v175_v43 }
 0x212   :  { %v160_v44 = vpop.xlane.xlu1 %159  ;;  %v132_v45 = vpop.xlane.xlu0 %131 }
 0x213   :  { %251 = vlog2.f32 %v160_v44 }
 0x214   :  { %253 = vlog2.f32 %v132_v45 }
 0x215   :  { %255 = vrcp.f32 %v160_v44 }
 0x219   :  { %v250_v46 = vpop.eup %249 }
 0x21a   :  { %v177_v47 = vmul.f32 0.6931472, %v250_v46 }
 0x21c   :  { %v178_v48 = vadd.f32 %v177_v47, %v169_v30 }
 0x21d   :  { %v252_v49 = vpop.eup %251 }
 0x21e   :  { %v254_v50 = vpop.eup %253  ;;  %v164_v51 = vmul.f32 0.6931472, %v252_v49  ;;  %v179_v54 = vsub.f32 %v166_v24, %v178_v48 }
 0x21f   :  { %v256_v52 = vpop.eup %255  ;;  %v134_v53 = vmul.f32 0.6931472, %v254_v50 }
 0x220   :  { %v165_v55 = vsub.f32 %v155_v29, %v164_v51  ;;  %v162_v57 = vmul.f32 %v256_v52, %v244_v37 }
 0x221   :  { %v135_v56 = vadd.f32 %v134_v53, %v126_v34 }
 0x222   :  { %v180_v58 = vsub.f32 %v165_v55, %v179_v54 }
 0x223   :  { %v136_v60 = vsub.f32 %v122_v25, %v135_v56 }
 0x224   :  { %v181_v61 = vmul.f32 %v180_v58, %v162_v57 }
 0x225   :  { %v138_v62 = vmul.f32 %v137_v59, %v136_v60 }
 0x226   :  { %v182_v63 = vsel %vm121_vm3, %v181_v61, 0.0 }
 0x227   :  { %v183_v0 = vsel %vm123_vm4, %v182_v63, 0.0  ;;  %v139_v1 = vsel %vm121_vm3, %v138_v62, 0.0 }
 0x228   :  { %184 = vadd.xlane.f32.xlu1 %v183_v0  ;;  %v140_v2 = vsel %vm123_vm4, %v139_v1, 0.0 }
 0x229   :  { %141 = vadd.xlane.f32.xlu0 %v140_v2 }
 0x2b5   :  { %v185_v3 = vpop.xlane.xlu1 %184 }
 0x2b6   :  { %v186_v4 = vsel %vm123_vm4, %v185_v3, 0.0  ;;  %v142_v5 = vpop.xlane.xlu0 %141 }
 0x2b7   :  { %v187_v6 = vrot.slane %v186_v4, 4  ;;  %v143_v7 = vsel %vm123_vm4, %v142_v5, 0.0 }
 0x2b8   :  { %v144_v8 = vrot.slane %v143_v7, 4 }
 0x2b9   :  { %v188_v9 = vadd.f32 %v187_v6, %v186_v4 }
 0x2ba   :  { %v145_v10 = vadd.f32 %v144_v8, %v143_v7 }
 0x2bb   :  { %v189_v11 = vrot.slane %v188_v9, 2 }
 0x2bc   :  { %v146_v12 = vrot.slane %v145_v10, 2 }
 0x2bd   :  { %v190_v13 = vadd.f32 %v189_v11, %v188_v9 }
 0x2be   :  { %v147_v14 = vadd.f32 %v146_v12, %v145_v10 }
 0x2bf   :  { %v191_v15 = vrot.slane %v190_v13, 1 }
 0x2c0   :  { %v148_v16 = vrot.slane %v147_v14, 1 }
 0x2c1   :  { %v192_v17 = vadd.f32 %v191_v15, %v190_v13 }
 0x2c2   :  { %v149_v18 = vadd.f32 %v148_v16, %v147_v14 }
 0x2c3   :  { %v193_v19 = vmul.f32 0.5, %v192_v17 }
 0x2c4   :  { %v150_v20 = vmul.f32 -0.5, %v149_v18 }
 0x2c5   :  { %v195_v21 = vmul.f32 0.5, %v193_v19 }
 0x2c6   :  { %v194_v22 = vmul.f32 0.5, %v150_v20 }
 0x2c8   :  { %v196_v23 = vadd.f32 %v195_v21, %v194_v22 }
 0x2ca   :  { %197 = vst [vmem:[#allocation2] sm:$0x1] %v196_v23 }
 0x2cb   :  { %268 = shalt.err (!%p265_p4)
}
 0x2cc   :  { %s269_s17 = scalar_lea.hbm %s392_s6, 16 }
 0x2cd   :  { %p270_p5 = scmp.ne.s32.totalorder %s392_s6, %s269_s17  ;;  %p273_p6 = scmp.lt.u32.totalorder %s269_s17, %s392_s6 }
 0x2cf   :  { %p275_p7 = pnand %p273_p6, %p270_p5 }
 0x2d1   :  { %278 = shalt.err (!%p275_p7)
}
 0x2d2   :  { %207 = dma.vmem_to_hbm [thread:$0]  %s205_s12, 16, %s392_s6, [#allocation3]  }
 0x2d3   :  { %279 = dma.done.wait [#allocation3], 16  }
 0x2d4   :  { %280 = vsyncadd [#allocation3], 4294967280 }
 0x2d5   :  { %211 = vsyncpa [#allocation3], 1 }

// kernel: distill_wrapper_forward.2
= control target key start
LH: loop header
LB: loop body
LE: loop exit
PB: predicated region body
PF: predicated region fallthrough
CT: control target
= control target key end

     0   :  { %s8713_s6 = smov 1   ;;  %s8714_s10 = smov 2   ;;  %s9615_s0 = inlined_call_operand.smem [shape: u32[31], index: -1, kind: input, shape index: {}] }
   0x1   :  { %s8756_s5 = sld [smem:[%s9615_s0]]   ;;  %s8715_s14 = smov 3  }
   0x2   :  { %s8761_s9 = sld [smem:[%s9615_s0 + %s8713_s6]]   ;;  %s8716_s18 = smov 4  }
   0x3   :  { %s8766_s13 = sld [smem:[%s9615_s0 + %s8714_s10]]   ;;  %s8717_s22 = smov 5  }
   0x4   :  { %s8771_s17 = sld [smem:[%s9615_s0 + %s8715_s14]]   ;;  %s8718_s26 = smov 6  }
   0x5   :  { %s8776_s21 = sld [smem:[%s9615_s0 + %s8716_s18]]   ;;  %s8719_s30 = smov 7  }
   0x6   :  { %s8781_s25 = sld [smem:[%s9615_s0 + %s8717_s22]]   ;;  %s8720_s4 = smov 8  }
   0x7   :  { %9618 = sst [smem:[#allocation2_spill]] %s8756_s5  ;;  %s8721_s10 = smov 9  }
   0x8   :  { %s8786_s29 = sld [smem:[%s9615_s0 + %s8718_s26]]   ;;  %s8722_s15 = smov 10  }
   0x9   :  { %9619 = sst [smem:[#allocation3_spill]] %s8766_s13  ;;  %s8723_s20 = smov 11  }
   0xa   :  { %9620 = sst [smem:[#allocation4_spill]] %s8771_s17  ;;  %s8724_s26 = smov 12  }
   0xb   :  { %s8791_s3 = sld [smem:[%s9615_s0 + %s8719_s30]]   ;;  %s8725_s1 = smov 13  }
   0xc   :  { %9621 = sst [smem:[#allocation5_spill]] %s8781_s25  ;;  %s8726_s7 = smov 14  }
   0xd   :  { %s8796_s8 = sld [smem:[%s9615_s0 + %s8720_s4]]   ;;  %s8728_s22 = smov 16  }
   0xe   :  { %9622 = sst [smem:[#allocation6_spill]] %s8786_s29  ;;  %s8729_s28 = smov 17  }
   0xf   :  { %s8801_s14 = sld [smem:[%s9615_s0 + %s8721_s10]]  }
  0x10   :  { %s8806_s19 = sld [smem:[%s9615_s0 + %s8722_s15]]   ;;  %s8727_s15 = smov 15  }
  0x11   :  { %9623 = sst [smem:[#allocation7_spill]] %s8791_s3 }
  0x12   :  { %s8811_s24 = sld [smem:[%s9615_s0 + %s8723_s20]]  }
  0x13   :  { %9624 = sst [smem:[#allocation8_spill]] %s8796_s8 }
  0x14   :  { %s8816_s30 = sld [smem:[%s9615_s0 + %s8724_s26]]  }
  0x15   :  { %9625 = sst [smem:[#allocation9_spill]] %s8801_s14 }
  0x16   :  { %9626 = sst [smem:[#allocation10_spill]] %s8806_s19 }
  0x17   :  { %s8821_s6 = sld [smem:[%s9615_s0 + %s8725_s1]]  }
  0x18   :  { %9627 = sst [smem:[#allocation11_spill]] %s8811_s24 }
  0x19   :  { %s8826_s12 = sld [smem:[%s9615_s0 + %s8726_s7]]   ;;  %s8730_s7 = smov 18  }
  0x1a   :  { %9628 = sst [smem:[#allocation12_spill]] %s8816_s30 }
  0x1b   :  { %s8831_s20 = sld [smem:[%s9615_s0 + %s8727_s15]]   ;;  %s8731_s15 = smov 19  }
  0x1c   :  { %s8836_s27 = sld [smem:[%s9615_s0 + %s8728_s22]]   ;;  %s8732_s22 = smov 20  }
  0x1d   :  { %9629 = sst [smem:[#allocation13_spill]] %s8821_s6 }
  0x1e   :  { %s8841_s4 = sld [smem:[%s9615_s0 + %s8729_s28]]   ;;  %s8733_s28 = smov 21  }
  0x1f   :  { %s8846_s24 = sld [smem:[%s9615_s0 + %s8730_s7]]   ;;  %s8734_s7 = smov 22  }
  0x20   :  { %s8851_s17 = sld [smem:[%s9615_s0 + %s8731_s15]]   ;;  %s8735_s15 = smov 23  }
  0x21   :  { %s8856_s13 = sld [smem:[%s9615_s0 + %s8732_s22]]   ;;  %s8736_s22 = smov 24  }
  0x22   :  { %9630 = sst [smem:[#allocation14_spill]] %s8836_s27 }
  0x23   :  { %s8861_s30 = sld [smem:[%s9615_s0 + %s8733_s28]]   ;;  %s8737_s28 = smov 25  }
  0x24   :  { %9631 = sst [smem:[#allocation15_spill]] %s8841_s4 }
  0x25   :  { %9632 = sst [smem:[#allocation16_spill]] %s8846_s24 }
  0x26   :  { %s8866_s14 = sld [smem:[%s9615_s0 + %s8734_s7]]   ;;  %s8738_s7 = smov 26  }
  0x27   :  { %s8871_s19 = sld [smem:[%s9615_s0 + %s8735_s15]]   ;;  %s8739_s15 = smov 27  }
  0x28   :  { %s8876_s3 = sld [smem:[%s9615_s0 + %s8736_s22]]   ;;  %s8740_s22 = smov 28  }
  0x29   :  { %s8881_s25 = sld [smem:[%s9615_s0 + %s8737_s28]]   ;;  %s8741_s28 = smov 29  }
  0x2a   :  { %s8886_s8 = sld [smem:[%s9615_s0 + %s8738_s7]]   ;;  %s8742_s7 = smov 30  }
  0x2b   :  { %s8891_s27 = sld [smem:[%s9615_s0 + %s8739_s15]]   ;;  %s8908_s15 = smov 0  }
  0x2c   :  { %s8896_s4 = sld [smem:[%s9615_s0 + %s8740_s22]]  }
  0x2d   :  { %s8901_s29 = sld [smem:[%s9615_s0 + %s8741_s28]]  }
  0x2e   :  { %9633 = sst [smem:[#allocation17_spill]] %s8876_s3 }
  0x2f   :  { %s8906_s24 = sld [smem:[%s9615_s0 + %s8742_s7]]  }
  0x30   :  { %9634 = sst [smem:[#allocation18_spill]] %s8886_s8 }
  0x32   :  { %9635 = sst [smem:[#allocation19_spill]] %s8896_s4 }
  0x33 LB: > { %s9636_s5 = sld [smem:[#allocation2_spill]]  ;;  %s7075_s16 = sadd.s32 4294967295, %s8711_s15   ;;  %s8711_s15 = sphi %s8908_s15, %s72_s15  }
  0x34   : > { %p7079_p0 = scmp.ge.s32.totalorder %s8711_s15, 1  ;;  %p1065_p1 = scmp.lt.s32.totalorder %s8711_s15, 3 }
  0x36   : > { %p1066_p2 = pnand %p7079_p0, %p1065_p1 }
  0x37   : > { %vm1363_vm0 = vcmask (!%p1066_p2), 523264   ;;  %vm1368_vm1 = vcmask (!%p1066_p2), 1041408   ;;  %vm1370_vm2 = vcmask (!%p1066_p2), 517120   ;;  %p1245_p3 = scmp.lt.s32.totalorder (!%p1066_p2), %s7075_s16, 1  ;;  %v8743_v9 = vmov (!%p1066_p2), 0.0|0.0   ;;  %s9637_s3 = sld [smem:[#allocation17_spill]] (!%p1066_p2) }
  0x38   : > { %1069 = sbr.rel (%p1066_p2) target bundleno = 11676 (0x2d9c), region = 136  ;;  %8159 = vmatprep.subr.bf16.mxu0 (!%p1066_p2), %v8743_v9  ;;  %vm1549_vm3 = vcmask (!%p1066_p2), 261120   ;;  %vm1553_vm4 = vcmask (!%p1066_p2), 254976   ;;  %s9638_s8 = sld [smem:[#allocation18_spill]] (!%p1066_p2)  ;;  %vm1901_vm5 = vcmask (!%p1066_p2), 64512   ;;  %vm8745_vm6 = vmmov (!%p1066_p2), 1  }
  0x39   : > { %v1357_v0 = vld [vmem:[%s9636_s5] sm:$0xff] (!%p1066_p2)  ;;  %v1358_v1 = vld [vmem:[%s9636_s5 + $0x8] sm:$0xff] (!%p1066_p2)  ;;  %v1359_v2 = vld [vmem:[%s9636_s5 + $0x10] sm:$0x3] (!%p1066_p2)  ;;  %s9639_s4 = sld [smem:[#allocation19_spill]] (!%p1066_p2)  ;;  %s9640_s6 = sld [smem:[#allocation13_spill]] (!%p1066_p2) }
  0x3a   : > { %v1364_v3 = vsel (!%p1066_p2), %vm1363_vm0, %v1358_v1, 0.0  ;;  %v1360_v4 = vld [vmem:[%s9636_s5 + $0x18] sm:$0x3] (!%p1066_p2)  ;;  %v1369_v5 = vsel (!%p1066_p2), %vm1368_vm1, %v1359_v2, 0.0  ;;  %vm9082_vm7 = vmpackc.low (!%p1066_p2), %vm1368_vm1, %vm8745_vm6  ;;  %vm1993_vm9 = vcmask (!%p1066_p2), 80896   ;;  %vm1997_vm10 = vcmask (!%p1066_p2), 74752  }
  0x3b   : > { %v1365_v6 = vadd.f32 (!%p1066_p2), %v1364_v3, %v1357_v0  ;;  %v1371_v7 = vsel (!%p1066_p2), %vm1370_vm2, %v1360_v4, 0.0  ;;  %vm9093_vm8 = vmpackc.low (!%p1066_p2), %vm1901_vm5, %vm1901_vm5  ;;  %s9649_s5 = sld [smem:[#allocation14_spill]] (!%p1066_p2)  ;;  %vm8746_vm11 = vmmov (!%p1066_p2), 0  }
  0x3c   : > { %v1372_v8 = vadd.f32 (!%p1066_p2), %v1371_v7, %v1369_v5 }
  0x3d   : > { %1366 = vadd.xlane.f32.xlu0 (!%p1066_p2), %v1365_v6 }
  0x3f   : > { %s9660_s16 = smov (!%p1245_p3, %s7075_s16), 1 }
  0x40   : > { %s8557_s0 = smul.u32 192, %s9660_s16  ;;  %s8985_s22 = sshll.u32 %s9660_s16, 1 }
  0x41   : > { %1373 = vadd.xlane.f32.xlu0 %v1372_v8  ;;  %s1322_s23 = scalar_lea.vmem %s8866_s14, %s8985_s22  ;;  %s1318_s26 = scalar_lea.vmem %s8861_s30, %s8985_s22 }
  0x42   : > { %s8928_s18 = scalar_lea.vmem %s8881_s25, %s8557_s0  ;;  %s1314_s28 = scalar_lea.vmem %s8856_s13, %s9660_s16 }
  0x43   : > { %v1435_v10 = vld [vmem:[%s8928_s18] sm:$0xff]  ;;  %v1436_v11 = vld [vmem:[%s8928_s18 + $0x8] sm:$0xff]  ;;  %v1437_v12 = vld [vmem:[%s8928_s18 + $0x10] sm:$0xff]  ;;  %s1328_s1 = scalar_lea.vmem %s9637_s3, %s9660_s16  ;;  %s1325_s2 = scalar_lea.vmem %s8871_s19, %s9660_s16 }
  0x44   : > { %v8160_v13 = vpack.c.bf16 %v1436_v11, %v1435_v10  ;;  %v1438_v14 = vld [vmem:[%s8928_s18 + $0x18] sm:$0xff]  ;;  %v1439_v16 = vld [vmem:[%s8928_s18 + $0x20] sm:$0xff]  ;;  %v1440_v17 = vld [vmem:[%s8928_s18 + $0x28] sm:$0xff]  ;;  %s7374_s7 = sshll.u32 %s9660_s16, 4  ;;  %s7378_s11 = sshll.u32 %s9660_s16, 8 }
  0x45   : > { %v8163_v15 = vpack.c.bf16 %v1438_v14, %v1437_v12  ;;  %v8166_v18 = vpack.c.bf16 %v1440_v17, %v1439_v16  ;;  %v1441_v19 = vld [vmem:[%s8928_s18 + $0x30] sm:$0xff]  ;;  %v1442_v20 = vld [vmem:[%s8928_s18 + $0x38] sm:$0xff]  ;;  %v1443_v22 = vld [vmem:[%s8928_s18 + $0x40] sm:$0xff]  ;;  %s1343_s10 = scalar_lea.vmem %s8891_s27, %s7374_s7  ;;  %s9027_s0 = scalar_lea.vmem %s9638_s8, %s7378_s11 }
  0x46   : > { %8161 = vmatpush1.bf16.msra.mxu0 %v8160_v13  ;;  %v8169_v21 = vpack.c.bf16 %v1442_v20, %v1441_v19  ;;  %v1444_v23 = vld [vmem:[%s8928_s18 + $0x48] sm:$0xff]  ;;  %v1445_v25 = vld [vmem:[%s8928_s18 + $0x50] sm:$0xff]  ;;  %v1446_v26 = vld [vmem:[%s8928_s18 + $0x58] sm:$0xff] }
  0x47   : > { %8162 = vmatprep.subr.bf16.mxu0 %v8743_v9  ;;  %v8172_v24 = vpack.c.bf16 %v1444_v23, %v1443_v22  ;;  %v8175_v27 = vpack.c.bf16 %v1446_v26, %v1445_v25  ;;  %v1447_v45 = vld [vmem:[%s8928_s18 + $0x60] sm:$0xff]  ;;  %v1448_v46 = vld [vmem:[%s8928_s18 + $0x68] sm:$0xff]  ;;  %v1449_v48 = vld [vmem:[%s8928_s18 + $0x70] sm:$0xff] }
  0x48   : > { %v8178_v47 = vpack.c.bf16 %v1448_v46, %v1447_v45  ;;  %v1450_v49 = vld [vmem:[%s8928_s18 + $0x78] sm:$0xff]  ;;  %v1451_v51 = vld [vmem:[%s8928_s18 + $0x80] sm:$0xff]  ;;  %v1452_v52 = vld [vmem:[%s8928_s18 + $0x88] sm:$0xff] }
  0x49   : > { %v8181_v50 = vpack.c.bf16 %v1450_v49, %v1449_v48  ;;  %v8184_v53 = vpack.c.bf16 %v1452_v52, %v1451_v51  ;;  %v1453_v54 = vld [vmem:[%s8928_s18 + $0x90] sm:$0xff]  ;;  %v1454_v55 = vld [vmem:[%s8928_s18 + $0x98] sm:$0xff]  ;;  %v1455_v56 = vld [vmem:[%s8928_s18 + $0xa0] sm:$0xff] }
  0x4a   : > { %8164 = vmatpush1.bf16.msra.mxu0 %v8163_v15  ;;  %v8187_v57 = vpack.c.bf16 %v1454_v55, %v1453_v54  ;;  %v1456_v58 = vld [vmem:[%s8928_s18 + $0xa8] sm:$0xff]  ;;  %v1457_v60 = vld [vmem:[%s8928_s18 + $0xb0] sm:$0xff]  ;;  %v1458_v61 = vld [vmem:[%s8928_s18 + $0xb8] sm:$0xff]  ;;  %s9032_s18 = scalar_lea.vmem %s9639_s4, %s7378_s11  ;;  %s9648_s4 = sld [smem:[#allocation15_spill]] }
  0x4b   : > { %8165 = vmatprep.subr.bf16.mxu0 %v8743_v9  ;;  %v8190_v59 = vpack.c.bf16 %v1456_v58, %v1455_v56  ;;  %v8193_v62 = vpack.c.bf16 %v1458_v61, %v1457_v60  ;;  %v1361_v10 = vld [vmem:[%s1322_s23] sm:$0x3]  ;;  %s9041_s23 = scalar_lea.vmem %s9640_s6, %s7378_s11  ;;  %s9300_s6 = scalar_lea.vmem %s9649_s5, %s8985_s22 }
  0x4c   : > { %v1362_v11 = vld [vmem:[%s1318_s26] sm:$0x3]  ;;  %s9047_s26 = scalar_lea.vmem %s8831_s20, %s8985_s22  ;;  %s9651_s5 = sld [smem:[#allocation5_spill]] }
  0x4d   : > { %v1594_v51 = vld [vmem:[%s8761_s9] sm:$0xff] }
  0x4e   : > { %8167 = vmatpush1.bf16.msra.mxu0 %v8166_v18  ;;  %v7114_v61 = vld [vmem:[%s1325_s2] ss:$0 sm:$0xff]  ;;  %s9616_s2 = sshll.u32 %s9660_s16, 6 }
  0x4f   : > { %8168 = vmatprep.subr.bf16.mxu0 %v8743_v9 }
  0x52   : > { %8170 = vmatpush1.bf16.msra.mxu0 %v8169_v21 }
  0x53   : > { %8171 = vmatprep.subr.bf16.mxu0 %v8743_v9 }
  0x56   : > { %8173 = vmatpush1.bf16.msra.mxu0 %v8172_v24 }
  0x57   : > { %8174 = vmatprep.subr.bf16.mxu0 %v8743_v9 }
  0x5a   : > { %8176 = vmatpush1.bf16.msra.mxu0 %v8175_v27 }
  0x5b   : > { %8177 = vmatprep.subr.bf16.mxu0 %v8743_v9 }
  0x5e   : > { %8179 = vmatpush1.bf16.msra.mxu0 %v8178_v47 }
  0x5f   : > { %8180 = vmatprep.subr.bf16.mxu0 %v8743_v9 }
  0x62   : > { %8182 = vmatpush1.bf16.msra.mxu0 %v8181_v50  ;;  %v1595_v50 = vld [vmem:[%s8761_s9 + $0x8] sm:$0x3] }
  0x63   : > { %8183 = vmatprep.subr.bf16.mxu0 %v8743_v9 }
  0x66   : > { %8185 = vmatpush1.bf16.msra.mxu0 %v8184_v53 }
  0x67   : > { %8186 = vmatprep.subr.bf16.mxu0 %v8743_v9 }
  0x6a   : > { %8188 = vmatpush1.bf16.msra.mxu0 %v8187_v57 }
  0x6b   : > { %8189 = vmatprep.subr.bf16.mxu0 %v8743_v9 }
  0x6e   : > { %8191 = vmatpush1.bf16.msra.mxu0 %v8190_v59  ;;  %v7113_v59 = vld [vmem:[%s1328_s1] ss:$0 sm:$0xff]  ;;  %s9109_s1 = scalar_lea.vmem %s8776_s21, %s7374_s7  ;;  %s9183_s7 = scalar_lea.vmem %s8851_s17, %s9616_s2 }
  0x6f   : > { %8192 = vmatprep.subr.bf16.mxu0 %v8743_v9  ;;  %s9646_s2 = sld [smem:[#allocation6_spill]] }
  0x72   : > { %8194 = vmatpush1.bf16.msra.mxu0 %v8193_v62 }
  0xca   : > { %v1367_v28 = vpop.xlane.xlu0 %1366 }
  0xcb   : > { %v1376_v29 = vmul.f32 0.0052083335, %v1367_v28 }
  0xcd   : > { %v8948_v30 = vsub.f32 %v1357_v0, %v1376_v29  ;;  %v8950_v31 = vsub.f32 %v1358_v1, %v1376_v29  ;;  %v1406_v1 = vlaneseq }
  0xce   : > { %v1374_v32 = vpop.xlane.xlu0 %1373 }
  0xcf   : > { %v1377_v33 = vmul.f32 0.0052083335, %v1374_v32  ;;  %v1382_v34 = vmul.f32 %v8948_v30, %v8948_v30  ;;  %v1383_v35 = vmul.f32 %v8950_v31, %v8950_v31  ;;  %v1407_v5 = vshrl.u32 %v1406_v1, 7 }
  0xd1   : > { %v8956_v36 = vsub.f32 %v1359_v2, %v1377_v33  ;;  %v8958_v37 = vsub.f32 %v1360_v4, %v1377_v33  ;;  %v1386_v38 = vsel %vm1363_vm0, %v1383_v35, 0.0  ;;  %v1408_v7 = vsub.s32 0, %v1407_v5 }
  0xd2   : > { %v1387_v39 = vadd.f32 %v1386_v38, %v1382_v34  ;;  %v1412_v8 = vsub.s32 1, %v1407_v5 }
  0xd3   : > { %v1384_v40 = vmul.f32 %v8956_v36, %v8956_v36  ;;  %v1385_v41 = vmul.f32 %v8958_v37, %v8958_v37  ;;  %v1409_v12 = vrot.slane %v1361_v10, %v1408_v7  ;;  %v1424_v16 = vrot.slane %v1362_v11, %v1408_v7 }
  0xd4   : > { %1388 = vadd.xlane.f32.xlu1 %v1387_v39  ;;  %v1413_v13 = vrot.slane %v1361_v10, %v1412_v8  ;;  %v1428_v17 = vrot.slane %v1362_v11, %v1412_v8  ;;  %v8744_v39 = vmov 0   ;;  %v1609_v10 = vld [vmem:[%s1343_s10 + $0x8] sm:$0x3] }
  0xd5   : > { %v1390_v42 = vsel %vm1368_vm1, %v1384_v40, 0.0  ;;  %v1391_v43 = vsel %vm1370_vm2, %v1385_v41, 0.0  ;;  %8601 = vset.pattern.permute.xlu0 %v8744_v39  ;;  %8602 = vset.pattern.permute.xlu1 %v8744_v39 }
  0xd6   : > { %v1392_v44 = vadd.f32 %v1391_v43, %v1390_v42 }
  0xd8   : > { %1393 = vadd.xlane.f32.xlu1 %v1392_v44 }
 0x161   : > { %v1389_v63 = vpop.xlane.xlu1 %1388 }
 0x162   : > { %v1395_v0 = vmul.f32 0.0052083335, %v1389_v63 }
 0x164   : > { %v1397_v2 = vadd.f32 1e-05, %v1395_v0 }
 0x165   : > { %v1394_v3 = vpop.xlane.xlu1 %1393 }
 0x166   : > { %8603 = vrsqrt.f32 %v1397_v2  ;;  %v1396_v4 = vmul.f32 0.0052083335, %v1394_v3  ;;  %v1608_v3 = vld [vmem:[%s1343_s10] sm:$0xff]  ;;  %s9645_s10 = sld [smem:[#allocation16_spill]] }
 0x168   : > { %v1398_v6 = vadd.f32 1e-05, %v1396_v4 }
 0x16a   : > { %8605 = vrsqrt.f32 %v1398_v6 }
 0x16c   : > { %s9268_s11 = scalar_lea.vmem %s9645_s10, %s8985_s22  ;;  %s9647_s10 = sshll.u32 %s9660_s16, 6 }
 0x16d   : > { %s9288_s3 = scalar_lea.vmem %s9646_s2, %s9647_s10  ;;  %s9650_s2 = sld [smem:[#allocation8_spill]] }
 0x16e   : > { %s9296_s10 = scalar_lea.vmem %s9648_s4, %s8985_s22  ;;  %s7376_s4 = sshll.u32 %s9660_s16, 7 }
 0x170   : > { %v8604_v14 = vpop.eup %8603 }
 0x171   : > { %v1402_v15 = vmul.f32 %v8604_v14, %v8950_v31  ;;  %v1401_v18 = vmul.f32 %v8604_v14, %v8948_v30  ;;  %v7110_v30 = vld [vmem:[%s1314_s28] ss:$0 sm:$0xff]  ;;  %s9051_s28 = scalar_lea.vmem %s8826_s12, %s8985_s22 }
 0x173   : > { %v1417_v19 = vmul.f32 %v1413_v13, %v1402_v15  ;;  %v1416_v20 = vmul.f32 %v1409_v12, %v1401_v18  ;;  %s9308_s8 = scalar_lea.vmem %s9650_s2, %s7376_s4  ;;  %s9320_s2 = scalar_lea.vmem %s9651_s5, %s8985_s22 }
 0x174   : > { %v8606_v21 = vpop.eup %8605  ;;  %s9652_s4 = sld [smem:[#allocation7_spill]] }
 0x175   : > { %v1404_v22 = vmul.f32 %v8606_v21, %v8958_v37  ;;  %v1432_v23 = vadd.f32 %v1428_v17, %v1417_v19  ;;  %v1431_v24 = vadd.f32 %v1424_v16, %v1416_v20  ;;  %v1403_v25 = vmul.f32 %v8606_v21, %v8956_v36 }
 0x177   : > { %v1419_v26 = vmul.f32 %v1413_v13, %v1404_v22  ;;  %7111 = vmatprep.mubr.msk.f32.mxu0 %vm1363_vm0, %v1432_v23  ;;  %v1418_v27 = vmul.f32 %v1409_v12, %v1403_v25  ;;  %v1658_v25 = vld [vmem:[%s9027_s0] sm:$0xff] }
 0x178   : > { %1537 = vmatmul.mubr.f32.vlgmr.msra.gmra.mrb[0].mxu0 %v1431_v24 }
 0x179   : > { %v1434_v28 = vadd.f32 %v1428_v17, %v1419_v26  ;;  %v1433_v29 = vadd.f32 %v1424_v16, %v1418_v27  ;;  %v1659_v26 = vld [vmem:[%s9027_s0 + $0x8] sm:$0xff] }
 0x17a   : > { %v8195_v27 = vpack.c.bf16 %v1659_v26, %v1658_v25  ;;  %s9327_s5 = scalar_lea.vmem %s9652_s4, %s8985_s22 }
 0x17b   : > { %7112 = vmatprep.mubr.msk.f32.mxu0 %vm1363_vm0, %v1434_v28  ;;  %v7142_v28 = vld [vmem:[%s9032_s18 + $0x20] sm:$0xff] }
 0x17c   : > { %1542 = vmatmul.mubr.f32.gmra.mrb[2].mxu0 %v1433_v29  ;;  %v7143_v29 = vld [vmem:[%s9032_s18 + $0x28] sm:$0xff]  ;;  %8196 = vmatprep.subr.bf16.mxu1 %v8195_v27 }
 0x17d   : > { %8198 = vmatpush3.bf16.msra.mxu1 %v8195_v27 }
 0x24b   : > { %v1538_v31 = vpop.f32.mrb[0].mxu0 }
 0x24c   : > { %v1539_v32 = vadd.f32 %v7110_v30, %v1538_v31  ;;  %v1540_v33 = vpop.f32.mrb[1].mxu0  ;;  %v1660_v31 = vld [vmem:[%s9027_s0 + $0x10] sm:$0xff] }
 0x24e   : > { %v1550_v34 = vsel %vm1549_vm3, %v1539_v32, 0.0 }
 0x24f   : > { %v1543_v35 = vpop.f32.mrb[2].mxu0  ;;  %1551 = vadd.xlane.f32.xlu0 %v1550_v34  ;;  %v7144_v34 = vld [vmem:[%s9032_s18 + $0x30] sm:$0xff] }
 0x250   : > { %v1544_v36 = vadd.f32 %v7110_v30, %v1543_v35  ;;  %v1545_v37 = vpop.f32.mrb[3].mxu0  ;;  %v8247_v30 = vpack.c.bf16 %v7143_v29, %v7142_v28  ;;  %v7145_v35 = vld [vmem:[%s9032_s18 + $0x38] sm:$0xff] }
 0x251   : > { %v1743_v37 = vld [vmem:[%s9041_s23] sm:$0xff] }
 0x252   : > { %v1554_v38 = vsel %vm1553_vm4, %v1544_v36, 0.0  ;;  %8248 = vmatprep.subr.bf16.mxu0 %v8247_v30 }
 0x253   : > { %1555 = vadd.xlane.f32.xlu1 %v1554_v38  ;;  %8250 = vmatpush3.bf16.msra.mxu0 %v8247_v30  ;;  %v1744_v38 = vld [vmem:[%s9041_s23 + $0x8] sm:$0xff] }
 0x254   : > { %v8203_v39 = vpack.c.bf16 %v1744_v38, %v1743_v37  ;;  %v7130_v37 = vld [vmem:[%s9027_s0 + $0x20] sm:$0xff]  ;;  %v7131_v38 = vld [vmem:[%s9027_s0 + $0x28] sm:$0xff] }
 0x2dc   : > { %v1552_v40 = vpop.xlane.xlu0 %1551 }
 0x2dd   : > { %v1558_v41 = vmul.f32 0.03125, %v1552_v40 }
 0x2df   : > { %v1560_v42 = vsub.f32 %v1539_v32, %v1558_v41  ;;  %v1661_v32 = vld [vmem:[%s9027_s0 + $0x18] sm:$0xff] }
 0x2e0   : > { %v1556_v43 = vpop.xlane.xlu1 %1555  ;;  %v8199_v33 = vpack.c.bf16 %v1661_v32, %v1660_v31 }
 0x2e1   : > { %v1559_v44 = vmul.f32 0.03125, %v1556_v43  ;;  %v1562_v45 = vmul.f32 %v1560_v42, %v1560_v42 }
 0x2e2   : > { %8200 = vmatprep.subr.bf16.mxu1 %v8199_v33 }
 0x2e3   : > { %v1561_v46 = vsub.f32 %v1544_v36, %v1559_v44  ;;  %v1564_v47 = vsel %vm1549_vm3, %v1562_v45, 0.0  ;;  %v8251_v36 = vpack.c.bf16 %v7145_v35, %v7144_v34  ;;  %8202 = vmatpush3.bf16.msra.mxu1 %v8199_v33 }
 0x2e4   : > { %1565 = vadd.xlane.f32.xlu0 %v1564_v47  ;;  %8204 = vmatprep.subr.bf16.mxu1 %v8203_v39  ;;  %v7115_v47 = vld [vmem:[%s9047_s26] ss:$0 sm:$0xff] }
 0x2e5   : > { %v1563_v48 = vmul.f32 %v1561_v46, %v1561_v46  ;;  %8252 = vmatprep.subr.bf16.mxu0 %v8251_v36 }
 0x2e6   : > { %8254 = vmatpush3.bf16.msra.mxu0 %v8251_v36 }
 0x2e7   : > { %v1567_v49 = vsel %vm1553_vm4, %v1563_v48, 0.0 }
 0x2e8   : > { %1568 = vadd.xlane.f32.xlu1 %v1567_v49  ;;  %v7116_v49 = vld [vmem:[%s9051_s28] ss:$0 sm:$0xff] }
 0x2f9   : > { %1603 = vperm.xlu1 %8602, %v1595_v50  }
 0x2fa   : > { %1598 = vperm.xlu0 %8601, %v1594_v51  }
 0x371   : > { %v1566_v52 = vpop.xlane.xlu0 %1565 }
 0x372   : > { %v1570_v53 = vmul.f32 0.03125, %v1566_v52 }
 0x374   : > { %v1572_v54 = vadd.f32 1e-05, %v1570_v53 }
 0x375   : > { %v1569_v55 = vpop.xlane.xlu1 %1568 }
 0x376   : > { %8607 = vrsqrt.f32 %v1572_v54  ;;  %v1571_v56 = vmul.f32 0.03125, %v1569_v55  ;;  %v1745_v54 = vld [vmem:[%s9041_s23 + $0x10] sm:$0xff]  ;;  %v1746_v55 = vld [vmem:[%s9041_s23 + $0x18] sm:$0xff] }
 0x378   : > { %v1573_v57 = vadd.f32 1e-05, %v1571_v56 }
 0x379   : > { %v1599_v0 = vpop.permute.xlu0 %1598  ;;  %v1604_v6 = vpop.permute.xlu1 %1603 }
 0x37a   : > { %8609 = vrsqrt.f32 %v1573_v57 }
 0x380   : > { %v8608_v58 = vpop.eup %8607 }
 0x381   : > { %v1576_v60 = vmul.f32 %v8608_v58, %v1560_v42  ;;  %v8207_v58 = vpack.c.bf16 %v1746_v55, %v1745_v54  ;;  %v7139_v54 = vld [vmem:[%s9041_s23 + $0x38] sm:$0xff] }
 0x383   : > { %v1584_v62 = vmul.f32 %v7113_v59, %v1576_v60  ;;  %v1823_v60 = vld [vmem:[%s9032_s18 + $0x8] sm:$0xff] }
 0x384   : > { %v8610_v63 = vpop.eup %8609 }
 0x385   : > { %v1592_v1 = vadd.f32 %v7114_v61, %v1584_v62  ;;  %v1577_v2 = vmul.f32 %v8610_v63, %v1561_v46  ;;  %v1824_v62 = vld [vmem:[%s9032_s18 + $0x10] sm:$0xff]  ;;  %v1825_v63 = vld [vmem:[%s9032_s18 + $0x18] sm:$0xff] }
 0x387   : > { %v1606_v4 = vmul.f32 %v1599_v0, %v1592_v1  ;;  %v1585_v5 = vmul.f32 %v7113_v59, %v1577_v2  ;;  %v1822_v59 = vld [vmem:[%s9032_s18] sm:$0xff]  ;;  %v8215_v0 = vpack.c.bf16 %v1825_v63, %v1824_v62  ;;  %v7160_v62 = vld [vmem:[%s9027_s0 + $0x48] sm:$0xff] }
 0x389   : > { %v9013_v7 = vadd.f32 %v1608_v3, %v1606_v4  ;;  %v1593_v8 = vadd.f32 %v7114_v61, %v1585_v5  ;;  %v8211_v61 = vpack.c.bf16 %v1823_v60, %v1822_v59 }
 0x38b   : > { %v1607_v11 = vmul.f32 %v1604_v6, %v1593_v8  ;;  %v1616_v12 = vsel %vm1549_vm3, %v9013_v7, 0.0 }
 0x38c   : > { %1617 = vadd.xlane.f32.xlu1 %v1616_v12 }
 0x38d   : > { %v9017_v13 = vadd.f32 %v1609_v10, %v1607_v11 }
 0x38f   : > { %v1619_v14 = vsel %vm1553_vm4, %v9017_v13, 0.0 }
 0x390   : > { %1620 = vadd.xlane.f32.xlu0 %v1619_v14 }
 0x419   : > { %v1618_v15 = vpop.xlane.xlu1 %1617 }
 0x41a   : > { %v1622_v16 = vmul.f32 0.03125, %v1618_v15 }
 0x41c   : > { %v1624_v17 = vsub.f32 %v9013_v7, %v1622_v16 }
 0x41d   : > { %v1621_v18 = vpop.xlane.xlu0 %1620 }
 0x41e   : > { %v1623_v19 = vmul.f32 0.03125, %v1621_v18  ;;  %v1626_v20 = vmul.f32 %v1624_v17, %v1624_v17  ;;  %v9112_v18 = vld [vmem:[%s9109_s1] sm:$0xff] }
 0x420   : > { %v1625_v21 = vsub.f32 %v9017_v13, %v1623_v19  ;;  %v1628_v22 = vsel %vm1549_vm3, %v1626_v20, 0.0 }
 0x421   : > { %1629 = vadd.xlane.f32.xlu1 %v1628_v22  ;;  %v9115_v22 = vld [vmem:[%s9109_s1 + $0x8] sm:$0x3] }
 0x422   : > { %v1627_v23 = vmul.f32 %v1625_v21, %v1625_v21 }
 0x424   : > { %v1631_v24 = vsel %vm1553_vm4, %v1627_v23, 0.0 }
 0x425   : > { %1632 = vadd.xlane.f32.xlu1 %v1631_v24 }
 0x4ae   : > { %v1630_v40 = vpop.xlane.xlu1 %1629 }
 0x4af   : > { %v1634_v41 = vmul.f32 0.03125, %v1630_v40 }
 0x4b1   : > { %v1636_v42 = vadd.f32 1e-05, %v1634_v41 }
 0x4b2   : > { %v1633_v43 = vpop.xlane.xlu1 %1632 }
 0x4b3   : > { %8611 = vrsqrt.f32 %v1636_v42  ;;  %v1635_v44 = vmul.f32 0.03125, %v1633_v43 }
 0x4b5   : > { %v1637_v45 = vadd.f32 1e-05, %v1635_v44  ;;  %v7132_v44 = vld [vmem:[%s9027_s0 + $0x30] sm:$0xff] }
 0x4b7   : > { %8613 = vrsqrt.f32 %v1637_v45  ;;  %v7133_v45 = vld [vmem:[%s9027_s0 + $0x38] sm:$0xff] }
 0x4bd   : > { %v8612_v46 = vpop.eup %8611 }
 0x4be   : > { %v1640_v48 = vmul.f32 %v8612_v46, %v1624_v17 }
 0x4c0   : > { %v1648_v50 = vmul.f32 %v7115_v47, %v1640_v48  ;;  %v8235_v48 = vpack.c.bf16 %v7133_v45, %v7132_v44 }
 0x4c1   : > { %v8614_v51 = vpop.eup %8613 }
 0x4c2   : > { %v9055_v52 = vadd.f32 %v7116_v49, %v1648_v50  ;;  %v1641_v53 = vmul.f32 %v8614_v51, %v1625_v21  ;;  %v7137_v50 = vld [vmem:[%s9041_s23 + $0x28] sm:$0xff] }
 0x4c4   : > { %v1649_v56 = vmul.f32 %v7115_v47, %v1641_v53  ;;  %7666 = vmatprep.mubr.msk.f32.mxu1 %vm1549_vm3, %v9055_v52  ;;  %7735 = vmatprep.mubr.msk.f32.mxu0 %vm1549_vm3, %v9055_v52  ;;  %v7138_v53 = vld [vmem:[%s9041_s23 + $0x30] sm:$0xff] }
 0x4c5   : > { %v8243_v55 = vpack.c.bf16 %v7139_v54, %v7138_v53 }
 0x4c6   : > { %v9063_v57 = vadd.f32 %v7116_v49, %v1649_v56  ;;  %v7136_v49 = vld [vmem:[%s9041_s23 + $0x20] sm:$0xff] }
 0x4c7   : > { %v8239_v51 = vpack.c.bf16 %v7137_v50, %v7136_v49  ;;  %v2101_v49 = vld [vmem:[%s9183_s7] sm:$0xff] }
 0x4c8   : > { %7667 = vmatmul.mubr.msk.f32.vlgmr.msra.gmra.mrb[0].mxu1 %vm1549_vm3, %v9063_v57  ;;  %7736 = vmatmul.mubr.msk.f32.vlgmr.msra.gmra.mrb[4].mxu0 %vm1549_vm3, %v9063_v57  ;;  %v7165_v50 = vld [vmem:[%s9041_s23 + $0x40] sm:$0xff] }
 0x4c9   : > { %8206 = vmatpush3.bf16.msra.mxu1 %v8203_v39  ;;  %7677 = vmatprep.mubr.msk.f32.mxu1 %vm1549_vm3, %v9055_v52  ;;  %v8231_v39 = vpack.c.bf16 %v7131_v38, %v7130_v37 }
 0x4ca   : > { %8208 = vmatprep.subr.bf16.mxu1 %v8207_v58 }
 0x4cd   : > { %8210 = vmatpush3.bf16.msra.mxu1 %v8207_v58 }
 0x4ce   : > { %8212 = vmatprep.subr.bf16.mxu1 %v8211_v61 }
 0x4d0   : > { %7678 = vmatmul.mubr.msk.f32.vlgmr.msra.gmra.mrb[2].mxu1 %vm1549_vm3, %v9063_v57 }
 0x4d1   : > { %8214 = vmatpush3.bf16.msra.mxu1 %v8211_v61  ;;  %7688 = vmatprep.mubr.msk.f32.mxu1 %vm1549_vm3, %v9055_v52  ;;  %v7159_v61 = vld [vmem:[%s9027_s0 + $0x40] sm:$0xff] }
 0x4d2   : > { %8216 = vmatprep.subr.bf16.mxu1 %v8215_v0 }
 0x4d5   : > { %8218 = vmatpush3.bf16.msra.mxu1 %v8215_v0 }
 0x4d8   : > { %7689 = vmatmul.mubr.msk.f32.vlgmr.msra.gmra.mrb[4].mxu1 %vm1549_vm3, %v9063_v57 }
 0x59b   : > { %v7668_v1 = vpop.f32.mrb[0].mxu1  ;;  %v7737_v2 = vpop.f32.mrb[4].mxu0 }
 0x59c   : > { %v1734_v4 = vpop.f32.mrb[1].mxu1  ;;  %v2333_v5 = vpop.f32.mrb[5].mxu0 }
 0x59d   : > { %v8261_v6 = vpack.c.bf16 %v7737_v2, %v2333_v5  ;;  %7695 = vmatprep.mubr.msk.f32.mxu1 %vm1901_vm5, %v1734_v4  ;;  %v8267_v2 = vpack.c.bf16 %v7160_v62, %v7159_v61  ;;  %v7161_v4 = vld [vmem:[%s9027_s0 + $0x50] sm:$0xff]  ;;  %v7162_v5 = vld [vmem:[%s9027_s0 + $0x58] sm:$0xff] }
 0x59f   : > { %8263 = vmatprep.subr.msk.bf16.mxu0 %vm9082_vm7, %v8261_v6 }
 0x5a0   : > { %8266 = vmatpush3.bf16.msk.msra.mxu0 %vm9082_vm7, %v8261_v6  ;;  %v8271_v6 = vpack.c.bf16 %v7162_v5, %v7161_v4 }
 0x5a3   : > { %v7679_v8 = vpop.f32.mrb[2].mxu1 }
 0x5a4   : > { %v1813_v10 = vpop.f32.mrb[3].mxu1 }
 0x5a5   : > { %v8219_v12 = vpack.c.bf16 %v7679_v8, %v1813_v10  ;;  %v7171_v8 = vld [vmem:[%s9032_s18 + $0x40] sm:$0xff]  ;;  %v7172_v10 = vld [vmem:[%s9032_s18 + $0x48] sm:$0xff] }
 0x5a7   : > { %8221 = vmatprep.subr.msk.bf16.mxu1 %vm9093_vm8, %v8219_v12 }
 0x5a8   : > { %8224 = vmatpush3.bf16.xpose.msk.msra.mxu1 %vm9093_vm8, %v8219_v12  ;;  %v8283_v12 = vpack.c.bf16 %v7172_v10, %v7171_v8 }
 0x5ab   : > { %v7690_v14 = vpop.f32.mrb[4].mxu1 }
 0x5ac   : > { %v1892_v15 = vpop.f32.mrb[5].mxu1 }
 0x5ad   : > { %v8225_v16 = vpack.c.bf16 %v7690_v14, %v1892_v15  ;;  %v7173_v14 = vld [vmem:[%s9032_s18 + $0x50] sm:$0xff]  ;;  %v7174_v15 = vld [vmem:[%s9032_s18 + $0x58] sm:$0xff] }
 0x5af   : > { %7696 = vmatmul.mubr.msk.f32.vlgmr.msra.gmra.mrb[6].mxu1 %vm1901_vm5, %v7668_v1  ;;  %8227 = vmatprep.subr.msk.bf16.mxu1 %vm9082_vm7, %v8225_v16 }
 0x5b0   : > { %8230 = vmatpush3.bf16.msk.msra.mxu1 %vm9082_vm7, %v8225_v16  ;;  %v8287_v16 = vpack.c.bf16 %v7174_v15, %v7173_v14 }
 0x5b1   : > { %8232 = vmatprep.subr.bf16.mxu1 %v8231_v39 }
 0x682   : > { %v7697_v17 = vpop.f32.mrb[6].mxu1 }
 0x683   : > { %v1980_v19 = vpop.f32.mrb[7].mxu1  ;;  %v1990_v20 = vmul.f32 0.35355338, %v7697_v17 }
 0x684   : > { %v1989_v21 = vmul.f32 0.35355338, %v1980_v19 }
 0x685   : > { %v1992_v25 = vadd.f32 %v1990_v20, %v9115_v22 }
 0x686   : > { %v1991_v23 = vadd.f32 %v1989_v21, %v9112_v18 }
 0x687   : > { %v1998_v26 = vsel %vm1997_vm10, %v1992_v25, -inf }
 0x688   : > { %v1994_v24 = vsel %vm1993_vm9, %v1991_v23, -inf }
 0x689   : > { %1995 = vmax.xlane.f32.xlu1 %v1994_v24 }
 0x68d   : > { %1999 = vmax.xlane.f32.xlu1 %v1998_v26 }
 0x716   : > { %v1996_v27 = vpop.xlane.xlu1 %1995 }
 0x717   : > { %v2001_v28 = vsub.f32 %v1991_v23, %v1996_v27 }
 0x719   : > { %v2003_v29 = vmul.f32 1.442695, %v2001_v28 }
 0x71a   : > { %v2000_v30 = vpop.xlane.xlu1 %1999 }
 0x71b   : > { %8615 = vpow2.f32 %v2003_v29  ;;  %v2002_v31 = vsub.f32 %v1992_v25, %v2000_v30 }
 0x71d   : > { %v2005_v32 = vmul.f32 1.442695, %v2002_v31 }
 0x71f   : > { %8617 = vpow2.f32 %v2005_v32 }
 0x725   : > { %v8616_v33 = vpop.eup %8615 }
 0x726   : > { %v2007_v34 = vsel %vm1993_vm9, %v8616_v33, 0.0 }
 0x727   : > { %2008 = vadd.xlane.f32.xlu1 %v2007_v34 }
 0x729   : > { %v8618_v35 = vpop.eup %8617 }
 0x72a   : > { %v2010_v36 = vsel %vm1997_vm10, %v8618_v35, 0.0 }
 0x72b   : > { %2011 = vadd.xlane.f32.xlu1 %v2010_v36 }
 0x7b4   : > { %v2009_v40 = vpop.xlane.xlu1 %2008 }
 0x7b5   : > { %8619 = vrcp.f32 %v2009_v40 }
 0x7b8   : > { %v2012_v41 = vpop.xlane.xlu1 %2011 }
 0x7b9   : > { %8621 = vrcp.f32 %v2012_v41 }
 0x7bf   : > { %v8620_v42 = vpop.eup %8619 }
 0x7c0   : > { %v2014_v43 = vmul.f32 %v8620_v42, %v8616_v33  ;;  %v2539_v42 = vld [vmem:[%s9183_s7 + $0x8] sm:$0xff] }
 0x7c1   : > { %7752 = vmatprep.subr.mxu0 %v2539_v42 }
 0x7c2   : > { %7702 = vmatprep.mubr.msk.f32.mxu1 %vm1993_vm9, %v2014_v43 }
 0x7c3   : > { %v8622_v46 = vpop.eup %8621 }
 0x7c4   : > { %v2016_v47 = vmul.f32 %v8622_v46, %v8618_v35 }
 0x7c6   : > { %7703 = vmatmul.mubr.msk.f32.vlgmr.msra.gmra.mrb[8].mxu1 %vm1993_vm9, %v2016_v47 }
 0x7c7   : > { %8234 = vmatpush3.bf16.msra.mxu1 %v8231_v39  ;;  %7713 = vmatprep.mubr.msk.f32.mxu1 %vm1549_vm3, %v9055_v52 }
 0x7c8   : > { %8236 = vmatprep.subr.bf16.mxu1 %v8235_v48 }
 0x7cb   : > { %8238 = vmatpush3.bf16.msra.mxu1 %v8235_v48 }
 0x7cc   : > { %8240 = vmatprep.subr.bf16.mxu1 %v8239_v51 }
 0x7ce   : > { %7714 = vmatmul.mubr.msk.f32.vlgmr.msra.gmra.mrb[10].mxu1 %vm1549_vm3, %v9063_v57 }
 0x7cf   : > { %8242 = vmatpush3.bf16.msra.mxu1 %v8239_v51  ;;  %7724 = vmatprep.mubr.msk.f32.mxu1 %vm1549_vm3, %v9055_v52  ;;  %v7166_v51 = vld [vmem:[%s9041_s23 + $0x48] sm:$0xff] }
 0x7d0   : > { %8244 = vmatprep.subr.bf16.mxu1 %v8243_v55 }
 0x7d3   : > { %8246 = vmatpush3.bf16.msra.mxu1 %v8243_v55  ;;  %v8275_v55 = vpack.c.bf16 %v7166_v51, %v7165_v50 }
 0x7d6   : > { %7725 = vmatmul.mubr.msk.f32.vlgmr.msra.gmra.mrb[12].mxu1 %vm1549_vm3, %v9063_v57 }
 0x899   : > { %v9141_v56 = vpop.f32.mrb[8].mxu1 }
 0x89a   : > { %v9143_v58 = vpop.f32.mrb[9].mxu1 }
 0x8a1   : > { %v7715_v59 = vpop.f32.mrb[10].mxu1 }
 0x8a2   : > { %v2173_v60 = vpop.f32.mrb[11].mxu1 }
 0x8a3   : > { %7742 = vmatprep.mubr.msk.f32.mxu1 %vm1901_vm5, %v2173_v60  ;;  %v7168_v60 = vld [vmem:[%s9041_s23 + $0x58] sm:$0xff] }
 0x8a9   : > { %v7726_v63 = vpop.f32.mrb[12].mxu1 }
 0x8aa   : > { %v2253_v0 = vpop.f32.mrb[13].mxu1 }
 0x8ab   : > { %v8255_v1 = vpack.c.bf16 %v7726_v63, %v2253_v0 }
 0x8ad   : > { %8257 = vmatprep.subr.msk.bf16.mxu1 %vm9093_vm8, %v8255_v1 }
 0x8ae   : > { %8260 = vmatpush3.bf16.xpose.msk.msra.mxu1 %vm9093_vm8, %v8255_v1 }
 0x8af   : > { %8268 = vmatprep.subr.bf16.mxu1 %v8267_v2 }
 0x8b5   : > { %7743 = vmatmul.mubr.msk.f32.vlgmr.msra.gmra.mrb[14].mxu1 %vm1901_vm5, %v7715_v59  ;;  %v7167_v59 = vld [vmem:[%s9041_s23 + $0x50] sm:$0xff] }
 0x8b6   : > { %8270 = vmatpush3.bf16.msra.mxu1 %v8267_v2  ;;  %7770 = vmatprep.mubr.msk.f32.mxu1 %vm1549_vm3, %v9055_v52  ;;  %v8279_v61 = vpack.c.bf16 %v7168_v60, %v7167_v59 }
 0x8b7   : > { %8272 = vmatprep.subr.bf16.mxu1 %v8271_v6 }
 0x8ba   : > { %8274 = vmatpush3.bf16.msra.mxu1 %v8271_v6 }
 0x8bb   : > { %8284 = vmatprep.subr.bf16.mxu1 %v8283_v12 }
 0x8bd   : > { %7771 = vmatmul.mubr.msk.f32.vlgmr.msra.gmra.mrb[16].mxu1 %vm1549_vm3, %v9063_v57 }
 0x8be   : > { %8286 = vmatpush3.bf16.msra.mxu1 %v8283_v12  ;;  %7792 = vmatprep.mubr.msk.f32.mxu1 %vm1549_vm3, %v9055_v52 }
 0x8bf   : > { %8288 = vmatprep.subr.bf16.mxu1 %v8287_v16 }
 0x8c2   : > { %8290 = vmatpush3.bf16.msra.mxu1 %v8287_v16 }
 0x8c5   : > { %7793 = vmatmul.mubr.msk.f32.vlgmr.msra.gmra.mrb[18].mxu1 %vm1549_vm3, %v9063_v57 }
 0x988   : > { %v7744_v17 = vpop.f32.mrb[14].mxu1 }
 0x989   : > { %v2430_v19 = vmul.f32 0.35355338, %v7744_v17  ;;  %v2420_v20 = vpop.f32.mrb[15].mxu1 }
 0x98a   : > { %v2429_v21 = vmul.f32 0.35355338, %v2420_v20 }
 0x98b   : > { %v2432_v23 = vadd.f32 %v2430_v19, %v9115_v22 }
 0x98c   : > { %v2431_v24 = vadd.f32 %v2429_v21, %v9112_v18 }
 0x98d   : > { %v2436_v25 = vsel %vm1997_vm10, %v2432_v23, -inf }
 0x98e   : > { %2437 = vmax.xlane.f32.xlu1 %v2436_v25  ;;  %v2433_v26 = vsel %vm1993_vm9, %v2431_v24, -inf  ;;  %v7187_v25 = vld [vmem:[%s9027_s0 + $0x68] sm:$0xff] }
 0x98f   : > { %2434 = vmax.xlane.f32.xlu0 %v2433_v26 }
 0x990   : > { %v9171_v27 = vpop.f32.mrb[16].mxu1 }
 0x991   : > { %v2773_v28 = vpop.f32.mrb[17].mxu1 }
 0x998   : > { %v7794_v29 = vpop.f32.mrb[18].mxu1 }
 0x999   : > { %v2933_v30 = vpop.f32.mrb[19].mxu1 }
 0x99a   : > { %v8297_v31 = vpack.c.bf16 %v7794_v29, %v2933_v30 }
 0x99c   : > { %8299 = vmatprep.subr.msk.bf16.mxu1 %vm9082_vm7, %v8297_v31 }
 0x99d   : > { %8302 = vmatpush3.bf16.msk.msra.mxu1 %vm9082_vm7, %v8297_v31  ;;  %v7188_v31 = vld [vmem:[%s9027_s0 + $0x70] sm:$0xff] }
 0xa1b   : > { %v2438_v32 = vpop.xlane.xlu1 %2437 }
 0xa1c   : > { %v2440_v33 = vsub.f32 %v2432_v23, %v2438_v32  ;;  %v2435_v34 = vpop.xlane.xlu0 %2434  ;;  %v7189_v32 = vld [vmem:[%s9027_s0 + $0x78] sm:$0xff] }
 0xa1d   : > { %v2439_v35 = vsub.f32 %v2431_v24, %v2435_v34  ;;  %v7186_v24 = vld [vmem:[%s9027_s0 + $0x60] sm:$0xff] }
 0xa1e   : > { %v2443_v36 = vmul.f32 1.442695, %v2440_v33  ;;  %v8303_v26 = vpack.c.bf16 %v7187_v25, %v7186_v24 }
 0xa1f   : > { %v2441_v37 = vmul.f32 1.442695, %v2439_v35 }
 0xa20   : > { %8623 = vpow2.f32 %v2443_v36  ;;  %8304 = vmatprep.subr.bf16.mxu1 %v8303_v26  ;;  %v8307_v36 = vpack.c.bf16 %v7189_v32, %v7188_v31 }
 0xa21   : > { %8625 = vpow2.f32 %v2441_v37  ;;  %v7198_v37 = vld [vmem:[%s9032_s18 + $0x60] sm:$0xff] }
 0xa2a   : > { %v8624_v38 = vpop.eup %8623 }
 0xa2b   : > { %v8626_v39 = vpop.eup %8625  ;;  %v2448_v40 = vsel %vm1997_vm10, %v8624_v38, 0.0 }
 0xa2c   : > { %2449 = vadd.xlane.f32.xlu1 %v2448_v40  ;;  %v2445_v41 = vsel %vm1993_vm9, %v8626_v39, 0.0  ;;  %v7200_v40 = vld [vmem:[%s9032_s18 + $0x70] sm:$0xff] }
 0xa2d   : > { %2446 = vadd.xlane.f32.xlu0 %v2445_v41  ;;  %v7201_v41 = vld [vmem:[%s9032_s18 + $0x78] sm:$0xff] }
 0xab9   : > { %v2450_v43 = vpop.xlane.xlu1 %2449 }
 0xaba   : > { %8627 = vrcp.f32 %v2450_v43  ;;  %v2447_v44 = vpop.xlane.xlu0 %2446  ;;  %v7192_v43 = vld [vmem:[%s9041_s23 + $0x60] sm:$0xff] }
 0xabb   : > { %8629 = vrcp.f32 %v2447_v44  ;;  %v7193_v44 = vld [vmem:[%s9041_s23 + $0x68] sm:$0xff] }
 0xac4   : > { %v8628_v45 = vpop.eup %8627 }
 0xac5   : > { %v8630_v46 = vpop.eup %8629  ;;  %v2454_v48 = vmul.f32 %v8628_v45, %v8624_v38  ;;  %v7199_v38 = vld [vmem:[%s9032_s18 + $0x68] sm:$0xff]  ;;  %v8311_v45 = vpack.c.bf16 %v7193_v44, %v7192_v43  ;;  %v3799_v44 = vld [vmem:[%s9288_s3] sm:$0xff] }
 0xac6   : > { %v2452_v47 = vmul.f32 %v8630_v46, %v8626_v39  ;;  %v8319_v39 = vpack.c.bf16 %v7199_v38, %v7198_v37  ;;  %v7194_v46 = vld [vmem:[%s9041_s23 + $0x70] sm:$0xff] }
 0xac8   : > { %7749 = vmatprep.mubr.msk.f32.mxu0 %vm1993_vm9, %v2452_v47  ;;  %v7195_v47 = vld [vmem:[%s9041_s23 + $0x78] sm:$0xff] }
 0xac9   : > { %7750 = vmatmul.mubr.msk.f32.vlgmr.msra.gmra.mrb[6].mxu0 %vm1993_vm9, %v2454_v48  ;;  %v8315_v50 = vpack.c.bf16 %v7195_v47, %v7194_v46  ;;  %v3801_v47 = vld [vmem:[%s9288_s3 + $0x10] sm:$0xff] }
 0xaca   : > { %7753 = vmatpush3.msra.mxu0 %v2539_v42  ;;  %v8323_v42 = vpack.c.bf16 %v7201_v41, %v7200_v40 }
 0xacb   : > { %7757 = vmatprep.subr.mxu0 %v2101_v49 }
 0xb9c   : > { %v7751_v53 = vpop.f32.mrb[6].mxu0 }
 0xb9d   : > { %v2530_v54 = vpop.f32.mrb[7].mxu0 }
 0xb9e   : > { %7754 = vmatprep.mubr.msk.f32.mxu0 %vm1901_vm5, %v2530_v54 }
 0xb9f   : > { %7755 = vmatmul.mubr.msk.f32.vlgmr.msra.gmra.mrb[8].mxu0 %vm1901_vm5, %v7751_v53 }
 0xba0   : > { %7758 = vmatpush3.msra.mxu0 %v2101_v49  ;;  %7759 = vmatprep.mubr.msk.f32.mxu0 %vm1901_vm5, %v9143_v58 }
 0xba1   : > { %8276 = vmatprep.subr.bf16.mxu0 %v8275_v55 }
 0xba7   : > { %7760 = vmatmul.mubr.msk.f32.vlgmr.msra.gmra.mrb[8].mxu0 %vm1901_vm5, %v9141_v56 }
 0xba8   : > { %8278 = vmatpush3.bf16.msra.mxu0 %v8275_v55  ;;  %7781 = vmatprep.mubr.msk.f32.mxu0 %vm1549_vm3, %v9055_v52 }
 0xba9   : > { %8280 = vmatprep.subr.bf16.mxu0 %v8279_v61 }
 0xbac   : > { %8282 = vmatpush3.bf16.msra.mxu0 %v8279_v61 }
 0xbaf   : > { %7782 = vmatmul.mubr.msk.f32.vlgmr.msra.gmra.mrb[10].mxu0 %vm1549_vm3, %v9063_v57 }
 0xbb0   : > { %7799 = vmatprep.mubr.msk.f32.mxu0 %vm1901_vm5, %v2773_v28 }
 0xc82   : > { %v7783_v62 = vpop.f32.mrb[10].mxu0 }
 0xc83   : > { %v2853_v58 = vpop.f32.mrb[11].mxu0 }
 0xc84   : > { %v8291_v63 = vpack.c.bf16 %v7783_v62, %v2853_v58 }
 0xc86   : > { %8293 = vmatprep.subr.msk.bf16.mxu0 %vm9093_vm8, %v8291_v63 }
 0xc87   : > { %8296 = vmatpush3.bf16.xpose.msk.msra.mxu0 %vm9093_vm8, %v8291_v63 }
 0xc8e   : > { %7800 = vmatmul.mubr.msk.f32.vlgmr.msra.gmra.mrb[12].mxu0 %vm1901_vm5, %v9171_v27  ;;  %v3139_v27 = vld [vmem:[%s9183_s7 + $0x10] sm:$0xff] }
 0xc8f   : > { %7809 = vmatprep.subr.mxu0 %v3139_v27 }
 0xc90   : > { %7810 = vmatpush3.msra.mxu0 %v3139_v27 }
 0xc91   : > { %8312 = vmatprep.subr.bf16.mxu0 %v8311_v45 }
 0xd61   : > { %v7801_v56 = vpop.f32.mrb[12].mxu0 }
 0xd62   : > { %v3030_v0 = vmul.f32 0.35355338, %v7801_v56  ;;  %v3020_v1 = vpop.f32.mrb[13].mxu0 }
 0xd63   : > { %v3029_v2 = vmul.f32 0.35355338, %v3020_v1 }
 0xd64   : > { %v3032_v4 = vadd.f32 %v3030_v0, %v9115_v22 }
 0xd65   : > { %v3031_v5 = vadd.f32 %v3029_v2, %v9112_v18 }
 0xd66   : > { %v3036_v6 = vsel %vm1997_vm10, %v3032_v4, -inf }
 0xd67   : > { %3037 = vmax.xlane.f32.xlu1 %v3036_v6  ;;  %v3033_v8 = vsel %vm1993_vm9, %v3031_v5, -inf }
 0xd68   : > { %3034 = vmax.xlane.f32.xlu0 %v3033_v8 }
 0xdf4   : > { %v3038_v10 = vpop.xlane.xlu1 %3037 }
 0xdf5   : > { %v3040_v12 = vsub.f32 %v3032_v4, %v3038_v10  ;;  %v3035_v14 = vpop.xlane.xlu0 %3034 }
 0xdf6   : > { %v3039_v15 = vsub.f32 %v3031_v5, %v3035_v14 }
 0xdf7   : > { %v3043_v16 = vmul.f32 1.442695, %v3040_v12 }
 0xdf8   : > { %v3041_v17 = vmul.f32 1.442695, %v3039_v15 }
 0xdf9   : > { %8631 = vpow2.f32 %v3043_v16  ;;  %v3660_v16 = vld [vmem:[%s9183_s7 + $0x18] sm:$0xff] }
 0xdfa   : > { %8633 = vpow2.f32 %v3041_v17 }
 0xe03   : > { %v8632_v19 = vpop.eup %8631 }
 0xe04   : > { %v8634_v20 = vpop.eup %8633  ;;  %v3048_v21 = vsel %vm1997_vm10, %v8632_v19, 0.0 }
 0xe05   : > { %3049 = vadd.xlane.f32.xlu1 %v3048_v21  ;;  %v3045_v23 = vsel %vm1993_vm9, %v8634_v20, 0.0 }
 0xe06   : > { %3046 = vadd.xlane.f32.xlu0 %v3045_v23 }
 0xe92   : > { %v3050_v28 = vpop.xlane.xlu1 %3049 }
 0xe93   : > { %8635 = vrcp.f32 %v3050_v28  ;;  %v3047_v29 = vpop.xlane.xlu0 %3046  ;;  %v7213_v28 = vld [vmem:[%s9268_s11] ss:$0 sm:$0xff] }
 0xe94   : > { %8637 = vrcp.f32 %v3047_v29 }
 0xe9d   : > { %v8636_v30 = vpop.eup %8635 }
 0xe9e   : > { %v8638_v33 = vpop.eup %8637  ;;  %v3054_v35 = vmul.f32 %v8636_v30, %v8632_v19 }
 0xe9f   : > { %v3052_v34 = vmul.f32 %v8638_v33, %v8634_v20 }
 0xea1   : > { %7806 = vmatprep.mubr.msk.f32.mxu1 %vm1993_vm9, %v3052_v34 }
 0xea2   : > { %7807 = vmatmul.mubr.msk.f32.vlgmr.msra.gmra.mrb[20].mxu1 %vm1993_vm9, %v3054_v35 }
 0xea3   : > { %8306 = vmatpush3.bf16.msra.mxu1 %v8303_v26  ;;  %7822 = vmatprep.mubr.msk.f32.mxu1 %vm1549_vm3, %v9055_v52 }
 0xea4   : > { %8308 = vmatprep.subr.bf16.mxu1 %v8307_v36 }
 0xea7   : > { %8310 = vmatpush3.bf16.msra.mxu1 %v8307_v36 }
 0xea8   : > { %8320 = vmatprep.subr.bf16.mxu1 %v8319_v39 }
 0xeaa   : > { %7823 = vmatmul.mubr.msk.f32.vlgmr.msra.gmra.mrb[22].mxu1 %vm1549_vm3, %v9063_v57 }
 0xeab   : > { %8322 = vmatpush3.bf16.msra.mxu1 %v8319_v39  ;;  %7844 = vmatprep.mubr.msk.f32.mxu1 %vm1549_vm3, %v9055_v52 }
 0xeac   : > { %8324 = vmatprep.subr.bf16.mxu1 %v8323_v42 }
 0xeaf   : > { %8326 = vmatpush3.bf16.msra.mxu1 %v8323_v42 }
 0xeb2   : > { %7845 = vmatmul.mubr.msk.f32.vlgmr.msra.gmra.mrb[24].mxu1 %vm1549_vm3, %v9063_v57 }
 0xf75   : > { %v7808_v48 = vpop.f32.mrb[20].mxu1 }
 0xf76   : > { %v3130_v49 = vpop.f32.mrb[21].mxu1 }
 0xf77   : > { %7811 = vmatprep.mubr.msk.f32.mxu0 %vm1901_vm5, %v3130_v49 }
 0xf78   : > { %7812 = vmatmul.mubr.msk.f32.vlgmr.msra.gmra.mrb[8].mxu0 %vm1901_vm5, %v7808_v48  ;;  %v3802_v48 = vld [vmem:[%s9288_s3 + $0x18] sm:$0xff] }
 0xf79   : > { %8314 = vmatpush3.bf16.msra.mxu0 %v8311_v45  ;;  %7833 = vmatprep.mubr.msk.f32.mxu0 %vm1549_vm3, %v9055_v52  ;;  %v3800_v45 = vld [vmem:[%s9288_s3 + $0x8] sm:$0xff]  ;;  %v8343_v49 = vpack.c.bf16 %v3802_v48, %v3801_v47 }
 0xf7a   : > { %8316 = vmatprep.subr.bf16.mxu0 %v8315_v50  ;;  %v8339_v46 = vpack.c.bf16 %v3800_v45, %v3799_v44 }
 0xf7d   : > { %v7824_v51 = vpop.f32.mrb[22].mxu1  ;;  %8318 = vmatpush3.bf16.msra.mxu0 %v8315_v50 }
 0xf7e   : > { %v3294_v53 = vpop.f32.mrb[23].mxu1 }
 0xf80   : > { %7834 = vmatmul.mubr.msk.f32.vlgmr.msra.gmra.mrb[14].mxu0 %vm1549_vm3, %v9063_v57 }
 0xf81   : > { %7851 = vmatprep.mubr.msk.f32.mxu0 %vm1901_vm5, %v3294_v53 }
 0xf85   : > { %v7846_v54 = vpop.f32.mrb[24].mxu1 }
 0xf86   : > { %v3454_v55 = vpop.f32.mrb[25].mxu1 }
 0xf87   : > { %v8333_v59 = vpack.c.bf16 %v7846_v54, %v3454_v55 }
 0xf89   : > { %8335 = vmatprep.subr.msk.bf16.mxu1 %vm9082_vm7, %v8333_v59 }
 0xf8a   : > { %8338 = vmatpush3.bf16.msk.msra.mxu1 %vm9082_vm7, %v8333_v59 }
 0xf8b   : > { %8340 = vmatprep.subr.bf16.mxu1 %v8339_v46 }
0x1053   : > { %v7835_v60 = vpop.f32.mrb[14].mxu0 }
0x1054   : > { %v3374_v52 = vpop.f32.mrb[15].mxu0 }
0x1055   : > { %v8327_v61 = vpack.c.bf16 %v7835_v60, %v3374_v52  ;;  %v7214_v52 = vld [vmem:[%s9296_s10] ss:$0 sm:$0xff] }
0x1057   : > { %8329 = vmatprep.subr.msk.bf16.mxu0 %vm9093_vm8, %v8327_v61 }
0x1058   : > { %8332 = vmatpush3.bf16.xpose.msk.msra.mxu0 %vm9093_vm8, %v8327_v61 }
0x1059   : > { %7861 = vmatprep.subr.mxu0 %v3660_v16 }
0x105f   : > { %7852 = vmatmul.mubr.msk.f32.vlgmr.msra.gmra.mrb[16].mxu0 %vm1901_vm5, %v7824_v51 }
0x1060   : > { %7862 = vmatpush3.msra.mxu0 %v3660_v16 }
0x1132   : > { %v7853_v57 = vpop.f32.mrb[16].mxu0 }
0x1133   : > { %v3551_v62 = vmul.f32 0.35355338, %v7853_v57  ;;  %v3541_v58 = vpop.f32.mrb[17].mxu0 }
0x1134   : > { %v3550_v63 = vmul.f32 0.35355338, %v3541_v58  ;;  %v7215_v58 = vld [vmem:[%s9300_s6] ss:$0 sm:$0xff] }
0x1135   : > { %v3553_v56 = vadd.f32 %v3551_v62, %v9115_v22 }
0x1136   : > { %v3552_v0 = vadd.f32 %v3550_v63, %v9112_v18 }
0x1137   : > { %v3557_v1 = vsel %vm1997_vm10, %v3553_v56, -inf }
0x1138   : > { %3558 = vmax.xlane.f32.xlu1 %v3557_v1  ;;  %v3554_v2 = vsel %vm1993_vm9, %v3552_v0, -inf }
0x1139   : > { %3555 = vmax.xlane.f32.xlu0 %v3554_v2  ;;  %v3909_v2 = vld [vmem:[%s9308_s8] sm:$0xff] }
0x11c5   : > { %v3559_v4 = vpop.xlane.xlu1 %3558 }
0x11c6   : > { %v3561_v5 = vsub.f32 %v3553_v56, %v3559_v4  ;;  %v3556_v6 = vpop.xlane.xlu0 %3555  ;;  %v3910_v4 = vld [vmem:[%s9308_s8 + $0x8] sm:$0xff] }
0x11c7   : > { %v3560_v8 = vsub.f32 %v3552_v0, %v3556_v6  ;;  %v3911_v6 = vld [vmem:[%s9308_s8 + $0x10] sm:$0xff] }
0x11c8   : > { %v3564_v10 = vmul.f32 1.442695, %v3561_v5  ;;  %v8347_v5 = vpack.c.bf16 %v3910_v4, %v3909_v2  ;;  %v7229_v2 = vld [vmem:[%s9027_s0 + $0x98] sm:$0xff] }
0x11c9   : > { %v3562_v12 = vmul.f32 1.442695, %v3560_v8  ;;  %v3912_v8 = vld [vmem:[%s9308_s8 + $0x18] sm:$0xff] }
0x11ca   : > { %8639 = vpow2.f32 %v3564_v10  ;;  %v3913_v10 = vld [vmem:[%s9308_s8 + $0x20] sm:$0xff]  ;;  %8348 = vmatprep.subr.bf16.mxu0 %v8347_v5 }
0x11cb   : > { %8641 = vpow2.f32 %v3562_v12  ;;  %v8351_v12 = vpack.c.bf16 %v3912_v8, %v3911_v6  ;;  %v7241_v6 = vld [vmem:[%s9032_s18 + $0x98] sm:$0xff] }
0x11d4   : > { %v8640_v14 = vpop.eup %8639 }
0x11d5   : > { %v8642_v15 = vpop.eup %8641  ;;  %v3569_v22 = vsel %vm1997_vm10, %v8640_v14, 0.0 }
0x11d6   : > { %3570 = vadd.xlane.f32.xlu1 %v3569_v22  ;;  %v3566_v18 = vsel %vm1993_vm9, %v8642_v15, 0.0  ;;  %v3915_v22 = vld [vmem:[%s9308_s8 + $0x30] sm:$0xff] }
0x11d7   : > { %3567 = vadd.xlane.f32.xlu0 %v3566_v18  ;;  %v3916_v18 = vld [vmem:[%s9308_s8 + $0x38] sm:$0xff] }
0x11d8   : > { %v8359_v16 = vpack.c.bf16 %v3916_v18, %v3915_v22 }
0x1263   : > { %v3571_v17 = vpop.xlane.xlu1 %3570 }
0x1264   : > { %8643 = vrcp.f32 %v3571_v17  ;;  %v3568_v19 = vpop.xlane.xlu0 %3567  ;;  %v7216_v17 = vld [vmem:[%s9320_s2] ss:$0 sm:$0xff] }
0x1265   : > { %8645 = vrcp.f32 %v3568_v19 }
0x126e   : > { %v8644_v20 = vpop.eup %8643 }
0x126f   : > { %v8646_v21 = vpop.eup %8645  ;;  %v3575_v24 = vmul.f32 %v8644_v20, %v8640_v14  ;;  %v3914_v14 = vld [vmem:[%s9308_s8 + $0x28] sm:$0xff] }
0x1270   : > { %v3573_v23 = vmul.f32 %v8646_v21, %v8642_v15  ;;  %v8355_v15 = vpack.c.bf16 %v3914_v14, %v3913_v10  ;;  %v7232_v10 = vld [vmem:[%s9041_s23 + $0x80] sm:$0xff] }
0x1272   : > { %7858 = vmatprep.mubr.msk.f32.mxu1 %vm1993_vm9, %v3573_v23 }
0x1273   : > { %7859 = vmatmul.mubr.msk.f32.vlgmr.msra.gmra.mrb[26].mxu1 %vm1993_vm9, %v3575_v24 }
0x1274   : > { %8342 = vmatpush3.bf16.msra.mxu1 %v8339_v46 }
0x1275   : > { %8344 = vmatprep.subr.bf16.mxu1 %v8343_v49 }
0x1278   : > { %8346 = vmatpush3.bf16.msra.mxu1 %v8343_v49 }
0x1346   : > { %v7860_v25 = vpop.f32.mrb[26].mxu1 }
0x1347   : > { %v3651_v26 = vpop.f32.mrb[27].mxu1 }
0x1348   : > { %7863 = vmatprep.mubr.msk.f32.mxu0 %vm1901_vm5, %v3651_v26 }
0x1349   : > { %7864 = vmatmul.mubr.msk.f32.vlgmr.msra.gmra.mrb[8].mxu0 %vm1901_vm5, %v7860_v25 }
0x134a   : > { %8350 = vmatpush3.bf16.msra.mxu0 %v8347_v5  ;;  %v7240_v5 = vld [vmem:[%s9032_s18 + $0x90] sm:$0xff] }
0x134b   : > { %8352 = vmatprep.subr.bf16.mxu0 %v8351_v12  ;;  %v8383_v8 = vpack.c.bf16 %v7241_v6, %v7240_v5 }
0x134e   : > { %8354 = vmatpush3.bf16.msra.mxu0 %v8351_v12  ;;  %v7233_v12 = vld [vmem:[%s9041_s23 + $0x88] sm:$0xff] }
0x134f   : > { %8356 = vmatprep.subr.bf16.mxu0 %v8355_v15  ;;  %v8371_v14 = vpack.c.bf16 %v7233_v12, %v7232_v10 }
0x1352   : > { %8358 = vmatpush3.bf16.msra.mxu0 %v8355_v15 }
0x1353   : > { %8360 = vmatprep.subr.bf16.mxu0 %v8359_v16 }
0x1356   : > { %8362 = vmatpush3.bf16.msra.mxu0 %v8359_v16 }
0x141c   : > { %v7865_v27 = vpop.f32.mrb[8].mxu0 }
0x141d   : > { %v3745_v29 = vadd.f32 %v7865_v27, %v9017_v13  ;;  %v3733_v30 = vpop.f32.mrb[9].mxu0 }
0x141e   : > { %v3744_v31 = vadd.f32 %v3733_v30, %v9013_v7 }
0x141f   : > { %v9273_v32 = vadd.f32 %v7213_v28, %v3745_v29 }
0x1420   : > { %v9275_v33 = vadd.f32 %v7213_v28, %v3744_v31 }
0x1421   : > { %v3760_v34 = vsel %vm1553_vm4, %v9273_v32, 0.0 }
0x1422   : > { %3761 = vadd.xlane.f32.xlu1 %v3760_v34  ;;  %v3757_v35 = vsel %vm1549_vm3, %v9275_v33, 0.0 }
0x1423   : > { %3758 = vadd.xlane.f32.xlu0 %v3757_v35 }
0x14af   : > { %v3762_v36 = vpop.xlane.xlu1 %3761 }
0x14b0   : > { %v3764_v37 = vmul.f32 0.03125, %v3762_v36  ;;  %v3759_v13 = vpop.xlane.xlu0 %3758 }
0x14b1   : > { %v3763_v38 = vmul.f32 0.03125, %v3759_v13 }
0x14b2   : > { %v3766_v7 = vsub.f32 %v9273_v32, %v3764_v37 }
0x14b3   : > { %v3765_v39 = vsub.f32 %v9275_v33, %v3763_v38 }
0x14b4   : > { %v3768_v40 = vmul.f32 %v3766_v7, %v3766_v7 }
0x14b5   : > { %v3767_v41 = vmul.f32 %v3765_v39, %v3765_v39 }
0x14b6   : > { %v3772_v42 = vsel %vm1553_vm4, %v3768_v40, 0.0 }
0x14b7   : > { %3773 = vadd.xlane.f32.xlu1 %v3772_v42  ;;  %v3769_v43 = vsel %vm1549_vm3, %v3767_v41, 0.0  ;;  %v7219_v42 = vld [vmem:[%s9327_s5] ss:$0 sm:$0xff] }
0x14b8   : > { %3770 = vadd.xlane.f32.xlu0 %v3769_v43 }
0x1544   : > { %v3774_v50 = vpop.xlane.xlu1 %3773 }
0x1545   : > { %v3776_v51 = vmul.f32 0.03125, %v3774_v50  ;;  %v3771_v53 = vpop.xlane.xlu0 %3770 }
0x1546   : > { %v3775_v54 = vmul.f32 0.03125, %v3771_v53 }
0x1547   : > { %v3778_v55 = vadd.f32 1e-05, %v3776_v51 }
0x1548   : > { %v3777_v59 = vadd.f32 1e-05, %v3775_v54 }
0x1549   : > { %8647 = vrsqrt.f32 %v3778_v55 }
0x154a   : > { %8649 = vrsqrt.f32 %v3777_v59 }
0x1553   : > { %v8648_v60 = vpop.eup %8647 }
0x1554   : > { %v8650_v61 = vpop.eup %8649  ;;  %v3782_v57 = vmul.f32 %v8648_v60, %v3766_v7 }
0x1555   : > { %v3781_v62 = vmul.f32 %v8650_v61, %v3765_v39 }
0x1556   : > { %v3790_v63 = vmul.f32 %v7214_v52, %v3782_v57  ;;  %v7226_v57 = vld [vmem:[%s9027_s0 + $0x80] sm:$0xff] }
0x1557   : > { %v3789_v56 = vmul.f32 %v7214_v52, %v3781_v62  ;;  %v7227_v62 = vld [vmem:[%s9027_s0 + $0x88] sm:$0xff] }
0x1558   : > { %v3798_v1 = vadd.f32 %v7215_v58, %v3790_v63  ;;  %v7238_v63 = vld [vmem:[%s9032_s18 + $0x80] sm:$0xff] }
0x1559   : > { %v3797_v0 = vadd.f32 %v7215_v58, %v3789_v56  ;;  %v8363_v58 = vpack.c.bf16 %v7227_v62, %v7226_v57  ;;  %v7239_v56 = vld [vmem:[%s9032_s18 + $0x88] sm:$0xff]  ;;  %v9405_v62 = vld [vmem:[%s9109_s1] sm:$0xff] }
0x155b   : > { %7874 = vmatprep.mubr.msk.f32.mxu1 %vm1549_vm3, %v3797_v0  ;;  %v8379_v0 = vpack.c.bf16 %v7239_v56, %v7238_v63  ;;  %8364 = vmatprep.subr.bf16.mxu1 %v8363_v58 }
0x155c   : > { %7875 = vmatmul.mubr.msk.f32.vlgmr.msra.gmra.mrb[28].mxu1 %vm1549_vm3, %v3798_v1  ;;  %v7228_v1 = vld [vmem:[%s9027_s0 + $0x90] sm:$0xff] }
0x155d   : > { %8366 = vmatpush3.bf16.msra.mxu1 %v8363_v58  ;;  %8380 = vmatprep.subr.bf16.mxu0 %v8379_v0  ;;  %v8367_v4 = vpack.c.bf16 %v7229_v2, %v7228_v1 }
0x155f   : > { %8368 = vmatprep.subr.bf16.mxu1 %v8367_v4 }
0x1561   : > { %8370 = vmatpush3.bf16.msra.mxu1 %v8367_v4 }
0x1562   : > { %8372 = vmatprep.subr.bf16.mxu1 %v8371_v14 }
0x162f   : > { %v7876_v19 = vpop.f32.mrb[28].mxu1 }
0x1630   : > { %v3888_v20 = vadd.f32 %v7876_v19, %v7216_v17  ;;  %v3882_v21 = vpop.f32.mrb[29].mxu1 }
0x1631   : > { %v3883_v23 = vadd.f32 %v7216_v17, %v3882_v21  ;;  %v7224_v21 = vld [vmem:[%s9047_s26 + $0x1] ss:$0 sm:$0xff]  ;;  %s9657_s26 = sld [smem:[#allocation4_spill]] }
0x1632   : > { %v3894_v24 = vmul.f32 0.044715, %v3888_v20  ;;  %v3892_v39 = vmul.f32 0.5, %v3888_v20 }
0x1633   : > { %v3893_v25 = vmul.f32 0.044715, %v3883_v23  ;;  %v3891_v38 = vmul.f32 0.5, %v3883_v23 }
0x1634   : > { %v3896_v26 = vmul.f32 %v3894_v24, %v3888_v20 }
0x1635   : > { %v3895_v27 = vmul.f32 %v3893_v25, %v3883_v23 }
0x1636   : > { %v3898_v28 = vmul.f32 %v3896_v26, %v3888_v20  ;;  %v7225_v26 = vld [vmem:[%s9051_s28 + $0x1] ss:$0 sm:$0xff]  ;;  %s7377_s28 = sshll.u32 %s9660_s16, 5 }
0x1637   : > { %v3897_v29 = vmul.f32 %v3895_v27, %v3883_v23 }
0x1638   : > { %v3900_v30 = vadd.f32 %v3898_v28, %v3888_v20 }
0x1639   : > { %v3899_v31 = vadd.f32 %v3897_v29, %v3883_v23  ;;  %v7234_v29 = vld [vmem:[%s9041_s23 + $0x90] sm:$0xff] }
0x163a   : > { %v3902_v34 = vmul.f32 0.7978846, %v3900_v30  ;;  %v7235_v30 = vld [vmem:[%s9041_s23 + $0x98] sm:$0xff] }
0x163b   : > { %v3901_v35 = vmul.f32 0.7978846, %v3899_v31 }
0x163c   : > { %8651 = vtanh.f32 %v3902_v34 }
0x163d   : > { %8653 = vtanh.f32 %v3901_v35  ;;  %v8375_v35 = vpack.c.bf16 %v7235_v30, %v7234_v29 }
0x1646   : > { %v8652_v36 = vpop.eup %8651 }
0x1647   : > { %v8654_v37 = vpop.eup %8653  ;;  %v3906_v13 = vadd.f32 1.0, %v8652_v36 }
0x1648   : > { %v3905_v7 = vadd.f32 1.0, %v8654_v37 }
0x1649   : > { %v3908_v41 = vmul.f32 %v3906_v13, %v3892_v39  ;;  %v7252_v39 = vld [vmem:[%s9027_s0 + $0xa0] sm:$0xff] }
0x164a   : > { %v3907_v40 = vmul.f32 %v3905_v7, %v3891_v38 }
0x164c   : > { %7893 = vmatprep.mubr.msk.f32.mxu0 %vm1363_vm0, %v3907_v40  ;;  %v7253_v40 = vld [vmem:[%s9027_s0 + $0xa8] sm:$0xff] }
0x164d   : > { %7894 = vmatmul.mubr.msk.f32.vlgmr.msra.gmra.mrb[18].mxu0 %vm1363_vm0, %v3908_v41 }
0x164e   : > { %8382 = vmatpush3.bf16.msra.mxu0 %v8379_v0 }
0x164f   : > { %8384 = vmatprep.subr.bf16.mxu0 %v8383_v8 }
0x1652   : > { %8386 = vmatpush3.bf16.msra.mxu0 %v8383_v8 }
0x1720   : > { %v7895_v43 = vpop.f32.mrb[18].mxu0 }
0x1721   : > { %v4002_v44 = vadd.f32 %v7895_v43, %v7219_v42  ;;  %v3996_v45 = vpop.f32.mrb[19].mxu0 }
0x1722   : > { %v3997_v46 = vadd.f32 %v7219_v42, %v3996_v45  ;;  %v7254_v45 = vld [vmem:[%s9027_s0 + $0xb0] sm:$0xff] }
0x1723   : > { %v9331_v47 = vadd.f32 %v4002_v44, %v9273_v32  ;;  %v8399_v44 = vpack.c.bf16 %v7253_v40, %v7252_v39 }
0x1724   : > { %v9334_v48 = vadd.f32 %v3997_v46, %v9275_v33  ;;  %v7255_v46 = vld [vmem:[%s9027_s0 + $0xb8] sm:$0xff] }
0x1725   : > { %v4014_v49 = vsel %vm1553_vm4, %v9331_v47, 0.0 }
0x1726   : > { %4015 = vadd.xlane.f32.xlu1 %v4014_v49  ;;  %v4011_v50 = vsel %vm1549_vm3, %v9334_v48, 0.0  ;;  %v8403_v49 = vpack.c.bf16 %v7255_v46, %v7254_v45 }
0x1727   : > { %4012 = vadd.xlane.f32.xlu0 %v4011_v50  ;;  %v7264_v50 = vld [vmem:[%s9032_s18 + $0xa0] sm:$0xff] }
0x17b3   : > { %v4016_v51 = vpop.xlane.xlu1 %4015 }
0x17b4   : > { %v4018_v53 = vmul.f32 0.03125, %v4016_v51  ;;  %v4013_v54 = vpop.xlane.xlu0 %4012  ;;  %v7265_v51 = vld [vmem:[%s9032_s18 + $0xa8] sm:$0xff] }
0x17b5   : > { %v4017_v32 = vmul.f32 0.03125, %v4013_v54  ;;  %v7266_v54 = vld [vmem:[%s9032_s18 + $0xb0] sm:$0xff] }
0x17b6   : > { %v4020_v55 = vsub.f32 %v9331_v47, %v4018_v53  ;;  %v8415_v53 = vpack.c.bf16 %v7265_v51, %v7264_v50 }
0x17b7   : > { %v4019_v33 = vsub.f32 %v9334_v48, %v4017_v32  ;;  %v7267_v32 = vld [vmem:[%s9032_s18 + $0xb8] sm:$0xff] }
0x17b8   : > { %v4022_v59 = vmul.f32 %v4020_v55, %v4020_v55 }
0x17b9   : > { %v4021_v60 = vmul.f32 %v4019_v33, %v4019_v33 }
0x17ba   : > { %v4026_v52 = vsel %vm1553_vm4, %v4022_v59, 0.0 }
0x17bb   : > { %4027 = vadd.xlane.f32.xlu1 %v4026_v52  ;;  %v4023_v61 = vsel %vm1549_vm3, %v4021_v60, 0.0 }
0x17bc   : > { %4024 = vadd.xlane.f32.xlu0 %v4023_v61  ;;  %v9401_v61 = vld [vmem:[%s9109_s1 + $0x8] sm:$0x3] }
0x1848   : > { %v4028_v15 = vpop.xlane.xlu1 %4027 }
0x1849   : > { %v4030_v22 = vmul.f32 0.03125, %v4028_v15  ;;  %v4025_v18 = vpop.xlane.xlu0 %4024 }
0x184a   : > { %v4029_v16 = vmul.f32 0.03125, %v4025_v18 }
0x184b   : > { %v4032_v17 = vadd.f32 1e-05, %v4030_v22 }
0x184c   : > { %v4031_v19 = vadd.f32 1e-05, %v4029_v16 }
0x184d   : > { %8655 = vrsqrt.f32 %v4032_v17 }
0x184e   : > { %8657 = vrsqrt.f32 %v4031_v19  ;;  %v7258_v19 = vld [vmem:[%s9041_s23 + $0xa0] sm:$0xff] }
0x1857   : > { %v8656_v20 = vpop.eup %8655 }
0x1858   : > { %v8658_v23 = vpop.eup %8657  ;;  %v4036_v24 = vmul.f32 %v8656_v20, %v4020_v55  ;;  %v8419_v55 = vpack.c.bf16 %v7267_v32, %v7266_v54  ;;  %v7259_v20 = vld [vmem:[%s9041_s23 + $0xa8] sm:$0xff] }
0x1859   : > { %v4035_v25 = vmul.f32 %v8658_v23, %v4019_v33 }
0x185a   : > { %v4044_v27 = vmul.f32 %v7224_v21, %v4036_v24 }
0x185b   : > { %v4043_v28 = vmul.f32 %v7224_v21, %v4035_v25  ;;  %v8407_v21 = vpack.c.bf16 %v7259_v20, %v7258_v19  ;;  %v7288_v19 = vld [vmem:[%s9041_s23 + $0xc0] sm:$0xff]  ;;  %v7289_v20 = vld [vmem:[%s9041_s23 + $0xc8] sm:$0xff] }
0x185c   : > { %v9360_v34 = vadd.f32 %v7225_v26, %v4044_v27  ;;  %v7261_v27 = vld [vmem:[%s9041_s23 + $0xb8] sm:$0xff] }
0x185d   : > { %v9358_v31 = vadd.f32 %v7225_v26, %v4043_v28  ;;  %v7260_v26 = vld [vmem:[%s9041_s23 + $0xb0] sm:$0xff] }
0x185f   : > { %7904 = vmatprep.mubr.msk.f32.mxu1 %vm1549_vm3, %v9358_v31  ;;  %7926 = vmatprep.mubr.msk.f32.mxu0 %vm1549_vm3, %v9358_v31 }
0x1860   : > { %7905 = vmatmul.mubr.msk.f32.vlgmr.msra.gmra.mrb[30].mxu1 %vm1549_vm3, %v9360_v34  ;;  %7927 = vmatmul.mubr.msk.f32.vlgmr.msra.gmra.mrb[20].mxu0 %vm1549_vm3, %v9360_v34 }
0x1861   : > { %8374 = vmatpush3.bf16.msra.mxu1 %v8371_v14  ;;  %7915 = vmatprep.mubr.msk.f32.mxu1 %vm1549_vm3, %v9358_v31 }
0x1862   : > { %8376 = vmatprep.subr.bf16.mxu1 %v8375_v35 }
0x1865   : > { %8378 = vmatpush3.bf16.msra.mxu1 %v8375_v35  ;;  %v8411_v35 = vpack.c.bf16 %v7261_v27, %v7260_v26  ;;  %v7291_v26 = vld [vmem:[%s9041_s23 + $0xd8] sm:$0xff] }
0x1868   : > { %7916 = vmatmul.mubr.msk.f32.vlgmr.msra.gmra.mrb[32].mxu1 %vm1549_vm3, %v9360_v34 }
0x1933   : > { %v7906_v36 = vpop.f32.mrb[30].mxu1  ;;  %v7928_v37 = vpop.f32.mrb[20].mxu0 }
0x1934   : > { %v4130_v13 = vpop.f32.mrb[31].mxu1  ;;  %v4290_v38 = vpop.f32.mrb[21].mxu0 }
0x1935   : > { %v8393_v7 = vpack.c.bf16 %v7928_v37, %v4290_v38  ;;  %7933 = vmatprep.mubr.msk.f32.mxu1 %vm1901_vm5, %v4130_v13 }
0x1937   : > { %8395 = vmatprep.subr.msk.bf16.mxu0 %vm9082_vm7, %v8393_v7 }
0x1938   : > { %8398 = vmatpush3.bf16.msk.msra.mxu0 %vm9082_vm7, %v8393_v7 }
0x1939   : > { %8408 = vmatprep.subr.bf16.mxu0 %v8407_v21 }
0x193b   : > { %v7917_v41 = vpop.f32.mrb[32].mxu1 }
0x193c   : > { %v4210_v42 = vpop.f32.mrb[33].mxu1 }
0x193d   : > { %v8387_v43 = vpack.c.bf16 %v7917_v41, %v4210_v42 }
0x193f   : > { %8389 = vmatprep.subr.msk.bf16.mxu1 %vm9093_vm8, %v8387_v43 }
0x1940   : > { %8392 = vmatpush3.bf16.xpose.msk.msra.mxu1 %vm9093_vm8, %v8387_v43 }
0x1941   : > { %8400 = vmatprep.subr.bf16.mxu1 %v8399_v44 }
0x1947   : > { %7934 = vmatmul.mubr.msk.f32.vlgmr.msra.gmra.mrb[34].mxu1 %vm1901_vm5, %v7906_v36 }
0x1948   : > { %8402 = vmatpush3.bf16.msra.mxu1 %v8399_v44  ;;  %7951 = vmatprep.mubr.msk.f32.mxu1 %vm1549_vm3, %v9358_v31 }
0x1949   : > { %8404 = vmatprep.subr.bf16.mxu1 %v8403_v49 }
0x194c   : > { %8406 = vmatpush3.bf16.msra.mxu1 %v8403_v49 }
0x194d   : > { %8416 = vmatprep.subr.bf16.mxu1 %v8415_v53 }
0x194f   : > { %7952 = vmatmul.mubr.msk.f32.vlgmr.msra.gmra.mrb[36].mxu1 %vm1549_vm3, %v9360_v34 }
0x1950   : > { %8418 = vmatpush3.bf16.msra.mxu1 %v8415_v53  ;;  %7973 = vmatprep.mubr.msk.f32.mxu1 %vm1549_vm3, %v9358_v31 }
0x1951   : > { %8420 = vmatprep.subr.bf16.mxu1 %v8419_v55 }
0x1954   : > { %8422 = vmatpush3.bf16.msra.mxu1 %v8419_v55 }
0x1957   : > { %7974 = vmatmul.mubr.msk.f32.vlgmr.msra.gmra.mrb[38].mxu1 %vm1549_vm3, %v9360_v34 }
0x1a1a   : > { %v7935_v33 = vpop.f32.mrb[34].mxu1 }
0x1a1b   : > { %v4387_v59 = vmul.f32 0.35355338, %v7935_v33  ;;  %v4377_v60 = vpop.f32.mrb[35].mxu1 }
0x1a1c   : > { %v4386_v52 = vmul.f32 0.35355338, %v4377_v60 }
0x1a1d   : > { %v4389_v57 = vadd.f32 %v9401_v61, %v4387_v59 }
0x1a1e   : > { %v4388_v58 = vadd.f32 %v9405_v62, %v4386_v52  ;;  %v7282_v52 = vld [vmem:[%s9027_s0 + $0xc0] sm:$0xff] }
0x1a1f   : > { %v4393_v63 = vsel %vm1997_vm10, %v4389_v57, -inf }
0x1a20   : > { %4394 = vmax.xlane.f32.xlu1 %v4393_v63  ;;  %v4390_v56 = vsel %vm1993_vm9, %v4388_v58, -inf  ;;  %v7277_v63 = vld [vmem:[%s9183_s7 + $0x28] sm:$0xff] }
0x1a21   : > { %4391 = vmax.xlane.f32.xlu0 %v4390_v56 }
0x1a22   : > { %v7953_v0 = vpop.f32.mrb[36].mxu1 }
0x1a23   : > { %v4569_v1 = vpop.f32.mrb[37].mxu1 }
0x1a2a   : > { %v7975_v2 = vpop.f32.mrb[38].mxu1 }
0x1a2b   : > { %v4729_v4 = vpop.f32.mrb[39].mxu1 }
0x1a2c   : > { %v8429_v5 = vpack.c.bf16 %v7975_v2, %v4729_v4  ;;  %v7284_v2 = vld [vmem:[%s9027_s0 + $0xd0] sm:$0xff]  ;;  %v7285_v4 = vld [vmem:[%s9027_s0 + $0xd8] sm:$0xff] }
0x1a2e   : > { %8431 = vmatprep.subr.msk.bf16.mxu1 %vm9082_vm7, %v8429_v5 }
0x1a2f   : > { %8434 = vmatpush3.bf16.msk.msra.mxu1 %vm9082_vm7, %v8429_v5 }
0x1aad   : > { %v4395_v6 = vpop.xlane.xlu1 %4394 }
0x1aae   : > { %v4397_v8 = vsub.f32 %v4389_v57, %v4395_v6  ;;  %v4392_v10 = vpop.xlane.xlu0 %4391  ;;  %v7283_v57 = vld [vmem:[%s9027_s0 + $0xc8] sm:$0xff] }
0x1aaf   : > { %v4396_v12 = vsub.f32 %v4388_v58, %v4392_v10  ;;  %v8435_v58 = vpack.c.bf16 %v7283_v57, %v7282_v52  ;;  %v8439_v10 = vpack.c.bf16 %v7285_v4, %v7284_v2  ;;  %v7311_v52 = vld [vmem:[%s9027_s0 + $0xe8] sm:$0xff]  ;;  %v7313_v2 = vld [vmem:[%s9027_s0 + $0xf8] sm:$0xff] }
0x1ab0   : > { %v4400_v14 = vmul.f32 1.442695, %v4397_v8 }
0x1ab1   : > { %v4398_v15 = vmul.f32 1.442695, %v4396_v12  ;;  %8436 = vmatprep.subr.bf16.mxu1 %v8435_v58  ;;  %v7294_v12 = vld [vmem:[%s9032_s18 + $0xc0] sm:$0xff] }
0x1ab2   : > { %8659 = vpow2.f32 %v4400_v14  ;;  %v7295_v14 = vld [vmem:[%s9032_s18 + $0xc8] sm:$0xff] }
0x1ab3   : > { %8661 = vpow2.f32 %v4398_v15  ;;  %v8451_v15 = vpack.c.bf16 %v7295_v14, %v7294_v12  ;;  %v7323_v12 = vld [vmem:[%s9032_s18 + $0xe8] sm:$0xff] }
0x1abc   : > { %v8660_v22 = vpop.eup %8659 }
0x1abd   : > { %v8662_v18 = vpop.eup %8661  ;;  %v4405_v16 = vsel %vm1997_vm10, %v8660_v22, 0.0 }
0x1abe   : > { %4406 = vadd.xlane.f32.xlu1 %v4405_v16  ;;  %v4402_v17 = vsel %vm1993_vm9, %v8662_v18, 0.0 }
0x1abf   : > { %4403 = vadd.xlane.f32.xlu0 %v4402_v17  ;;  %v7251_v17 = vld [vmem:[%s9183_s7 + $0x20] sm:$0xff] }
0x1b4b   : > { %v4407_v23 = vpop.xlane.xlu1 %4406 }
0x1b4c   : > { %8663 = vrcp.f32 %v4407_v23  ;;  %v4404_v24 = vpop.xlane.xlu0 %4403 }
0x1b4d   : > { %8665 = vrcp.f32 %v4404_v24  ;;  %v8443_v24 = vpack.c.bf16 %v7289_v20, %v7288_v19  ;;  %v7318_v20 = vld [vmem:[%s9041_s23 + $0xf0] sm:$0xff] }
0x1b56   : > { %v8664_v25 = vpop.eup %8663 }
0x1b57   : > { %v8666_v28 = vpop.eup %8665  ;;  %v4411_v30 = vmul.f32 %v8664_v25, %v8660_v22  ;;  %v7296_v22 = vld [vmem:[%s9032_s18 + $0xd0] sm:$0xff] }
0x1b58   : > { %v4409_v29 = vmul.f32 %v8666_v28, %v8662_v18  ;;  %v7297_v18 = vld [vmem:[%s9032_s18 + $0xd8] sm:$0xff]  ;;  %v7290_v25 = vld [vmem:[%s9041_s23 + $0xd0] sm:$0xff] }
0x1b59   : > { %v8455_v16 = vpack.c.bf16 %v7297_v18, %v7296_v22  ;;  %v7325_v22 = vld [vmem:[%s9032_s18 + $0xf8] sm:$0xff] }
0x1b5a   : > { %7940 = vmatprep.mubr.msk.f32.mxu0 %vm1993_vm9, %v4409_v29  ;;  %v8447_v29 = vpack.c.bf16 %v7291_v26, %v7290_v25 }
0x1b5b   : > { %7941 = vmatmul.mubr.msk.f32.vlgmr.msra.gmra.mrb[22].mxu0 %vm1993_vm9, %v4411_v30 }
0x1b5c   : > { %8410 = vmatpush3.bf16.msra.mxu0 %v8407_v21  ;;  %7962 = vmatprep.mubr.msk.f32.mxu0 %vm1549_vm3, %v9358_v31 }
0x1b5d   : > { %8412 = vmatprep.subr.bf16.mxu0 %v8411_v35 }
0x1b60   : > { %8414 = vmatpush3.bf16.msra.mxu0 %v8411_v35 }
0x1b63   : > { %7963 = vmatmul.mubr.msk.f32.vlgmr.msra.gmra.mrb[24].mxu0 %vm1549_vm3, %v9360_v34 }
0x1b64   : > { %7980 = vmatprep.mubr.msk.f32.mxu0 %vm1901_vm5, %v4569_v1 }
0x1c2e   : > { %v9427_v36 = vpop.f32.mrb[22].mxu0 }
0x1c2f   : > { %v9429_v37 = vpop.f32.mrb[23].mxu0 }
0x1c36   : > { %v7964_v13 = vpop.f32.mrb[24].mxu0 }
0x1c37   : > { %v4649_v38 = vpop.f32.mrb[25].mxu0 }
0x1c38   : > { %v8423_v7 = vpack.c.bf16 %v7964_v13, %v4649_v38 }
0x1c3a   : > { %8425 = vmatprep.subr.msk.bf16.mxu0 %vm9093_vm8, %v8423_v7 }
0x1c3b   : > { %8428 = vmatpush3.bf16.xpose.msk.msra.mxu0 %vm9093_vm8, %v8423_v7 }
0x1c3c   : > { %7990 = vmatprep.subr.mxu0 %v7277_v63 }
0x1c42   : > { %7981 = vmatmul.mubr.msk.f32.vlgmr.msra.gmra.mrb[26].mxu0 %vm1901_vm5, %v7953_v0 }
0x1c43   : > { %7991 = vmatpush3.msra.mxu0 %v7277_v63 }
0x1c44   : > { %7995 = vmatprep.subr.mxu0 %v7251_v17 }
0x1d15   : > { %v7982_v39 = vpop.f32.mrb[26].mxu0 }
0x1d16   : > { %v4826_v40 = vmul.f32 0.35355338, %v7982_v39  ;;  %v4816_v41 = vpop.f32.mrb[27].mxu0 }
0x1d17   : > { %v4825_v42 = vmul.f32 0.35355338, %v4816_v41 }
0x1d18   : > { %v4828_v43 = vadd.f32 %v9401_v61, %v4826_v40 }
0x1d19   : > { %v4827_v44 = vadd.f32 %v9405_v62, %v4825_v42 }
0x1d1a   : > { %v4832_v45 = vsel %vm1997_vm10, %v4828_v43, -inf }
0x1d1b   : > { %4833 = vmax.xlane.f32.xlu1 %v4832_v45  ;;  %v4829_v46 = vsel %vm1993_vm9, %v4827_v44, -inf }
0x1d1c   : > { %4830 = vmax.xlane.f32.xlu0 %v4829_v46 }
0x1da8   : > { %v4834_v49 = vpop.xlane.xlu1 %4833 }
0x1da9   : > { %v4836_v50 = vsub.f32 %v4828_v43, %v4834_v49  ;;  %v4831_v51 = vpop.xlane.xlu0 %4830 }
0x1daa   : > { %v4835_v53 = vsub.f32 %v4827_v44, %v4831_v51 }
0x1dab   : > { %v4839_v54 = vmul.f32 1.442695, %v4836_v50 }
0x1dac   : > { %v4837_v32 = vmul.f32 1.442695, %v4835_v53 }
0x1dad   : > { %8667 = vpow2.f32 %v4839_v54 }
0x1dae   : > { %8669 = vpow2.f32 %v4837_v32 }
0x1db7   : > { %v8668_v55 = vpop.eup %8667 }
0x1db8   : > { %v8670_v33 = vpop.eup %8669  ;;  %v4844_v59 = vsel %vm1997_vm10, %v8668_v55, 0.0 }
0x1db9   : > { %4845 = vadd.xlane.f32.xlu1 %v4844_v59  ;;  %v4841_v60 = vsel %vm1993_vm9, %v8670_v33, 0.0 }
0x1dba   : > { %4842 = vadd.xlane.f32.xlu0 %v4841_v60  ;;  %v7310_v60 = vld [vmem:[%s9027_s0 + $0xe0] sm:$0xff] }
0x1dbb   : > { %v8471_v57 = vpack.c.bf16 %v7311_v52, %v7310_v60 }
0x1e46   : > { %v4846_v56 = vpop.xlane.xlu1 %4845 }
0x1e47   : > { %8671 = vrcp.f32 %v4846_v56  ;;  %v4843_v0 = vpop.xlane.xlu0 %4842 }
0x1e48   : > { %8673 = vrcp.f32 %v4843_v0 }
0x1e51   : > { %v8672_v1 = vpop.eup %8671 }
0x1e52   : > { %v8674_v5 = vpop.eup %8673  ;;  %v4850_v8 = vmul.f32 %v8672_v1, %v8668_v55  ;;  %v7312_v1 = vld [vmem:[%s9027_s0 + $0xf0] sm:$0xff] }
0x1e53   : > { %v4848_v6 = vmul.f32 %v8674_v5, %v8670_v33 }
0x1e55   : > { %7987 = vmatprep.mubr.msk.f32.mxu1 %vm1993_vm9, %v4848_v6 }
0x1e56   : > { %7988 = vmatmul.mubr.msk.f32.vlgmr.msra.gmra.mrb[40].mxu1 %vm1993_vm9, %v4850_v8  ;;  %v8475_v8 = vpack.c.bf16 %v7313_v2, %v7312_v1 }
0x1e57   : > { %8438 = vmatpush3.bf16.msra.mxu1 %v8435_v58  ;;  %8008 = vmatprep.mubr.msk.f32.mxu1 %vm1549_vm3, %v9358_v31  ;;  %v7307_v58 = vld [vmem:[%s9183_s7 + $0x30] sm:$0xff] }
0x1e58   : > { %8440 = vmatprep.subr.bf16.mxu1 %v8439_v10 }
0x1e5b   : > { %8442 = vmatpush3.bf16.msra.mxu1 %v8439_v10  ;;  %v7322_v10 = vld [vmem:[%s9032_s18 + $0xe0] sm:$0xff] }
0x1e5c   : > { %8452 = vmatprep.subr.bf16.mxu1 %v8451_v15  ;;  %v8487_v14 = vpack.c.bf16 %v7323_v12, %v7322_v10 }
0x1e5e   : > { %8009 = vmatmul.mubr.msk.f32.vlgmr.msra.gmra.mrb[42].mxu1 %vm1549_vm3, %v9360_v34 }
0x1e5f   : > { %8454 = vmatpush3.bf16.msra.mxu1 %v8451_v15  ;;  %8030 = vmatprep.mubr.msk.f32.mxu1 %vm1549_vm3, %v9358_v31  ;;  %v7324_v15 = vld [vmem:[%s9032_s18 + $0xf0] sm:$0xff]  ;;  %s9656_s18 = sld [smem:[#allocation3_spill]] }
0x1e60   : > { %8456 = vmatprep.subr.bf16.mxu1 %v8455_v16  ;;  %v8491_v18 = vpack.c.bf16 %v7325_v22, %v7324_v15 }
0x1e63   : > { %8458 = vmatpush3.bf16.msra.mxu1 %v8455_v16  ;;  %v7316_v16 = vld [vmem:[%s9041_s23 + $0xe0] sm:$0xff] }
0x1e66   : > { %8031 = vmatmul.mubr.msk.f32.vlgmr.msra.gmra.mrb[44].mxu1 %vm1549_vm3, %v9360_v34 }
0x1f29   : > { %v7989_v21 = vpop.f32.mrb[40].mxu1 }
0x1f2a   : > { %v4926_v23 = vpop.f32.mrb[41].mxu1 }
0x1f2b   : > { %7992 = vmatprep.mubr.msk.f32.mxu0 %vm1901_vm5, %v4926_v23 }
0x1f2c   : > { %7993 = vmatmul.mubr.msk.f32.vlgmr.msra.gmra.mrb[28].mxu0 %vm1901_vm5, %v7989_v21  ;;  %v7319_v21 = vld [vmem:[%s9041_s23 + $0xf8] sm:$0xff] }
0x1f2d   : > { %7996 = vmatpush3.msra.mxu0 %v7251_v17  ;;  %7997 = vmatprep.mubr.msk.f32.mxu0 %vm1901_vm5, %v9429_v37  ;;  %v7317_v17 = vld [vmem:[%s9041_s23 + $0xe8] sm:$0xff]  ;;  %v8483_v25 = vpack.c.bf16 %v7319_v21, %v7318_v20  ;;  %v7346_v20 = vld [vmem:[%s9288_s3 + $0x30] sm:$0xff]  ;;  %v7347_v21 = vld [vmem:[%s9288_s3 + $0x38] sm:$0xff] }
0x1f2e   : > { %8444 = vmatprep.subr.bf16.mxu0 %v8443_v24  ;;  %v8479_v19 = vpack.c.bf16 %v7317_v17, %v7316_v16  ;;  %v7344_v16 = vld [vmem:[%s9288_s3 + $0x20] sm:$0xff]  ;;  %v7345_v17 = vld [vmem:[%s9288_s3 + $0x28] sm:$0xff]  ;;  %s9653_s3 = sld [smem:[#allocation10_spill]] }
0x1f31   : > { %v8010_v27 = vpop.f32.mrb[42].mxu1 }
0x1f32   : > { %v5169_v28 = vpop.f32.mrb[43].mxu1 }
0x1f34   : > { %7998 = vmatmul.mubr.msk.f32.vlgmr.msra.gmra.mrb[28].mxu0 %vm1901_vm5, %v9427_v36  ;;  %s1273_s0 = scalar_lea.vmem %s9653_s3, %s9660_s16 }
0x1f35   : > { %8446 = vmatpush3.bf16.msra.mxu0 %v8443_v24  ;;  %8019 = vmatprep.mubr.msk.f32.mxu0 %vm1549_vm3, %v9358_v31 }
0x1f36   : > { %8448 = vmatprep.subr.bf16.mxu0 %v8447_v29 }
0x1f39   : > { %8450 = vmatpush3.bf16.msra.mxu0 %v8447_v29  ;;  %v8032_v30 = vpop.f32.mrb[44].mxu1 }
0x1f3a   : > { %v5329_v35 = vpop.f32.mrb[45].mxu1 }
0x1f3b   : > { %v8465_v13 = vpack.c.bf16 %v8032_v30, %v5329_v35 }
0x1f3c   : > { %8020 = vmatmul.mubr.msk.f32.vlgmr.msra.gmra.mrb[30].mxu0 %vm1549_vm3, %v9360_v34 }
0x1f3d   : > { %8037 = vmatprep.mubr.msk.f32.mxu0 %vm1901_vm5, %v5169_v28  ;;  %8467 = vmatprep.subr.msk.bf16.mxu1 %vm9082_vm7, %v8465_v13 }
0x1f3e   : > { %8470 = vmatpush3.bf16.msk.msra.mxu1 %vm9082_vm7, %v8465_v13 }
0x1f3f   : > { %8472 = vmatprep.subr.bf16.mxu1 %v8471_v57 }
0x200f   : > { %v8021_v36 = vpop.f32.mrb[30].mxu0 }
0x2010   : > { %v5249_v37 = vpop.f32.mrb[31].mxu0 }
0x2011   : > { %v8459_v38 = vpack.c.bf16 %v8021_v36, %v5249_v37 }
0x2013   : > { %8461 = vmatprep.subr.msk.bf16.mxu0 %vm9093_vm8, %v8459_v38 }
0x2014   : > { %8464 = vmatpush3.bf16.xpose.msk.msra.mxu0 %vm9093_vm8, %v8459_v38 }
0x2015   : > { %8047 = vmatprep.subr.mxu0 %v7307_v58 }
0x201b   : > { %8038 = vmatmul.mubr.msk.f32.vlgmr.msra.gmra.mrb[32].mxu0 %vm1901_vm5, %v8010_v27 }
0x201c   : > { %8048 = vmatpush3.msra.mxu0 %v7307_v58  ;;  %v7339_v58 = vld [vmem:[%s9268_s11 + $0x1] ss:$0 sm:$0xff]  ;;  %s1356_s11 = scalar_lea.vmem %s8906_s24, %s8985_s22 }
0x201d   : > { %8480 = vmatprep.subr.bf16.mxu0 %v8479_v19 }
0x20ee   : > { %v8039_v7 = vpop.f32.mrb[32].mxu0 }
0x20ef   : > { %v5426_v39 = vmul.f32 0.35355338, %v8039_v7  ;;  %v5416_v40 = vpop.f32.mrb[33].mxu0 }
0x20f0   : > { %v5425_v41 = vmul.f32 0.35355338, %v5416_v40 }
0x20f1   : > { %v5428_v42 = vadd.f32 %v9401_v61, %v5426_v39 }
0x20f2   : > { %v5427_v43 = vadd.f32 %v9405_v62, %v5425_v41 }
0x20f3   : > { %v5432_v44 = vsel %vm1997_vm10, %v5428_v42, -inf }
0x20f4   : > { %5433 = vmax.xlane.f32.xlu1 %v5432_v44  ;;  %v5429_v45 = vsel %vm1993_vm9, %v5427_v43, -inf }
0x20f5   : > { %5430 = vmax.xlane.f32.xlu0 %v5429_v45 }
0x2181   : > { %v5434_v46 = vpop.xlane.xlu1 %5433 }
0x2182   : > { %v5436_v49 = vsub.f32 %v5428_v42, %v5434_v46  ;;  %v5431_v50 = vpop.xlane.xlu0 %5430 }
0x2183   : > { %v5435_v51 = vsub.f32 %v5427_v43, %v5431_v50 }
0x2184   : > { %v5439_v53 = vmul.f32 1.442695, %v5436_v49 }
0x2185   : > { %v5437_v54 = vmul.f32 1.442695, %v5435_v51  ;;  %v7335_v51 = vld [vmem:[%s9183_s7 + $0x38] sm:$0xff]  ;;  %s9658_s7 = sld [smem:[#allocation11_spill]] }
0x2186   : > { %8675 = vpow2.f32 %v5439_v53 }
0x2187   : > { %8677 = vpow2.f32 %v5437_v54 }
0x2190   : > { %v8676_v32 = vpop.eup %8675 }
0x2191   : > { %v8678_v55 = vpop.eup %8677  ;;  %v5444_v33 = vsel %vm1997_vm10, %v8676_v32, 0.0 }
0x2192   : > { %5445 = vadd.xlane.f32.xlu1 %v5444_v33  ;;  %v5441_v59 = vsel %vm1993_vm9, %v8678_v55, 0.0 }
0x2193   : > { %5442 = vadd.xlane.f32.xlu0 %v5441_v59 }
0x221f   : > { %v5446_v63 = vpop.xlane.xlu1 %5445 }
0x2220   : > { %8679 = vrcp.f32 %v5446_v63  ;;  %v5443_v56 = vpop.xlane.xlu0 %5442 }
0x2221   : > { %8681 = vrcp.f32 %v5443_v56 }
0x222a   : > { %v8680_v0 = vpop.eup %8679 }
0x222b   : > { %v8682_v4 = vpop.eup %8681  ;;  %v5450_v6 = vmul.f32 %v8680_v0, %v8676_v32 }
0x222c   : > { %v5448_v5 = vmul.f32 %v8682_v4, %v8678_v55 }
0x222e   : > { %8044 = vmatprep.mubr.msk.f32.mxu1 %vm1993_vm9, %v5448_v5 }
0x222f   : > { %8045 = vmatmul.mubr.msk.f32.vlgmr.msra.gmra.mrb[46].mxu1 %vm1993_vm9, %v5450_v6 }
0x2230   : > { %8474 = vmatpush3.bf16.msra.mxu1 %v8471_v57  ;;  %8060 = vmatprep.mubr.msk.f32.mxu1 %vm1549_vm3, %v9358_v31 }
0x2231   : > { %8476 = vmatprep.subr.bf16.mxu1 %v8475_v8 }
0x2234   : > { %8478 = vmatpush3.bf16.msra.mxu1 %v8475_v8 }
0x2235   : > { %8488 = vmatprep.subr.bf16.mxu1 %v8487_v14 }
0x2237   : > { %8061 = vmatmul.mubr.msk.f32.vlgmr.msra.gmra.mrb[48].mxu1 %vm1549_vm3, %v9360_v34 }
0x2238   : > { %8490 = vmatpush3.bf16.msra.mxu1 %v8487_v14  ;;  %8082 = vmatprep.mubr.msk.f32.mxu1 %vm1549_vm3, %v9358_v31 }
0x2239   : > { %8492 = vmatprep.subr.bf16.mxu1 %v8491_v18 }
0x223c   : > { %8494 = vmatpush3.bf16.msra.mxu1 %v8491_v18 }
0x223f   : > { %8083 = vmatmul.mubr.msk.f32.vlgmr.msra.gmra.mrb[50].mxu1 %vm1549_vm3, %v9360_v34 }
0x2302   : > { %v8046_v23 = vpop.f32.mrb[46].mxu1 }
0x2303   : > { %v5526_v24 = vpop.f32.mrb[47].mxu1 }
0x2304   : > { %8049 = vmatprep.mubr.msk.f32.mxu0 %vm1901_vm5, %v5526_v24 }
0x2305   : > { %8050 = vmatmul.mubr.msk.f32.vlgmr.msra.gmra.mrb[28].mxu0 %vm1901_vm5, %v8046_v23  ;;  %v8511_v23 = vpack.c.bf16 %v7347_v21, %v7346_v20 }
0x2306   : > { %8482 = vmatpush3.bf16.msra.mxu0 %v8479_v19  ;;  %8071 = vmatprep.mubr.msk.f32.mxu0 %vm1549_vm3, %v9358_v31  ;;  %v8507_v19 = vpack.c.bf16 %v7345_v17, %v7344_v16 }
0x2307   : > { %8484 = vmatprep.subr.bf16.mxu0 %v8483_v25 }
0x230a   : > { %v8062_v26 = vpop.f32.mrb[48].mxu1  ;;  %8486 = vmatpush3.bf16.msra.mxu0 %v8483_v25 }
0x230b   : > { %v5690_v27 = vpop.f32.mrb[49].mxu1 }
0x230d   : > { %8072 = vmatmul.mubr.msk.f32.vlgmr.msra.gmra.mrb[34].mxu0 %vm1549_vm3, %v9360_v34 }
0x230e   : > { %8089 = vmatprep.mubr.msk.f32.mxu0 %vm1901_vm5, %v5690_v27 }
0x2312   : > { %v8084_v28 = vpop.f32.mrb[50].mxu1 }
0x2313   : > { %v5850_v29 = vpop.f32.mrb[51].mxu1 }
0x2314   : > { %v8501_v30 = vpack.c.bf16 %v8084_v28, %v5850_v29 }
0x2316   : > { %8503 = vmatprep.subr.msk.bf16.mxu1 %vm9082_vm7, %v8501_v30 }
0x2317   : > { %8506 = vmatpush3.bf16.msk.msra.mxu1 %vm9082_vm7, %v8501_v30 }
0x2318   : > { %8508 = vmatprep.subr.bf16.mxu1 %v8507_v19 }
0x23e0   : > { %v8073_v35 = vpop.f32.mrb[34].mxu0 }
0x23e1   : > { %v5770_v31 = vpop.f32.mrb[35].mxu0 }
0x23e2   : > { %v8495_v13 = vpack.c.bf16 %v8073_v35, %v5770_v31  ;;  %v7342_v35 = vld [vmem:[%s9296_s10 + $0x1] ss:$0 sm:$0xff]  ;;  %s1276_s10 = scalar_lea.vmem %s9658_s7, %s9660_s16 }
0x23e4   : > { %8497 = vmatprep.subr.msk.bf16.mxu0 %vm9093_vm8, %v8495_v13 }
0x23e5   : > { %8500 = vmatpush3.bf16.xpose.msk.msra.mxu0 %vm9093_vm8, %v8495_v13 }
0x23e6   : > { %8099 = vmatprep.subr.mxu0 %v7335_v51 }
0x23ec   : > { %8090 = vmatmul.mubr.msk.f32.vlgmr.msra.gmra.mrb[36].mxu0 %vm1901_vm5, %v8062_v26 }
0x23ed   : > { %8100 = vmatpush3.msra.mxu0 %v7335_v51  ;;  %v7349_v51 = vld [vmem:[%s9320_s2 + $0x1] ss:$0 sm:$0xff]  ;;  %s1352_s2 = scalar_lea.vmem %s8901_s29, %s8985_s22 }
0x24bf   : > { %v8091_v34 = vpop.f32.mrb[36].mxu0 }
0x24c0   : > { %v5947_v36 = vmul.f32 0.35355338, %v8091_v34  ;;  %v5937_v37 = vpop.f32.mrb[37].mxu0 }
0x24c1   : > { %v5946_v38 = vmul.f32 0.35355338, %v5937_v37 }
0x24c2   : > { %v5949_v7 = vadd.f32 %v9401_v61, %v5947_v36  ;;  %v7343_v36 = vld [vmem:[%s9300_s6 + $0x1] ss:$0 sm:$0xff]  ;;  %s9655_s6 = sld [smem:[#allocation12_spill]] }
0x24c3   : > { %v5948_v39 = vadd.f32 %v9405_v62, %v5946_v38 }
0x24c4   : > { %v5953_v40 = vsel %vm1997_vm10, %v5949_v7, -inf }
0x24c5   : > { %5954 = vmax.xlane.f32.xlu1 %v5953_v40  ;;  %v5950_v41 = vsel %vm1993_vm9, %v5948_v39, -inf  ;;  %v7352_v40 = vld [vmem:[%s9308_s8 + $0x40] sm:$0xff] }
0x24c6   : > { %5951 = vmax.xlane.f32.xlu0 %v5950_v41  ;;  %v7353_v41 = vld [vmem:[%s9308_s8 + $0x48] sm:$0xff] }
0x24c8   : > { %s1281_s1 = scalar_lea.vmem %s9655_s6, %s7377_s28 }
0x2552   : > { %v5955_v42 = vpop.xlane.xlu1 %5954 }
0x2553   : > { %v5957_v11 = vsub.f32 %v5949_v7, %v5955_v42  ;;  %v5952_v43 = vpop.xlane.xlu0 %5951  ;;  %v8515_v42 = vpack.c.bf16 %v7353_v41, %v7352_v40  ;;  %v7364_v40 = vld [vmem:[%s1273_s0] ss:$0 sm:$0xff] }
0x2554   : > { %v5956_v44 = vsub.f32 %v5948_v39, %v5952_v43  ;;  %v7355_v43 = vld [vmem:[%s9308_s8 + $0x58] sm:$0xff] }
0x2555   : > { %v5960_v45 = vmul.f32 1.442695, %v5957_v11  ;;  %v7354_v11 = vld [vmem:[%s9308_s8 + $0x50] sm:$0xff]  ;;  %8516 = vmatprep.subr.bf16.mxu0 %v8515_v42 }
0x2556   : > { %v5958_v46 = vmul.f32 1.442695, %v5956_v44  ;;  %v7356_v44 = vld [vmem:[%s9308_s8 + $0x60] sm:$0xff] }
0x2557   : > { %8683 = vpow2.f32 %v5960_v45  ;;  %v8519_v45 = vpack.c.bf16 %v7355_v43, %v7354_v11 }
0x2558   : > { %8685 = vpow2.f32 %v5958_v46  ;;  %v7357_v46 = vld [vmem:[%s9308_s8 + $0x68] sm:$0xff] }
0x2561   : > { %v8684_v49 = vpop.eup %8683 }
0x2562   : > { %v8686_v50 = vpop.eup %8685  ;;  %v5965_v61 = vsel %vm1997_vm10, %v8684_v49, 0.0 }
0x2563   : > { %5966 = vadd.xlane.f32.xlu1 %v5965_v61  ;;  %v5962_v62 = vsel %vm1993_vm9, %v8686_v50, 0.0  ;;  %v7359_v61 = vld [vmem:[%s9308_s8 + $0x78] sm:$0xff] }
0x2564   : > { %5963 = vadd.xlane.f32.xlu0 %v5962_v62 }
0x25f0   : > { %v5967_v53 = vpop.xlane.xlu1 %5966 }
0x25f1   : > { %8687 = vrcp.f32 %v5967_v53  ;;  %v5964_v54 = vpop.xlane.xlu0 %5963 }
0x25f2   : > { %8689 = vrcp.f32 %v5964_v54 }
0x25fb   : > { %v8688_v32 = vpop.eup %8687 }
0x25fc   : > { %v8690_v55 = vpop.eup %8689  ;;  %v5971_v59 = vmul.f32 %v8688_v32, %v8684_v49  ;;  %v8523_v49 = vpack.c.bf16 %v7357_v46, %v7356_v44 }
0x25fd   : > { %v5969_v33 = vmul.f32 %v8690_v55, %v8686_v50  ;;  %v7358_v50 = vld [vmem:[%s9308_s8 + $0x70] sm:$0xff]  ;;  %s9654_s8 = sld [smem:[#allocation9_spill]] }
0x25fe   : > { %v8527_v62 = vpack.c.bf16 %v7359_v61, %v7358_v50  ;;  %v6454_v61 = vld [vmem:[%s9656_s18] sm:$0x3] }
0x25ff   : > { %8096 = vmatprep.mubr.msk.f32.mxu1 %vm1993_vm9, %v5969_v33 }
0x2600   : > { %8097 = vmatmul.mubr.msk.f32.vlgmr.msra.gmra.mrb[52].mxu1 %vm1993_vm9, %v5971_v59 }
0x2601   : > { %8510 = vmatpush3.bf16.msra.mxu1 %v8507_v19 }
0x2602   : > { %8512 = vmatprep.subr.bf16.mxu1 %v8511_v23 }
0x2603   : > { %s1270_s23 = scalar_lea.vmem %s9654_s8, %s9660_s16 }
0x2604   : > { %v7365_v43 = vld [vmem:[%s1270_s23] ss:$0 sm:$0xff] }
0x2605   : > { %8514 = vmatpush3.bf16.msra.mxu1 %v8511_v23 }
0x2606   : > { %8531 = vmatprep.subr.bf16.mxu1 %v8743_v9 }
0x26d3   : > { %v8098_v60 = vpop.f32.mrb[52].mxu1 }
0x26d4   : > { %v6047_v52 = vpop.f32.mrb[53].mxu1 }
0x26d5   : > { %8101 = vmatprep.mubr.msk.f32.mxu0 %vm1901_vm5, %v6047_v52 }
0x26d6   : > { %8102 = vmatmul.mubr.msk.f32.vlgmr.msra.gmra.mrb[28].mxu0 %vm1901_vm5, %v8098_v60 }
0x26d7   : > { %8518 = vmatpush3.bf16.msra.mxu0 %v8515_v42 }
0x26d8   : > { %8520 = vmatprep.subr.bf16.mxu0 %v8519_v45 }
0x26db   : > { %8522 = vmatpush3.bf16.msra.mxu0 %v8519_v45 }
0x26dc   : > { %8524 = vmatprep.subr.bf16.mxu0 %v8523_v49 }
0x26df   : > { %8526 = vmatpush3.bf16.msra.mxu0 %v8523_v49 }
0x26e0   : > { %8528 = vmatprep.subr.bf16.mxu0 %v8527_v62 }
0x26e3   : > { %8530 = vmatpush3.bf16.msra.mxu0 %v8527_v62  ;;  %v6606_v62 = vld [vmem:[%s1281_s1] sm:$0xff] }
0x27a9   : > { %v8103_v57 = vpop.f32.mrb[28].mxu0 }
0x27aa   : > { %v6141_v63 = vadd.f32 %v8103_v57, %v9331_v47  ;;  %v6129_v56 = vpop.f32.mrb[29].mxu0 }
0x27ab   : > { %v6140_v0 = vadd.f32 %v6129_v56, %v9334_v48 }
0x27ac   : > { %v9545_v1 = vadd.f32 %v7339_v58, %v6141_v63 }
0x27ad   : > { %v9547_v2 = vadd.f32 %v7339_v58, %v6140_v0 }
0x27ae   : > { %v6159_v4 = vsel %vm1553_vm4, %v9545_v1, 0.0 }
0x27af   : > { %6160 = vadd.xlane.f32.xlu1 %v6159_v4  ;;  %v6156_v5 = vsel %vm1549_vm3, %v9547_v2, 0.0 }
0x27b0   : > { %6157 = vadd.xlane.f32.xlu0 %v6156_v5 }
0x283c   : > { %v6161_v6 = vpop.xlane.xlu1 %6160 }
0x283d   : > { %v6163_v47 = vmul.f32 0.03125, %v6161_v6  ;;  %v6158_v8 = vpop.xlane.xlu0 %6157 }
0x283e   : > { %v6162_v48 = vmul.f32 0.03125, %v6158_v8 }
0x283f   : > { %v6165_v10 = vsub.f32 %v9545_v1, %v6163_v47 }
0x2840   : > { %v6164_v12 = vsub.f32 %v9547_v2, %v6162_v48 }
0x2841   : > { %v6167_v14 = vmul.f32 %v6165_v10, %v6165_v10 }
0x2842   : > { %v6166_v15 = vmul.f32 %v6164_v12, %v6164_v12 }
0x2843   : > { %v6171_v22 = vsel %vm1553_vm4, %v6167_v14, 0.0 }
0x2844   : > { %6172 = vadd.xlane.f32.xlu1 %v6171_v22  ;;  %v6168_v18 = vsel %vm1549_vm3, %v6166_v15, 0.0  ;;  %v7361_v15 = vld [vmem:[%s9327_s5 + $0x1] ss:$0 sm:$0xff] }
0x2845   : > { %6169 = vadd.xlane.f32.xlu0 %v6168_v18 }
0x28d1   : > { %v6173_v24 = vpop.xlane.xlu1 %6172 }
0x28d2   : > { %v6175_v25 = vmul.f32 0.03125, %v6173_v24  ;;  %v6170_v26 = vpop.xlane.xlu0 %6169 }
0x28d3   : > { %v6174_v27 = vmul.f32 0.03125, %v6170_v26 }
0x28d4   : > { %v6177_v28 = vadd.f32 1e-05, %v6175_v25 }
0x28d5   : > { %v6176_v29 = vadd.f32 1e-05, %v6174_v27 }
0x28d6   : > { %8691 = vrsqrt.f32 %v6177_v28 }
0x28d7   : > { %8693 = vrsqrt.f32 %v6176_v29 }
0x28e0   : > { %v8692_v30 = vpop.eup %8691 }
0x28e1   : > { %v8694_v31 = vpop.eup %8693  ;;  %v6181_v13 = vmul.f32 %v8692_v30, %v6165_v10 }
0x28e2   : > { %v6180_v34 = vmul.f32 %v8694_v31, %v6164_v12  ;;  %v8747_v31 = vmov 0.0  }
0x28e3   : > { %v6189_v37 = vmul.f32 %v7342_v35, %v6181_v13 }
0x28e4   : > { %v6188_v38 = vmul.f32 %v7342_v35, %v6180_v34 }
0x28e5   : > { %v6197_v39 = vadd.f32 %v7343_v36, %v6189_v37 }
0x28e6   : > { %v6196_v7 = vadd.f32 %v7343_v36, %v6188_v38 }
0x28e8   : > { %8112 = vmatprep.mubr.msk.f32.mxu1 %vm1549_vm3, %v6196_v7 }
0x28e9   : > { %8113 = vmatmul.mubr.msk.f32.vlgmr.msra.gmra.mrb[54].mxu1 %vm1549_vm3, %v6197_v39 }
0x28ea   : > { %8138 = vmatprep.mubr.msk.f32.mxu1 %vm8746_vm11, %v8747_v31 }
0x29bc   : > { %v8114_v53 = vpop.f32.mrb[54].mxu1 }
0x29bd   : > { %v6289_v54 = vadd.f32 %v8114_v53, %v7349_v51  ;;  %v6283_v32 = vpop.f32.mrb[55].mxu1  ;;  %v6531_v53 = vld [vmem:[%s9657_s26] sm:$0x3] }
0x29be   : > { %v6284_v55 = vadd.f32 %v7349_v51, %v6283_v32  ;;  %v6607_v51 = vld [vmem:[%s1281_s1 + $0x8] sm:$0xff]  ;;  %v6608_v32 = vld [vmem:[%s1281_s1 + $0x10] sm:$0xff] }
0x29bf   : > { %v6295_v33 = vmul.f32 0.044715, %v6289_v54  ;;  %v6293_v10 = vmul.f32 0.5, %v6289_v54 }
0x29c0   : > { %v6294_v59 = vmul.f32 0.044715, %v6284_v55  ;;  %v6292_v8 = vmul.f32 0.5, %v6284_v55 }
0x29c1   : > { %v6297_v60 = vmul.f32 %v6295_v33, %v6289_v54 }
0x29c2   : > { %v6296_v52 = vmul.f32 %v6294_v59, %v6284_v55 }
0x29c3   : > { %v6299_v57 = vmul.f32 %v6297_v60, %v6289_v54 }
0x29c4   : > { %v6298_v58 = vmul.f32 %v6296_v52, %v6284_v55 }
0x29c5   : > { %v6301_v63 = vadd.f32 %v6299_v57, %v6289_v54  ;;  %v8540_v54 = vpack.c.bf16 %v6607_v51, %v6606_v62  ;;  %v7370_v57 = vld [vmem:[%s1276_s10] ss:$0 sm:$0xff] }
0x29c6   : > { %v6300_v56 = vadd.f32 %v6298_v58, %v6284_v55  ;;  %v6609_v55 = vld [vmem:[%s1281_s1 + $0x18] sm:$0xff] }
0x29c7   : > { %v6303_v0 = vmul.f32 0.7978846, %v6301_v63  ;;  %v8543_v33 = vpack.c.bf16 %v6609_v55, %v6608_v32 }
0x29c8   : > { %v6302_v4 = vmul.f32 0.7978846, %v6300_v56 }
0x29c9   : > { %8695 = vtanh.f32 %v6303_v0 }
0x29ca   : > { %8697 = vtanh.f32 %v6302_v4 }
0x29d3   : > { %v8696_v5 = vpop.eup %8695 }
0x29d4   : > { %v8698_v6 = vpop.eup %8697  ;;  %v6307_v47 = vadd.f32 1.0, %v8696_v5 }
0x29d5   : > { %v6306_v48 = vadd.f32 1.0, %v8698_v6 }
0x29d6   : > { %v6309_v14 = vmul.f32 %v6307_v47, %v6293_v10 }
0x29d7   : > { %v6308_v12 = vmul.f32 %v6306_v48, %v6292_v8 }
0x29d9   : > { %8131 = vmatprep.mubr.msk.f32.mxu0 %vm1363_vm0, %v6308_v12 }
0x29da   : > { %8132 = vmatmul.mubr.msk.f32.vlgmr.msra.gmra.mrb[38].mxu0 %vm1363_vm0, %v6309_v14 }
0x2aad   : > { %v8133_v22 = vpop.f32.mrb[38].mxu0 }
0x2aae   : > { %v6405_v18 = vadd.f32 %v8133_v22, %v7361_v15  ;;  %v6399_v16 = vpop.f32.mrb[39].mxu0 }
0x2aaf   : > { %v6400_v17 = vadd.f32 %v7361_v15, %v6399_v16 }
0x2ab0   : > { %v6409_v19 = vadd.f32 %v6405_v18, %v9545_v1 }
0x2ab1   : > { %v6408_v20 = vadd.f32 %v6400_v17, %v9547_v2 }
0x2ab2   : > { %v6415_v21 = vsel %vm1553_vm4, %v6409_v19, 0.0 }
0x2ab3   : > { %6416 = vadd.xlane.f32.xlu1 %v6415_v21  ;;  %v6412_v23 = vsel %vm1549_vm3, %v6408_v20, 0.0 }
0x2ab4   : > { %6413 = vadd.xlane.f32.xlu0 %v6412_v23 }
0x2b40   : > { %v6417_v24 = vpop.xlane.xlu1 %6416 }
0x2b41   : > { %v6419_v25 = vmul.f32 0.03125, %v6417_v24  ;;  %v6414_v26 = vpop.xlane.xlu0 %6413 }
0x2b42   : > { %v6418_v27 = vmul.f32 0.03125, %v6414_v26 }
0x2b43   : > { %v6421_v28 = vsub.f32 %v6409_v19, %v6419_v25 }
0x2b44   : > { %v6420_v29 = vsub.f32 %v6408_v20, %v6418_v27 }
0x2b45   : > { %v6423_v30 = vmul.f32 %v6421_v28, %v6421_v28 }
0x2b46   : > { %v6422_v35 = vmul.f32 %v6420_v29, %v6420_v29 }
0x2b47   : > { %v6427_v1 = vsel %vm1553_vm4, %v6423_v30, 0.0 }
0x2b48   : > { %6428 = vadd.xlane.f32.xlu1 %v6427_v1  ;;  %v6424_v2 = vsel %vm1549_vm3, %v6422_v35, 0.0 }
0x2b49   : > { %6425 = vadd.xlane.f32.xlu0 %v6424_v2 }
0x2bd5   : > { %v6429_v13 = vpop.xlane.xlu1 %6428 }
0x2bd6   : > { %v6431_v34 = vmul.f32 0.03125, %v6429_v13  ;;  %v6426_v36 = vpop.xlane.xlu0 %6425 }
0x2bd7   : > { %v6430_v37 = vmul.f32 0.03125, %v6426_v36 }
0x2bd8   : > { %v6433_v38 = vadd.f32 1e-05, %v6431_v34 }
0x2bd9   : > { %v6432_v7 = vadd.f32 1e-05, %v6430_v37 }
0x2bda   : > { %8699 = vrsqrt.f32 %v6433_v38 }
0x2bdb   : > { %8701 = vrsqrt.f32 %v6432_v7 }
0x2be4   : > { %v8700_v39 = vpop.eup %8699 }
0x2be5   : > { %v8702_v41 = vpop.eup %8701  ;;  %v6437_v42 = vmul.f32 %v8700_v39, %v6421_v28 }
0x2be6   : > { %v6436_v11 = vmul.f32 %v8702_v41, %v6420_v29 }
0x2be7   : > { %v6445_v44 = vmul.f32 %v7364_v40, %v6437_v42 }
0x2be8   : > { %v6444_v45 = vmul.f32 %v7364_v40, %v6436_v11 }
0x2be9   : > { %v6453_v46 = vadd.f32 %v7365_v43, %v6445_v44 }
0x2bea   : > { %v6452_v49 = vadd.f32 %v7365_v43, %v6444_v45 }
0x2bec   : > { %v8532_v50 = vpack.c.bf16 %v6453_v46, %v6452_v49 }
0x2bee   : > { %8534 = vmatpush3.bf16.msk.msra.mxu1 %vm9082_vm7, %v8532_v50 }
0x2bef   : > { %8535 = vmatprep.subr.bf16.mxu1 %v8743_v9 }
0x2bf1   : > { %8139 = vmatmul.mubr.msk.f32.vlgmr.msra.gmra.mrb[56].mxu1 %vm1993_vm9, %v6454_v61 }
0x2bf2   : > { %8538 = vmatpush3.bf16.msk.msra.mxu1 %vm9082_vm7, %v8532_v50  ;;  %8145 = vmatprep.mubr.msk.f32.mxu1 %vm8746_vm11, %v8747_v31 }
0x2bf3   : > { %8539 = vmatprep.subr.bf16.mxu1 %v8743_v9 }
0x2bf5   : > { %8146 = vmatmul.mubr.msk.f32.vlgmr.msra.gmra.mrb[58].mxu1 %vm1993_vm9, %v6531_v53 }
0x2bf6   : > { %8541 = vmatpush3.bf16.msra.mxu1 %v8540_v54  ;;  %8156 = vmatprep.mubr.msk.f32.mxu1 %vm8746_vm11, %v8747_v31 }
0x2bf7   : > { %8542 = vmatprep.subr.bf16.mxu1 %v8743_v9 }
0x2bfa   : > { %8544 = vmatpush3.bf16.msra.mxu1 %v8543_v33 }
0x2cc4   : > { %v6527_v3 = vpop.f32.mrb[56].mxu1 }
0x2cc5   : > { %v8140_v59 = vpop.f32.mrb[57].mxu1  ;;  %8157 = vmatmul.mubr.msk.f32.vlgmr.msra.gmra.mrb[60].mxu1 %vm1549_vm3, %v6527_v3 }
0x2cc8   : > { %v6601_v60 = vpop.f32.mrb[58].mxu1 }
0x2cc9   : > { %6605 = vst.msk [vmem:[%s1356_s11] sm:$0x3] %vm1553_vm4, %v6601_v60  ;;  %v8147_v52 = vpop.f32.mrb[59].mxu1 }
0x2d98   : > { %v6686_v58 = vpop.f32.mrb[60].mxu1 }
0x2d99   : > { %v6687_v63 = vadd.f32 %v7370_v57, %v6686_v58  ;;  %v8158_v56 = vpop.f32.mrb[61].mxu1 }
0x2d9b   : > { %6690 = vst [vmem:[%s1352_s2] sm:$0x3] %v6687_v63 }
0x2d9c PF: > { %s72_s15 = sadd.s32 1, %s8711_s15  }
0x2d9d   : > { %p69_p4 = scmp.ge.s32.totalorder %s72_s15, 4  }
0x2d9f   :  { %71 = sbr.rel (!%p69_p4) target bundleno = 51 (0x33), region = 311 }

</bundles_post_ra>
